<compile_context>
chip_gen: v5e
topology: v5e:2x2
jax: 0.10.0
libtpu: 0.0.40
codegen_flags: <defaults>
</compile_context>

<pallas_src>
import math

import jax
import jax.numpy as jnp
from jax.experimental import pallas as pl


HIDDEN = 1000          # logical hidden size of the PyTorch module
HIDDEN_PAD = 1024      # zero-padded to a multiple of 128 lanes (numerical no-op)


def _mlp_kernel(x_ref, w1_ref, b1_ref, w2_ref, b2_ref, o_ref):
    """o = relu(x @ w1 + b1) @ w2 + b2, bf16 operands, f32 accumulation."""
    x = x_ref[...].astype(jnp.bfloat16)
    h = jnp.dot(x, w1_ref[...], preferred_element_type=jnp.float32)
    h = jnp.maximum(h + b1_ref[...], 0.0)
    out = jnp.dot(h.astype(jnp.bfloat16), w2_ref[...],
                  preferred_element_type=jnp.float32)
    o_ref[...] = (out + b2_ref[...]).astype(o_ref.dtype)


def net_forward(x, w1_bf, b1_f32, w2_bf, b2_f32):
    """x: (B, F) f32; w1_bf: (F, Hp) bf16; b1: (1, Hp) f32; w2_bf: (Hp, C) bf16;
    b2: (1, C) f32 -> (B, C) f32.  Params must come from prepare_params()."""
    B, F = x.shape
    Hp = w1_bf.shape[1]
    C = w2_bf.shape[1]
    assert w1_bf.dtype == jnp.bfloat16 and w2_bf.dtype == jnp.bfloat16, (
        "weights must be pre-cast to bf16 via prepare_params() -- no per-call casts")

    bytes_accessed = (
        x.size * 4                 # x read (f32)
        + w1_bf.size * 2           # w1 read (bf16) -- dominant term
        + b1_f32.size * 4
        + w2_bf.size * 2
        + b2_f32.size * 4
        + B * C * 4                # output write (f32)
    )
    cost = pl.CostEstimate(
        flops=2 * B * F * Hp + 2 * B * Hp * C,
        transcendentals=0,
        bytes_accessed=bytes_accessed,
    )

    # Single invocation (grid=()): the whole problem fits comfortably in VMEM
    # (~2 MiB of weights), so a reduction grid would be pure per-step overhead.
    return pl.pallas_call(
        _mlp_kernel,
        out_shape=jax.ShapeDtypeStruct((B, C), jnp.float32),
        in_specs=[
            pl.BlockSpec((B, F), lambda: (0, 0)),     # x (full block)
            pl.BlockSpec((F, Hp), lambda: (0, 0)),    # w1 (full block, bf16)
            pl.BlockSpec((1, Hp), lambda: (0, 0)),    # b1
            pl.BlockSpec((Hp, C), lambda: (0, 0)),    # w2
            pl.BlockSpec((1, C), lambda: (0, 0)),     # b2
        ],
        out_specs=pl.BlockSpec((B, C), lambda: (0, 0)),
        cost_estimate=cost,
    )(x, w1_bf, b1_f32, w2_bf, b2_f32)


def init_params(key, in_features, hidden=HIDDEN, out_features=2):
    """Deterministic init mimicking nn.Linear's default U(-1/sqrt(fan_in), ...)."""
    k1, k2, k3, k4 = jax.random.split(key, 4)
    bound1 = 1.0 / math.sqrt(in_features)
    bound2 = 1.0 / math.sqrt(hidden)
    # stored as (in, out) = PyTorch weight.T
    w1 = jax.random.uniform(k1, (in_features, hidden), jnp.float32, -bound1, bound1)
    b1 = jax.random.uniform(k2, (1, hidden), jnp.float32, -bound1, bound1)
    w2 = jax.random.uniform(k3, (hidden, out_features), jnp.float32, -bound2, bound2)
    b2 = jax.random.uniform(k4, (1, out_features), jnp.float32, -bound2, bound2)
    return w1, b1, w2, b2


def prepare_params(w1, b1, w2, b2, hidden_pad=HIDDEN_PAD):
    """One-time: zero-pad the hidden dim to a lane-aligned size and cast weights
    to bf16.  Done outside the per-call path so the forward pass never emits
    convert ops on the (dominant) w1 tensor."""
    H = w1.shape[1]
    pad = hidden_pad - H
    if pad:
        w1 = jnp.pad(w1, ((0, 0), (0, pad)))   # extra cols -> relu(0) = 0
        b1 = jnp.pad(b1, ((0, 0), (0, pad)))
        w2 = jnp.pad(w2, ((0, pad), (0, 0)))   # extra rows contribute nothing
    w1_bf = w1.astype(jnp.bfloat16)
    w2_bf = w2.astype(jnp.bfloat16)
    return w1_bf, b1.astype(jnp.float32), w2_bf, b2.astype(jnp.float32)


if __name__ == "__main__":
    # Net(input_shape=(4, 16, 16)) -> fc1 input features = 4*16*16 = 1024.
    input_shape = (4, 16, 16)
    in_features = 4 * 16 * 16
    batch = 2

    key = jax.random.PRNGKey(0)
    kx, kp = jax.random.split(key)
    x_img = jax.random.normal(kx, (batch,) + input_shape, jnp.float32)
    x = x_img.reshape(batch, in_features)          # flatten, as the training loop does

    w1, b1, w2, b2 = init_params(kp, in_features)
    w1_bf, b1p, w2_bf, b2p = prepare_params(w1, b1, w2, b2)   # one-time, outside hot path
    w1_bf, b1p, w2_bf, b2p = jax.block_until_ready((w1_bf, b1p, w2_bf, b2p))

    out = net_forward(x, w1_bf, b1p, w2_bf, b2p)
    out = jax.block_until_ready(out)

    # Reference mirroring the kernel's numerics (bf16 operands, f32 accumulation).
    xb = x.astype(jnp.bfloat16).astype(jnp.float32)
    w1b = w1_bf.astype(jnp.float32)
    w2b = w2_bf.astype(jnp.float32)
    h_ref = jnp.maximum(xb @ w1b + b1p, 0.0)
    ref = h_ref.astype(jnp.bfloat16).astype(jnp.float32) @ w2b + b2p

    # Sanity check against the full-precision module output (looser tolerance).
    ref_f32 = jnp.maximum(x @ w1 + b1, 0.0) @ w2 + b2

    assert out.shape == (batch, 2)
    assert jnp.allclose(out, ref, atol=2e-3, rtol=2e-3)
    assert jnp.allclose(out, ref_f32, atol=5e-2, rtol=5e-2)

    print("KERNEL_OK")
</pallas_src>

<mosaic_0001>
module attributes {stable_mosaic.version = 11 : i64} {
  func.func @_mlp_kernel(%arg0: memref<2x1024xf32, #tpu.memory_space<vmem>>, %arg1: memref<1024x1024xbf16, #tpu.memory_space<vmem>>, %arg2: memref<1x1024xf32, #tpu.memory_space<vmem>>, %arg3: memref<1024x2xbf16, #tpu.memory_space<vmem>>, %arg4: memref<1x2xf32, #tpu.memory_space<vmem>>, %arg5: memref<2x2xf32, #tpu.memory_space<vmem>>) attributes {dimension_semantics = [], scalar_prefetch = 0 : i64, scratch_operands = 0 : i64, tpu.core_type = #tpu.core_type<tc>} {
    %c0 = arith.constant 0 : index
    %c0_0 = arith.constant 0 : index
    %0 = vector.load %arg0[%c0, %c0_0] : memref<2x1024xf32, #tpu.memory_space<vmem>>, vector<2x1024xf32>
    %1 = arith.truncf %0 : vector<2x1024xf32> to vector<2x1024xbf16>
    %c0_1 = arith.constant 0 : index
    %c0_2 = arith.constant 0 : index
    %2 = vector.load %arg1[%c0_1, %c0_2] : memref<1024x1024xbf16, #tpu.memory_space<vmem>>, vector<1024x1024xbf16>
    %cst = arith.constant dense<0.000000e+00> : vector<2x1024xf32>
    %3 = tpu.matmul %1, %2, %cst {dimension_numbers = #tpu.dot_dimension_numbers<[1], [0], [0], [1], [0, 0, 1, 1], [], []>} : vector<2x1024xbf16>, vector<1024x1024xbf16>, vector<2x1024xf32> -> vector<2x1024xf32>
    %c0_3 = arith.constant 0 : index
    %c0_4 = arith.constant 0 : index
    %4 = vector.load %arg2[%c0_3, %c0_4] : memref<1x1024xf32, #tpu.memory_space<vmem>>, vector<1x1024xf32>
    %5 = vector.broadcast %4 : vector<1x1024xf32> to vector<2x1024xf32>
    %6 = arith.addf %3, %5 : vector<2x1024xf32>
    %cst_5 = arith.constant 0.000000e+00 : f32
    %7 = vector.broadcast %cst_5 : f32 to vector<2x1024xf32>
    %8 = arith.maximumf %6, %7 : vector<2x1024xf32>
    %9 = arith.truncf %8 : vector<2x1024xf32> to vector<2x1024xbf16>
    %c0_6 = arith.constant 0 : index
    %c0_7 = arith.constant 0 : index
    %10 = vector.load %arg3[%c0_6, %c0_7] : memref<1024x2xbf16, #tpu.memory_space<vmem>>, vector<1024x2xbf16>
    %cst_8 = arith.constant dense<0.000000e+00> : vector<2x2xf32>
    %11 = tpu.matmul %9, %10, %cst_8 {dimension_numbers = #tpu.dot_dimension_numbers<[1], [0], [0], [1], [0, 0, 1, 1], [], []>} : vector<2x1024xbf16>, vector<1024x2xbf16>, vector<2x2xf32> -> vector<2x2xf32>
    %c0_9 = arith.constant 0 : index
    %c0_10 = arith.constant 0 : index
    %12 = vector.load %arg4[%c0_9, %c0_10] : memref<1x2xf32, #tpu.memory_space<vmem>>, vector<1x2xf32>
    %13 = vector.broadcast %12 : vector<1x2xf32> to vector<2x2xf32>
    %14 = arith.addf %11, %13 : vector<2x2xf32>
    %c0_11 = arith.constant 0 : index
    %c0_12 = arith.constant 0 : index
    %15 = vector.load %arg5[%c0_11, %c0_12] : memref<2x2xf32, #tpu.memory_space<vmem>>, vector<2x2xf32>
    tpu.vector_store %arg5[%c0_11, %c0_12], %14 {strides = array<i32>} : memref<2x2xf32, #tpu.memory_space<vmem>>, vector<2x2xf32>,
    return
  }
}

</mosaic_0001>

<bundles_post_ra>
// kernel: tpu_custom_call.1
= control target key start
LH: loop header
LB: loop body
LE: loop exit
PB: predicated region body
PF: predicated region fallthrough
CT: control target
= control target key end

     0   :  { %10 = vsyncpa [#allocation3], 0  ;;  %s8098_s0 = inlined_call_operand.hbm [shape: f32[2,1024], index: 0, kind: input, shape index: {}]   ;;  %s8099_s1 = inlined_call_operand.hbm [shape: bf16[1024,1024], index: 1, kind: input, shape index: {}]   ;;  %s8100_s2 = inlined_call_operand.hbm [shape: f32[1,1024], index: 2, kind: input, shape index: {}]   ;;  %s8101_s3 = inlined_call_operand.vmem [shape: bf16[1024,2], index: 3, kind: input, shape index: {}]   ;;  %s8102_s4 = inlined_call_operand.hbm [shape: f32[1,2], index: 4, kind: input, shape index: {}]   ;;  %s8103_s5 = inlined_call_operand.hbm [shape: f32[2,2], index: 5, kind: output, shape index: {}]  }
   0x1   :  { %11 = vsyncpa [#allocation6], 0 }
   0x2   :  { %12 = vsyncpa [#allocation9], 0  ;;  %s29_s20 = sshll.u32 %s8099_s1, 4  ;;  %s30_s20 = int_to_ptr.hbm [resolvable:$true] %s29_s20 }
   0x3   :  { %13 = vsyncpa [#allocation4], 0  ;;  %s7707_s21 = smov [#allocation5]   ;;  %s19_s25 = sshll.u32 %s8098_s0, 4  ;;  %s20_s25 = int_to_ptr.hbm [resolvable:$true] %s19_s25 }
   0x4   :  { %s31_s22 = sshll.u32 %s7707_s21, 4  ;;  %s7708_s26 = smov 512   ;;  %s32_s22 = int_to_ptr.vmem [resolvable:$true] %s31_s22 }
   0x5   :  { %s7709_s27 = smov 32   ;;  %s7710_s28 = smov [#allocation2]  }
   0x6   :  { %37 = dma.hbm_to_vmem [thread:$0]  %s30_s20, 65536, %s32_s22, [#allocation6], %s7708_s26, %s7708_s26, %s7709_s27  }
   0x7   :  { %s21_s29 = sshll.u32 %s7710_s28, 4  ;;  %s43_s7 = sshll.u32 %s8100_s2, 4  ;;  %s22_s29 = int_to_ptr.vmem [resolvable:$true] %s21_s29  ;;  %s44_s7 = int_to_ptr.hbm [resolvable:$true] %s43_s7 }
   0x8   :  { %24 = dma.hbm_to_vmem [thread:$0]  %s20_s25, 256, %s22_s29, [#allocation3]  }
   0x9   :  { %s56_s9 = sshll.u32 %s8102_s4, 4  ;;  %s7711_s10 = smov [#allocation7]   ;;  %s57_s9 = int_to_ptr.hbm [resolvable:$true] %s56_s9 }
   0xa   :  { %s45_s11 = sshll.u32 %s7711_s10, 4  ;;  %s7712_s0 = smov [#allocation8]   ;;  %s46_s11 = int_to_ptr.vmem [resolvable:$true] %s45_s11 }
   0xb   :  { %48 = dma.hbm_to_vmem [thread:$0]  %s44_s7, 128, %s46_s11, [#allocation6]  }
   0xc   :  { %s58_s12 = sshll.u32 %s7712_s0, 4  ;;  %s59_s12 = int_to_ptr.vmem [resolvable:$true] %s58_s12 }
   0xd   :  { %61 = dma.hbm_to_vmem [thread:$0]  %s57_s9, 16, %s59_s12, [#allocation9]  }
   0xe   :  { %7699 = dma.done.wait [#allocation3], 256  }
   0xf   :  { %7700 = vsyncadd [#allocation3], 4294967040 }
  0x10   :  { %7701 = dma.done.wait [#allocation6], 65664  }
  0x11   :  { %7702 = vsyncadd [#allocation6], 4294901632 }
  0x12   :  { %7703 = dma.done.wait [#allocation9], 16  }
  0x13   :  { %7704 = vsyncadd [#allocation9], 4294967280  ;;  %v4914_v0 = vld [vmem:[#allocation5 + $0x1c0] sm:$0xf]  ;;  %s4676_s26 = sshll.u32 %s8103_s5, 4  ;;  %vm4667_vm0 = vcmask 9216   ;;  %s4677_s26 = int_to_ptr.hbm [resolvable:$true] %s4676_s26 }
  0x14   :  { %v7052_v1 = vld [vmem:[#allocation5 + $0x1dc] sm:$0xf0] }
  0x15   :  { %v5170_v2 = vld [vmem:[#allocation5 + $0x3c0] sm:$0xf]  ;;  %v4915_v3 = vor.u32 %v7052_v1, %v4914_v0 }
  0x16   :  { %v7116_v4 = vld [vmem:[#allocation5 + $0x3dc] sm:$0xf0] }
  0x17   :  { %v5426_v5 = vld [vmem:[#allocation5 + $0x5c0] sm:$0xf]  ;;  %v5171_v7 = vor.u32 %v7116_v4, %v5170_v2  ;;  %3199 = vmatpush.bf16.msra.mxu0 %v4915_v3 }
  0x18   :  { %v7180_v6 = vld [vmem:[#allocation5 + $0x5dc] sm:$0xf0] }
  0x19   :  { %v5427_v8 = vor.u32 %v7180_v6, %v5426_v5  ;;  %v5682_v9 = vld [vmem:[#allocation5 + $0x7c0] sm:$0xf]  ;;  %3212 = vmatpush.bf16.msra.mxu1 %v5171_v7 }
  0x1a   :  { %v7244_v10 = vld [vmem:[#allocation5 + $0x7dc] sm:$0xf0] }
  0x1b   :  { %v4882_v11 = vld [vmem:[#allocation5 + $0x180] sm:$0xf]  ;;  %v5683_v12 = vor.u32 %v7244_v10, %v5682_v9  ;;  %3225 = vmatpush.bf16.msra.mxu2 %v5427_v8 }
  0x1c   :  { %v7044_v13 = vld [vmem:[#allocation5 + $0x19c] sm:$0xf0] }
  0x1d   :  { %v5138_v14 = vld [vmem:[#allocation5 + $0x380] sm:$0xf]  ;;  %v4883_v16 = vor.u32 %v7044_v13, %v4882_v11  ;;  %3238 = vmatpush.bf16.msra.mxu3 %v5683_v12 }
  0x1e   :  { %v7108_v15 = vld [vmem:[#allocation5 + $0x39c] sm:$0xf0] }
  0x1f   :  { %v5139_v17 = vor.u32 %v7108_v15, %v5138_v14  ;;  %v5394_v18 = vld [vmem:[#allocation5 + $0x580] sm:$0xf]  ;;  %3200 = vmatpush.bf16.msra.mxu0 %v4883_v16 }
  0x20   :  { %v7172_v19 = vld [vmem:[#allocation5 + $0x59c] sm:$0xf0] }
  0x21   :  { %v5650_v20 = vld [vmem:[#allocation5 + $0x780] sm:$0xf]  ;;  %v5395_v21 = vor.u32 %v7172_v19, %v5394_v18  ;;  %3213 = vmatpush.bf16.msra.mxu1 %v5139_v17 }
  0x22   :  { %v7236_v22 = vld [vmem:[#allocation5 + $0x79c] sm:$0xf0] }
  0x23   :  { %v4850_v23 = vld [vmem:[#allocation5 + $0x140] sm:$0xf]  ;;  %v5651_v25 = vor.u32 %v7236_v22, %v5650_v20  ;;  %3226 = vmatpush.bf16.msra.mxu2 %v5395_v21 }
  0x24   :  { %v7036_v24 = vld [vmem:[#allocation5 + $0x15c] sm:$0xf0] }
  0x25   :  { %v5106_v26 = vld [vmem:[#allocation5 + $0x340] sm:$0xf]  ;;  %v4851_v29 = vor.u32 %v7036_v24, %v4850_v23  ;;  %3239 = vmatpush.bf16.msra.mxu3 %v5651_v25 }
  0x26   :  { %v7100_v27 = vld [vmem:[#allocation5 + $0x35c] sm:$0xf0] }
  0x27   :  { %v5362_v28 = vld [vmem:[#allocation5 + $0x540] sm:$0xf]  ;;  %v5107_v33 = vor.u32 %v7100_v27, %v5106_v26  ;;  %3201 = vmatpush.bf16.msra.mxu0 %v4851_v29 }
  0x28   :  { %v7164_v30 = vld [vmem:[#allocation5 + $0x55c] sm:$0xf0] }
  0x29   :  { %v5618_v31 = vld [vmem:[#allocation5 + $0x740] sm:$0xf]  ;;  %v5363_v34 = vor.u32 %v7164_v30, %v5362_v28  ;;  %3214 = vmatpush.bf16.msra.mxu1 %v5107_v33 }
  0x2a   :  { %v7228_v32 = vld [vmem:[#allocation5 + $0x75c] sm:$0xf0] }
  0x2b   :  { %v4818_v35 = vld [vmem:[#allocation5 + $0x100] sm:$0xf]  ;;  %v5619_v38 = vor.u32 %v7228_v32, %v5618_v31  ;;  %3227 = vmatpush.bf16.msra.mxu2 %v5363_v34 }
  0x2c   :  { %v7028_v36 = vld [vmem:[#allocation5 + $0x11c] sm:$0xf0] }
  0x2d   :  { %v5074_v37 = vld [vmem:[#allocation5 + $0x300] sm:$0xf]  ;;  %v4819_v44 = vor.u32 %v7028_v36, %v4818_v35  ;;  %3240 = vmatpush.bf16.msra.mxu3 %v5619_v38 }
  0x2e   :  { %v7092_v39 = vld [vmem:[#allocation5 + $0x31c] sm:$0xf0] }
  0x2f   :  { %v5330_v40 = vld [vmem:[#allocation5 + $0x500] sm:$0xf]  ;;  %v5075_v45 = vor.u32 %v7092_v39, %v5074_v37  ;;  %3202 = vmatpush.bf16.msra.mxu0 %v4819_v44 }
  0x30   :  { %v7156_v41 = vld [vmem:[#allocation5 + $0x51c] sm:$0xf0] }
  0x31   :  { %v5586_v42 = vld [vmem:[#allocation5 + $0x700] sm:$0xf]  ;;  %v5331_v46 = vor.u32 %v7156_v41, %v5330_v40  ;;  %3215 = vmatpush.bf16.msra.mxu1 %v5075_v45 }
  0x32   :  { %v7220_v43 = vld [vmem:[#allocation5 + $0x71c] sm:$0xf0] }
  0x33   :  { %v4786_v47 = vld [vmem:[#allocation5 + $0xc0] sm:$0xf]  ;;  %v5587_v50 = vor.u32 %v7220_v43, %v5586_v42  ;;  %3228 = vmatpush.bf16.msra.mxu2 %v5331_v46 }
  0x34   :  { %v7020_v48 = vld [vmem:[#allocation5 + $0xdc] sm:$0xf0] }
  0x35   :  { %v5042_v49 = vld [vmem:[#allocation5 + $0x2c0] sm:$0xf]  ;;  %v4787_v56 = vor.u32 %v7020_v48, %v4786_v47  ;;  %3241 = vmatpush.bf16.msra.mxu3 %v5587_v50 }
  0x36   :  { %v7084_v51 = vld [vmem:[#allocation5 + $0x2dc] sm:$0xf0] }
  0x37   :  { %v5298_v52 = vld [vmem:[#allocation5 + $0x4c0] sm:$0xf]  ;;  %v5043_v57 = vor.u32 %v7084_v51, %v5042_v49  ;;  %3203 = vmatpush.bf16.msra.mxu0 %v4787_v56 }
  0x38   :  { %v7148_v53 = vld [vmem:[#allocation5 + $0x4dc] sm:$0xf0] }
  0x39   :  { %v5554_v54 = vld [vmem:[#allocation5 + $0x6c0] sm:$0xf]  ;;  %v5299_v58 = vor.u32 %v7148_v53, %v5298_v52  ;;  %3216 = vmatpush.bf16.msra.mxu1 %v5043_v57 }
  0x3a   :  { %v7212_v55 = vld [vmem:[#allocation5 + $0x6dc] sm:$0xf0] }
  0x3b   :  { %v4754_v59 = vld [vmem:[#allocation5 + $0x80] sm:$0xf]  ;;  %v5555_v62 = vor.u32 %v7212_v55, %v5554_v54  ;;  %3229 = vmatpush.bf16.msra.mxu2 %v5299_v58 }
  0x3c   :  { %v7012_v60 = vld [vmem:[#allocation5 + $0x9c] sm:$0xf0] }
  0x3d   :  { %v5010_v61 = vld [vmem:[#allocation5 + $0x280] sm:$0xf]  ;;  %v4755_v4 = vor.u32 %v7012_v60, %v4754_v59  ;;  %3242 = vmatpush.bf16.msra.mxu3 %v5555_v62 }
  0x3e   :  { %v7076_v63 = vld [vmem:[#allocation5 + $0x29c] sm:$0xf0] }
  0x3f   :  { %v5266_v0 = vld [vmem:[#allocation5 + $0x480] sm:$0xf]  ;;  %v5011_v5 = vor.u32 %v7076_v63, %v5010_v61  ;;  %3204 = vmatpush.bf16.msra.mxu0 %v4755_v4 }
  0x40   :  { %v7140_v1 = vld [vmem:[#allocation5 + $0x49c] sm:$0xf0] }
  0x41   :  { %v5522_v2 = vld [vmem:[#allocation5 + $0x680] sm:$0xf]  ;;  %v5267_v6 = vor.u32 %v7140_v1, %v5266_v0  ;;  %3217 = vmatpush.bf16.msra.mxu1 %v5011_v5 }
  0x42   :  { %v7204_v3 = vld [vmem:[#allocation5 + $0x69c] sm:$0xf0] }
  0x43   :  { %v4722_v7 = vld [vmem:[#allocation5 + $0x40] sm:$0xf]  ;;  %v5523_v10 = vor.u32 %v7204_v3, %v5522_v2  ;;  %3230 = vmatpush.bf16.msra.mxu2 %v5267_v6  ;;  %v78_v2 = vld [vmem:[#allocation2] sm:$0xff] }
  0x44   :  { %v7004_v8 = vld [vmem:[#allocation5 + $0x5c] sm:$0xf0]  ;;  %82 = vst [vmem:[#allocation1] ss:$4 sm:$0xff] %v78_v2 }
  0x45   :  { %v4978_v9 = vld [vmem:[#allocation5 + $0x240] sm:$0xf]  ;;  %v4723_v16 = vor.u32 %v7004_v8, %v4722_v7  ;;  %3243 = vmatpush.bf16.msra.mxu3 %v5523_v10 }
  0x46   :  { %v7068_v11 = vld [vmem:[#allocation5 + $0x25c] sm:$0xf0] }
  0x47   :  { %v5234_v12 = vld [vmem:[#allocation5 + $0x440] sm:$0xf]  ;;  %v4979_v19 = vor.u32 %v7068_v11, %v4978_v9  ;;  %3205 = vmatpush.bf16.msra.mxu0 %v4723_v16 }
  0x48   :  { %v7132_v13 = vld [vmem:[#allocation5 + $0x45c] sm:$0xf0] }
  0x49   :  { %v5490_v14 = vld [vmem:[#allocation5 + $0x640] sm:$0xf]  ;;  %v5235_v20 = vor.u32 %v7132_v13, %v5234_v12  ;;  %3218 = vmatpush.bf16.msra.mxu1 %v4979_v19 }
  0x4a   :  { %v7196_v15 = vld [vmem:[#allocation5 + $0x65c] sm:$0xf0] }
  0x4b   :  { %v4690_v17 = vld [vmem:[#allocation5] sm:$0xf]  ;;  %v5491_v24 = vor.u32 %v7196_v15, %v5490_v14  ;;  %3231 = vmatpush.bf16.msra.mxu2 %v5235_v20 }
  0x4c   :  { %v6996_v18 = vld [vmem:[#allocation5 + $0x1c] sm:$0xf0] }
  0x4d   :  { %v4946_v21 = vld [vmem:[#allocation5 + $0x200] sm:$0xf]  ;;  %v4691_v31 = vor.u32 %v6996_v18, %v4690_v17  ;;  %3244 = vmatpush.bf16.msra.mxu3 %v5491_v24 }
  0x4e   :  { %v7060_v22 = vld [vmem:[#allocation5 + $0x21c] sm:$0xf0] }
  0x4f   :  { %v5202_v23 = vld [vmem:[#allocation5 + $0x400] sm:$0xf]  ;;  %v4947_v35 = vor.u32 %v7060_v22, %v4946_v21  ;;  %3206 = vmatpush.bf16.msra.mxu0 %v4691_v31  ;;  %v85_v31 = vld.sshfl [vmem:[#allocation1] sm:$0xff pattern:$0x73625140] }
  0x50   :  { %v7124_v25 = vld [vmem:[#allocation5 + $0x41c] sm:$0xf0] }
  0x51   :  { %v5458_v26 = vld [vmem:[#allocation5 + $0x600] sm:$0xf]  ;;  %v5203_v36 = vor.u32 %v7124_v25, %v5202_v23  ;;  %3219 = vmatpush.bf16.msra.mxu1 %v4947_v35 }
  0x52   :  { %v7188_v27 = vld [vmem:[#allocation5 + $0x61c] sm:$0xf0] }
  0x53   :  { %v5938_v28 = vld [vmem:[#allocation5 + $0x9c0] sm:$0xf]  ;;  %v5459_v39 = vor.u32 %v7188_v27, %v5458_v26  ;;  %3232 = vmatpush.bf16.msra.mxu2 %v5203_v36  ;;  %v86_v36 = vld.sshfl [vmem:[#allocation1 + $0x8] sm:$0xff pattern:$0x73625140] }
  0x54   :  { %v7308_v29 = vld [vmem:[#allocation5 + $0x9dc] sm:$0xf0] }
  0x55   :  { %v6194_v30 = vld [vmem:[#allocation5 + $0xbc0] sm:$0xf]  ;;  %v5939_v40 = vor.u32 %v7308_v29, %v5938_v28  ;;  %3245 = vmatpush.bf16.msra.mxu3 %v5459_v39 }
  0x56   :  { %v7372_v32 = vld [vmem:[#allocation5 + $0xbdc] sm:$0xf0] }
  0x57   :  { %v6450_v33 = vld [vmem:[#allocation5 + $0xdc0] sm:$0xf]  ;;  %v6195_v41 = vor.u32 %v7372_v32, %v6194_v30  ;;  %3251 = vmatpush.bf16.msrb.mxu0 %v5939_v40  ;;  %v87_v30 = vld.sshfl [vmem:[#allocation1 + $0x10] sm:$0xff pattern:$0x73625140] }
  0x58   :  { %v7436_v34 = vld [vmem:[#allocation5 + $0xddc] sm:$0xf0] }
  0x59   :  { %v6706_v37 = vld [vmem:[#allocation5 + $0xfc0] sm:$0xf]  ;;  %v6451_v42 = vor.u32 %v7436_v34, %v6450_v33  ;;  %3264 = vmatpush.bf16.msrb.mxu1 %v6195_v41  ;;  %v7756_v33 = vpack.c.bf16 %v87_v30, %v87_v30  ;;  %v7758_v34 = vpack.c.bf16 %v85_v31, %v85_v31  ;;  %v7168_v30 = vld [vmem:[#allocation5 + $0x584] sm:$0xf] }
  0x5a   :  { %v7500_v38 = vld [vmem:[#allocation5 + $0xfdc] sm:$0xf0]  ;;  %v5396_v31 = vld [vmem:[#allocation5 + $0x5a0] sm:$0xf0] }
  0x5b   :  { %v5906_v43 = vld [vmem:[#allocation5 + $0x980] sm:$0xf]  ;;  %v6707_v46 = vor.u32 %v7500_v38, %v6706_v37  ;;  %3277 = vmatpush.bf16.msrb.mxu2 %v6451_v42  ;;  %v7762_v42 = vpack.c.bf16 %v86_v36, %v86_v36  ;;  %3207 = vmatmul.bf16.vlgmr.msra.gmra.mxu0 %v7758_v34  ;;  %v5652_v36 = vld [vmem:[#allocation5 + $0x7a0] sm:$0xf0] }
  0x5c   :  { %v7300_v44 = vld [vmem:[#allocation5 + $0x99c] sm:$0xf0]  ;;  %3233 = vmatmul.bf16.vlgmr.msra.gmra.mxu2 %v7756_v33 }
  0x5d   :  { %v6162_v45 = vld [vmem:[#allocation5 + $0xb80] sm:$0xf]  ;;  %v5907_v52 = vor.u32 %v7300_v44, %v5906_v43  ;;  %3290 = vmatpush.bf16.msrb.mxu3 %v6707_v46  ;;  %3220 = vmatmul.bf16.vlgmr.msra.gmra.mxu1 %v7762_v42 }
  0x5e   :  { %v7364_v47 = vld [vmem:[#allocation5 + $0xb9c] sm:$0xf0] }
  0x5f   :  { %v6418_v48 = vld [vmem:[#allocation5 + $0xd80] sm:$0xf]  ;;  %v6163_v53 = vor.u32 %v7364_v47, %v6162_v45  ;;  %3252 = vmatpush.bf16.msrb.mxu0 %v5907_v52  ;;  %v79_v52 = vld [vmem:[#allocation2 + $0x8] sm:$0xff] }
  0x60   :  { %v7428_v49 = vld [vmem:[#allocation5 + $0xd9c] sm:$0xf0]  ;;  %84 = vst [vmem:[#allocation1 + $0x20] ss:$4 sm:$0xff] %v79_v52  ;;  %v7224_v52 = vld [vmem:[#allocation5 + $0x744] sm:$0xf] }
  0x61   :  { %v6674_v50 = vld [vmem:[#allocation5 + $0xf80] sm:$0xf]  ;;  %v6419_v54 = vor.u32 %v7428_v49, %v6418_v48  ;;  %3265 = vmatpush.bf16.msrb.mxu1 %v6163_v53 }
  0x62   :  { %v7492_v51 = vld [vmem:[#allocation5 + $0xf9c] sm:$0xf0] }
  0x63   :  { %v5874_v55 = vld [vmem:[#allocation5 + $0x940] sm:$0xf]  ;;  %v6675_v58 = vor.u32 %v7492_v51, %v6674_v50  ;;  %3278 = vmatpush.bf16.msrb.mxu2 %v6419_v54 }
  0x64   :  { %v7292_v56 = vld [vmem:[#allocation5 + $0x95c] sm:$0xf0] }
  0x65   :  { %v6130_v57 = vld [vmem:[#allocation5 + $0xb40] sm:$0xf]  ;;  %v5875_v0 = vor.u32 %v7292_v56, %v5874_v55  ;;  %3291 = vmatpush.bf16.msrb.mxu3 %v6675_v58 }
  0x66   :  { %v7356_v59 = vld [vmem:[#allocation5 + $0xb5c] sm:$0xf0] }
  0x67   :  { %v6386_v60 = vld [vmem:[#allocation5 + $0xd40] sm:$0xf]  ;;  %v6131_v3 = vor.u32 %v7356_v59, %v6130_v57  ;;  %3253 = vmatpush.bf16.msrb.mxu0 %v5875_v0 }
  0x68   :  { %v7420_v61 = vld [vmem:[#allocation5 + $0xd5c] sm:$0xf0] }
  0x69   :  { %v6642_v62 = vld [vmem:[#allocation5 + $0xf40] sm:$0xf]  ;;  %v6387_v4 = vor.u32 %v7420_v61, %v6386_v60  ;;  %3266 = vmatpush.bf16.msrb.mxu1 %v6131_v3 }
  0x6a   :  { %v7484_v63 = vld [vmem:[#allocation5 + $0xf5c] sm:$0xf0] }
  0x6b   :  { %v5842_v1 = vld [vmem:[#allocation5 + $0x900] sm:$0xf]  ;;  %v6643_v7 = vor.u32 %v7484_v63, %v6642_v62  ;;  %3279 = vmatpush.bf16.msrb.mxu2 %v6387_v4 }
  0x6c   :  { %v7284_v5 = vld [vmem:[#allocation5 + $0x91c] sm:$0xf0] }
  0x6d   :  { %v6098_v6 = vld [vmem:[#allocation5 + $0xb00] sm:$0xf]  ;;  %v5843_v13 = vor.u32 %v7284_v5, %v5842_v1  ;;  %3292 = vmatpush.bf16.msrb.mxu3 %v6643_v7  ;;  %v4916_v7 = vld [vmem:[#allocation5 + $0x1e0] sm:$0xf0] }
  0x6e   :  { %v7348_v8 = vld [vmem:[#allocation5 + $0xb1c] sm:$0xf0] }
  0x6f   :  { %v6354_v9 = vld [vmem:[#allocation5 + $0xd00] sm:$0xf]  ;;  %v6099_v15 = vor.u32 %v7348_v8, %v6098_v6  ;;  %3254 = vmatpush.bf16.msrb.mxu0 %v5843_v13  ;;  %v7048_v6 = vld [vmem:[#allocation5 + $0x1c4] sm:$0xf] }
  0x70   :  { %v7412_v10 = vld [vmem:[#allocation5 + $0xd1c] sm:$0xf0]  ;;  %v7112_v8 = vld [vmem:[#allocation5 + $0x3c4] sm:$0xf] }
  0x71   :  { %v6610_v11 = vld [vmem:[#allocation5 + $0xf00] sm:$0xf]  ;;  %v6355_v16 = vor.u32 %v7412_v10, %v6354_v9  ;;  %3267 = vmatpush.bf16.msrb.mxu1 %v6099_v15  ;;  %v5172_v9 = vld [vmem:[#allocation5 + $0x3e0] sm:$0xf0] }
  0x72   :  { %v7476_v12 = vld [vmem:[#allocation5 + $0xf1c] sm:$0xf0]  ;;  %v7176_v10 = vld [vmem:[#allocation5 + $0x5c4] sm:$0xf] }
  0x73   :  { %v5810_v14 = vld [vmem:[#allocation5 + $0x8c0] sm:$0xf]  ;;  %v6611_v20 = vor.u32 %v7476_v12, %v6610_v11  ;;  %3280 = vmatpush.bf16.msrb.mxu2 %v6355_v16  ;;  %v5428_v12 = vld [vmem:[#allocation5 + $0x5e0] sm:$0xf0] }
  0x74   :  { %v7276_v17 = vld [vmem:[#allocation5 + $0x8dc] sm:$0xf0]  ;;  %v7240_v13 = vld [vmem:[#allocation5 + $0x7c4] sm:$0xf] }
  0x75   :  { %v6066_v18 = vld [vmem:[#allocation5 + $0xac0] sm:$0xf]  ;;  %v5811_v27 = vor.u32 %v7276_v17, %v5810_v14  ;;  %3293 = vmatpush.bf16.msrb.mxu3 %v6611_v20  ;;  %v5684_v14 = vld [vmem:[#allocation5 + $0x7e0] sm:$0xf0] }
  0x76   :  { %v7340_v19 = vld [vmem:[#allocation5 + $0xadc] sm:$0xf0]  ;;  %v7040_v17 = vld [vmem:[#allocation5 + $0x184] sm:$0xf] }
  0x77   :  { %v6322_v21 = vld [vmem:[#allocation5 + $0xcc0] sm:$0xf]  ;;  %v6067_v28 = vor.u32 %v7340_v19, %v6066_v18  ;;  %3255 = vmatpush.bf16.msrb.mxu0 %v5811_v27  ;;  %v4884_v18 = vld [vmem:[#allocation5 + $0x1a0] sm:$0xf0] }
  0x78   :  { %v7404_v22 = vld [vmem:[#allocation5 + $0xcdc] sm:$0xf0]  ;;  %v91_v19 = vld.sshfl [vmem:[#allocation1 + $0x30] sm:$0xff pattern:$0x73625140] }
  0x79   :  { %v6578_v23 = vld [vmem:[#allocation5 + $0xec0] sm:$0xf]  ;;  %v6323_v32 = vor.u32 %v7404_v22, %v6322_v21  ;;  %3268 = vmatpush.bf16.msrb.mxu1 %v6067_v28  ;;  %v4919_v21 = vor.u32 %v7048_v6, %v4916_v7  ;;  %v89_v22 = vld.sshfl [vmem:[#allocation1 + $0x20] sm:$0xff pattern:$0x73625140]  ;;  %v5687_v28 = vor.u32 %v7240_v13, %v5684_v14 }
  0x7a   :  { %v7468_v24 = vld [vmem:[#allocation5 + $0xedc] sm:$0xf0]  ;;  %v90_v27 = vld.sshfl [vmem:[#allocation1 + $0x28] sm:$0xff pattern:$0x73625140] }
  0x7b   :  { %v5778_v25 = vld [vmem:[#allocation5 + $0x880] sm:$0xf]  ;;  %v6579_v37 = vor.u32 %v7468_v24, %v6578_v23  ;;  %3281 = vmatpush.bf16.msrb.mxu2 %v6323_v32  ;;  %v5175_v24 = vor.u32 %v7112_v8, %v5172_v9  ;;  %v7768_v32 = vpack.c.bf16 %v91_v19, %v91_v19  ;;  %v4788_v6 = vld [vmem:[#allocation5 + $0xe0] sm:$0xf0] }
  0x7c   :  { %v7268_v26 = vld [vmem:[#allocation5 + $0x89c] sm:$0xf0]  ;;  %v7080_v7 = vld [vmem:[#allocation5 + $0x2c4] sm:$0xf] }
  0x7d   :  { %v6034_v29 = vld [vmem:[#allocation5 + $0xa80] sm:$0xf]  ;;  %v5779_v45 = vor.u32 %v7268_v26, %v5778_v25  ;;  %3294 = vmatpush.bf16.msrb.mxu3 %v6579_v37  ;;  %v5431_v25 = vor.u32 %v7176_v10, %v5428_v12  ;;  %v7104_v26 = vld [vmem:[#allocation5 + $0x384] sm:$0xf]  ;;  %v7770_v37 = vpack.c.bf16 %v89_v22, %v89_v22 }
  0x7e   :  { %v88_v35 = vld.sshfl [vmem:[#allocation1 + $0x18] sm:$0xff pattern:$0x73625140] }
  0x7f   :  { %v7332_v38 = vld [vmem:[#allocation5 + $0xa9c] sm:$0xf0]  ;;  %v7760_v41 = vpack.c.bf16 %v88_v35, %v88_v35  ;;  %3256 = vmatpush.bf16.msrb.mxu0 %v5779_v45  ;;  %v7232_v35 = vld [vmem:[#allocation5 + $0x784] sm:$0xf] }
  0x80   :  { %v6290_v39 = vld [vmem:[#allocation5 + $0xc80] sm:$0xf]  ;;  %v6035_v48 = vor.u32 %v7332_v38, %v6034_v29  ;;  %v5140_v29 = vld [vmem:[#allocation5 + $0x3a0] sm:$0xf0] }
  0x81   :  { %v7396_v40 = vld [vmem:[#allocation5 + $0xc9c] sm:$0xf0]  ;;  %3246 = vmatmul.bf16.vlgmr.msra.gmra.mxu3 %v7760_v41  ;;  %v7032_v45 = vld [vmem:[#allocation5 + $0x144] sm:$0xf] }
  0x82   :  { %v6546_v43 = vld [vmem:[#allocation5 + $0xe80] sm:$0xf]  ;;  %v6291_v49 = vor.u32 %v7396_v40, %v6290_v39  ;;  %3269 = vmatpush.bf16.msrb.mxu1 %v6035_v48  ;;  %v4887_v39 = vor.u32 %v7040_v17, %v4884_v18  ;;  %v7774_v40 = vpack.c.bf16 %v90_v27, %v90_v27  ;;  %v5655_v48 = vor.u32 %v7232_v35, %v5652_v36  ;;  %v5044_v9 = vld [vmem:[#allocation5 + $0x2e0] sm:$0xf0] }
  0x83   :  { %v7460_v44 = vld [vmem:[#allocation5 + $0xe9c] sm:$0xf0]  ;;  %v7144_v10 = vld [vmem:[#allocation5 + $0x4c4] sm:$0xf] }
  0x84   :  { %v5746_v46 = vld [vmem:[#allocation5 + $0x840] sm:$0xf]  ;;  %v6547_v53 = vor.u32 %v7460_v44, %v6546_v43  ;;  %3282 = vmatpush.bf16.msrb.mxu2 %v6291_v49  ;;  %v5143_v43 = vor.u32 %v7104_v26, %v5140_v29  ;;  %v5399_v44 = vor.u32 %v7168_v30, %v5396_v31  ;;  %v5108_v49 = vld [vmem:[#allocation5 + $0x360] sm:$0xf0] }
  0x85   :  { %v7260_v47 = vld [vmem:[#allocation5 + $0x85c] sm:$0xf0]  ;;  %v7208_v12 = vld [vmem:[#allocation5 + $0x6c4] sm:$0xf] }
  0x86   :  { %v6002_v50 = vld [vmem:[#allocation5 + $0xa40] sm:$0xf]  ;;  %v5747_v59 = vor.u32 %v7260_v47, %v5746_v46  ;;  %3295 = vmatpush.bf16.msrb.mxu3 %v6547_v53  ;;  %v4852_v46 = vld [vmem:[#allocation5 + $0x160] sm:$0xf0] }
  0x87   :  { %v7324_v51 = vld [vmem:[#allocation5 + $0xa5c] sm:$0xf0]  ;;  %v7096_v47 = vld [vmem:[#allocation5 + $0x344] sm:$0xf] }
  0x88   :  { %v6258_v54 = vld [vmem:[#allocation5 + $0xc40] sm:$0xf]  ;;  %v6003_v63 = vor.u32 %v7324_v51, %v6002_v50  ;;  %3257 = vmatpush.bf16.msrb.mxu0 %v5747_v59  ;;  %v7160_v50 = vld [vmem:[#allocation5 + $0x544] sm:$0xf] }
  0x89   :  { %v7388_v55 = vld [vmem:[#allocation5 + $0xc5c] sm:$0xf0]  ;;  %v5364_v51 = vld [vmem:[#allocation5 + $0x560] sm:$0xf0] }
  0x8a   :  { %v6514_v56 = vld [vmem:[#allocation5 + $0xe40] sm:$0xf]  ;;  %v6259_v0 = vor.u32 %v7388_v55, %v6258_v54  ;;  %3270 = vmatpush.bf16.msrb.mxu1 %v6003_v63  ;;  %v5620_v53 = vld [vmem:[#allocation5 + $0x760] sm:$0xf0]  ;;  %v4855_v54 = vor.u32 %v7032_v45, %v4852_v46  ;;  %v5111_v55 = vor.u32 %v7096_v47, %v5108_v49 }
  0x8b   :  { %v7452_v57 = vld [vmem:[#allocation5 + $0xe5c] sm:$0xf0]  ;;  %v7088_v59 = vld [vmem:[#allocation5 + $0x304] sm:$0xf] }
  0x8c   :  { %v5714_v58 = vld [vmem:[#allocation5 + $0x800] sm:$0xf]  ;;  %v6515_v4 = vor.u32 %v7452_v57, %v6514_v56  ;;  %3283 = vmatpush.bf16.msrb.mxu2 %v6259_v0  ;;  %v5367_v56 = vor.u32 %v7160_v50, %v5364_v51  ;;  %v7024_v57 = vld [vmem:[#allocation5 + $0x104] sm:$0xf] }
  0x8d   :  { %v7252_v60 = vld [vmem:[#allocation5 + $0x81c] sm:$0xf0]  ;;  %v5332_v63 = vld [vmem:[#allocation5 + $0x520] sm:$0xf0] }
  0x8e   :  { %v5970_v61 = vld [vmem:[#allocation5 + $0xa00] sm:$0xf]  ;;  %v5715_v11 = vor.u32 %v7252_v60, %v5714_v58  ;;  %3296 = vmatpush.bf16.msrb.mxu3 %v6515_v4  ;;  %v4820_v58 = vld [vmem:[#allocation5 + $0x120] sm:$0xf0]  ;;  %v5623_v60 = vor.u32 %v7224_v52, %v5620_v53 }
  0x8f   :  { %v7316_v62 = vld [vmem:[#allocation5 + $0xa1c] sm:$0xf0]  ;;  %v7216_v0 = vld [vmem:[#allocation5 + $0x704] sm:$0xf] }
  0x90   :  { %v6226_v1 = vld [vmem:[#allocation5 + $0xc00] sm:$0xf]  ;;  %v5971_v15 = vor.u32 %v7316_v62, %v5970_v61  ;;  %3258 = vmatpush.bf16.msrb.mxu0 %v5715_v11  ;;  %v5076_v61 = vld [vmem:[#allocation5 + $0x320] sm:$0xf0] }
  0x91   :  { %v7380_v2 = vld [vmem:[#allocation5 + $0xc1c] sm:$0xf0]  ;;  %v7152_v62 = vld [vmem:[#allocation5 + $0x504] sm:$0xf] }
  0x92   :  { %v6482_v3 = vld [vmem:[#allocation5 + $0xe00] sm:$0xf]  ;;  %v6227_v16 = vor.u32 %v7380_v2, %v6226_v1  ;;  %3271 = vmatpush.bf16.msrb.mxu1 %v5971_v15  ;;  %v5588_v1 = vld [vmem:[#allocation5 + $0x720] sm:$0xf0]  ;;  %v4823_v2 = vor.u32 %v7024_v57, %v4820_v58  ;;  %v5335_v4 = vor.u32 %v7152_v62, %v5332_v63  ;;  %v5047_v15 = vor.u32 %v7080_v7, %v5044_v9 }
  0x93   :  { %v7444_v5 = vld [vmem:[#allocation5 + $0xe1c] sm:$0xf0]  ;;  %3259 = vmatmul.bf16.vlgmr.msrb.gmra.mxu0 %v7770_v37  ;;  %v5591_v8 = vor.u32 %v7216_v0, %v5588_v1  ;;  %v5300_v11 = vld [vmem:[#allocation5 + $0x4e0] sm:$0xf0] }
  0x94   :  { %v6483_v20 = vor.u32 %v7444_v5, %v6482_v3  ;;  %v92_v23 = vld.sshfl [vmem:[#allocation1 + $0x38] sm:$0xff pattern:$0x73625140]  ;;  %3284 = vmatpush.bf16.msrb.mxu2 %v6227_v16  ;;  %3303 = vmatpush.bf16.msra.mxu0 %v4919_v21  ;;  %v5079_v3 = vor.u32 %v7088_v59, %v5076_v61  ;;  %v5303_v16 = vor.u32 %v7144_v10, %v5300_v11 }
  0x95   :  { %v7772_v38 = vpack.c.bf16 %v92_v23, %v92_v23  ;;  %3272 = vmatmul.bf16.vlgmr.msrb.gmra.mxu1 %v7774_v40  ;;  %v7016_v5 = vld [vmem:[#allocation5 + $0xc4] sm:$0xf] }
  0x96   :  { %3297 = vmatpush.bf16.msrb.mxu3 %v6483_v20  ;;  %3316 = vmatpush.bf16.msra.mxu1 %v5175_v24  ;;  %v5556_v13 = vld [vmem:[#allocation5 + $0x6e0] sm:$0xf0]  ;;  %v4791_v14 = vor.u32 %v7016_v5, %v4788_v6 }
  0x97   :  { %3285 = vmatmul.bf16.vlgmr.msrb.gmra.mxu2 %v7768_v32  ;;  %v7008_v17 = vld [vmem:[#allocation5 + $0x84] sm:$0xf]  ;;  %v5559_v20 = vor.u32 %v7208_v12, %v5556_v13 }
  0x98   :  { %3329 = vmatpush.bf16.msra.mxu2 %v5431_v25  ;;  %3304 = vmatpush.bf16.msra.mxu0 %v4887_v39  ;;  %v4756_v18 = vld [vmem:[#allocation5 + $0xa0] sm:$0xf0] }
  0x99   :  { %3298 = vmatmul.bf16.vlgmr.msrb.gmra.mxu3 %v7772_v38  ;;  %v7072_v19 = vld [vmem:[#allocation5 + $0x284] sm:$0xf]  ;;  %v4759_v26 = vor.u32 %v7008_v17, %v4756_v18 }
  0x9a   :  { %3342 = vmatpush.bf16.msra.mxu3 %v5687_v28  ;;  %3317 = vmatpush.bf16.msra.mxu1 %v5143_v43  ;;  %v5012_v21 = vld [vmem:[#allocation5 + $0x2a0] sm:$0xf0] }
  0x9b   :  { %v7136_v22 = vld [vmem:[#allocation5 + $0x484] sm:$0xf]  ;;  %v5015_v27 = vor.u32 %v7072_v19, %v5012_v21 }
  0x9c   :  { %3330 = vmatpush.bf16.msra.mxu2 %v5399_v44  ;;  %3305 = vmatpush.bf16.msra.mxu0 %v4855_v54  ;;  %v5268_v23 = vld [vmem:[#allocation5 + $0x4a0] sm:$0xf0] }
  0x9d   :  { %v7200_v24 = vld [vmem:[#allocation5 + $0x684] sm:$0xf]  ;;  %v5271_v28 = vor.u32 %v7136_v22, %v5268_v23 }
  0x9e   :  { %3343 = vmatpush.bf16.msra.mxu3 %v5655_v48  ;;  %3318 = vmatpush.bf16.msra.mxu1 %v5111_v55  ;;  %v5524_v25 = vld [vmem:[#allocation5 + $0x6a0] sm:$0xf0] }
  0x9f   :  { %v7000_v29 = vld [vmem:[#allocation5 + $0x44] sm:$0xf]  ;;  %v5527_v35 = vor.u32 %v7200_v24, %v5524_v25 }
  0xa0   :  { %3331 = vmatpush.bf16.msra.mxu2 %v5367_v56  ;;  %3306 = vmatpush.bf16.msra.mxu0 %v4823_v2  ;;  %v4724_v30 = vld [vmem:[#allocation5 + $0x60] sm:$0xf0] }
  0xa1   :  { %v7064_v31 = vld [vmem:[#allocation5 + $0x244] sm:$0xf]  ;;  %v4727_v46 = vor.u32 %v7000_v29, %v4724_v30 }
  0xa2   :  { %3344 = vmatpush.bf16.msra.mxu3 %v5623_v60  ;;  %3319 = vmatpush.bf16.msra.mxu1 %v5079_v3  ;;  %v4980_v36 = vld [vmem:[#allocation5 + $0x260] sm:$0xf0] }
  0xa3   :  { %v7128_v39 = vld [vmem:[#allocation5 + $0x444] sm:$0xf]  ;;  %v4983_v49 = vor.u32 %v7064_v31, %v4980_v36 }
  0xa4   :  { %3332 = vmatpush.bf16.msra.mxu2 %v5335_v4  ;;  %3307 = vmatpush.bf16.msra.mxu0 %v4791_v14  ;;  %v5236_v43 = vld [vmem:[#allocation5 + $0x460] sm:$0xf0] }
  0xa5   :  { %v7192_v44 = vld [vmem:[#allocation5 + $0x644] sm:$0xf]  ;;  %v5239_v50 = vor.u32 %v7128_v39, %v5236_v43 }
  0xa6   :  { %3345 = vmatpush.bf16.msra.mxu3 %v5591_v8  ;;  %3320 = vmatpush.bf16.msra.mxu1 %v5047_v15  ;;  %v5492_v45 = vld [vmem:[#allocation5 + $0x660] sm:$0xf0] }
  0xa7   :  { %v6992_v47 = vld [vmem:[#allocation5 + $0x4] sm:$0xf]  ;;  %v5495_v54 = vor.u32 %v7192_v44, %v5492_v45 }
  0xa8   :  { %3333 = vmatpush.bf16.msra.mxu2 %v5303_v16  ;;  %3308 = vmatpush.bf16.msra.mxu0 %v4759_v26  ;;  %v4692_v48 = vld [vmem:[#allocation5 + $0x20] sm:$0xf0] }
  0xa9   :  { %v7056_v51 = vld [vmem:[#allocation5 + $0x204] sm:$0xf]  ;;  %v4695_v61 = vor.u32 %v6992_v47, %v4692_v48 }
  0xaa   :  { %3346 = vmatpush.bf16.msra.mxu3 %v5559_v20  ;;  %3321 = vmatpush.bf16.msra.mxu1 %v5015_v27  ;;  %v4948_v52 = vld [vmem:[#allocation5 + $0x220] sm:$0xf0] }
  0xab   :  { %v7120_v53 = vld [vmem:[#allocation5 + $0x404] sm:$0xf]  ;;  %v4951_v1 = vor.u32 %v7056_v51, %v4948_v52 }
  0xac   :  { %3334 = vmatpush.bf16.msra.mxu2 %v5271_v28  ;;  %v5204_v55 = vld [vmem:[#allocation5 + $0x420] sm:$0xf0]  ;;  %3309 = vmatpush.bf16.msra.mxu0 %v4727_v46 }
  0xad   :  { %v7184_v56 = vld [vmem:[#allocation5 + $0x604] sm:$0xf]  ;;  %v5207_v2 = vor.u32 %v7120_v53, %v5204_v55 }
  0xae   :  { %3347 = vmatpush.bf16.msra.mxu3 %v5527_v35  ;;  %v5460_v57 = vld [vmem:[#allocation5 + $0x620] sm:$0xf0]  ;;  %3322 = vmatpush.bf16.msra.mxu1 %v4983_v49 }
  0xaf   :  { %v7304_v58 = vld [vmem:[#allocation5 + $0x9c4] sm:$0xf]  ;;  %v5463_v5 = vor.u32 %v7184_v56, %v5460_v57 }
  0xb0   :  { %v5940_v59 = vld [vmem:[#allocation5 + $0x9e0] sm:$0xf0]  ;;  %3335 = vmatpush.bf16.msra.mxu2 %v5239_v50  ;;  %3310 = vmatpush.bf16.msra.mxu0 %v4695_v61 }
  0xb1   :  { %v7368_v60 = vld [vmem:[#allocation5 + $0xbc4] sm:$0xf]  ;;  %v5943_v6 = vor.u32 %v7304_v58, %v5940_v59 }
  0xb2   :  { %v6196_v62 = vld [vmem:[#allocation5 + $0xbe0] sm:$0xf0]  ;;  %3348 = vmatpush.bf16.msra.mxu3 %v5495_v54  ;;  %3323 = vmatpush.bf16.msra.mxu1 %v4951_v1 }
  0xb3   :  { %v7432_v63 = vld [vmem:[#allocation5 + $0xdc4] sm:$0xf]  ;;  %v6199_v7 = vor.u32 %v7368_v60, %v6196_v62  ;;  %3311 = vmatmul.bf16.vlgmr.msra.gmra.mxu0 %v7758_v34 }
  0xb4   :  { %v6452_v0 = vld [vmem:[#allocation5 + $0xde0] sm:$0xf0]  ;;  %3336 = vmatpush.bf16.msra.mxu2 %v5207_v2  ;;  %3355 = vmatpush.bf16.msrb.mxu0 %v5943_v6 }
  0xb5   :  { %v7496_v3 = vld [vmem:[#allocation5 + $0xfc4] sm:$0xf]  ;;  %v6455_v8 = vor.u32 %v7432_v63, %v6452_v0  ;;  %3324 = vmatmul.bf16.vlgmr.msra.gmra.mxu1 %v7762_v42 }
  0xb6   :  { %v6708_v4 = vld [vmem:[#allocation5 + $0xfe0] sm:$0xf0]  ;;  %3349 = vmatpush.bf16.msra.mxu3 %v5463_v5  ;;  %3368 = vmatpush.bf16.msrb.mxu1 %v6199_v7 }
  0xb7   :  { %v7296_v9 = vld [vmem:[#allocation5 + $0x984] sm:$0xf]  ;;  %v6711_v12 = vor.u32 %v7496_v3, %v6708_v4  ;;  %3337 = vmatmul.bf16.vlgmr.msra.gmra.mxu2 %v7756_v33 }
  0xb8   :  { %v5908_v10 = vld [vmem:[#allocation5 + $0x9a0] sm:$0xf0]  ;;  %3381 = vmatpush.bf16.msrb.mxu2 %v6455_v8 }
  0xb9   :  { %v7360_v11 = vld [vmem:[#allocation5 + $0xb84] sm:$0xf]  ;;  %v5911_v18 = vor.u32 %v7296_v9, %v5908_v10  ;;  %3350 = vmatmul.bf16.vlgmr.msra.gmra.mxu3 %v7760_v41 }
  0xba   :  { %v6164_v13 = vld [vmem:[#allocation5 + $0xba0] sm:$0xf0]  ;;  %3394 = vmatpush.bf16.msrb.mxu3 %v6711_v12 }
  0xbb   :  { %v7424_v14 = vld [vmem:[#allocation5 + $0xd84] sm:$0xf]  ;;  %v6167_v19 = vor.u32 %v7360_v11, %v6164_v13  ;;  %3356 = vmatpush.bf16.msrb.mxu0 %v5911_v18 }
  0xbc   :  { %v6420_v15 = vld [vmem:[#allocation5 + $0xda0] sm:$0xf0] }
  0xbd   :  { %v7488_v16 = vld [vmem:[#allocation5 + $0xf84] sm:$0xf]  ;;  %v6423_v20 = vor.u32 %v7424_v14, %v6420_v15  ;;  %3369 = vmatpush.bf16.msrb.mxu1 %v6167_v19 }
  0xbe   :  { %v6676_v17 = vld [vmem:[#allocation5 + $0xfa0] sm:$0xf0] }
  0xbf   :  { %v7288_v21 = vld [vmem:[#allocation5 + $0x944] sm:$0xf]  ;;  %v6679_v24 = vor.u32 %v7488_v16, %v6676_v17  ;;  %3382 = vmatpush.bf16.msrb.mxu2 %v6423_v20 }
  0xc0   :  { %v5876_v22 = vld [vmem:[#allocation5 + $0x960] sm:$0xf0] }
  0xc1   :  { %v7352_v23 = vld [vmem:[#allocation5 + $0xb44] sm:$0xf]  ;;  %v5879_v30 = vor.u32 %v7288_v21, %v5876_v22  ;;  %3395 = vmatpush.bf16.msrb.mxu3 %v6679_v24 }
  0xc2   :  { %v6132_v25 = vld [vmem:[#allocation5 + $0xb60] sm:$0xf0] }
  0xc3   :  { %v7416_v26 = vld [vmem:[#allocation5 + $0xd44] sm:$0xf]  ;;  %v6135_v31 = vor.u32 %v7352_v23, %v6132_v25  ;;  %3357 = vmatpush.bf16.msrb.mxu0 %v5879_v30 }
  0xc4   :  { %v6388_v27 = vld [vmem:[#allocation5 + $0xd60] sm:$0xf0] }
  0xc5   :  { %v7480_v28 = vld [vmem:[#allocation5 + $0xf44] sm:$0xf]  ;;  %v6391_v35 = vor.u32 %v7416_v26, %v6388_v27  ;;  %3370 = vmatpush.bf16.msrb.mxu1 %v6135_v31 }
  0xc6   :  { %v6644_v29 = vld [vmem:[#allocation5 + $0xf60] sm:$0xf0] }
  0xc7   :  { %v7280_v36 = vld [vmem:[#allocation5 + $0x904] sm:$0xf]  ;;  %v6647_v44 = vor.u32 %v7480_v28, %v6644_v29  ;;  %3383 = vmatpush.bf16.msrb.mxu2 %v6391_v35 }
  0xc8   :  { %v5844_v39 = vld [vmem:[#allocation5 + $0x920] sm:$0xf0] }
  0xc9   :  { %v7344_v43 = vld [vmem:[#allocation5 + $0xb04] sm:$0xf]  ;;  %v5847_v50 = vor.u32 %v7280_v36, %v5844_v39  ;;  %3396 = vmatpush.bf16.msrb.mxu3 %v6647_v44  ;;  %v4922_v39 = vld [vmem:[#allocation5 + $0x1c8] sm:$0xf] }
  0xca   :  { %v6100_v45 = vld [vmem:[#allocation5 + $0xb20] sm:$0xf0]  ;;  %v5178_v44 = vld [vmem:[#allocation5 + $0x3c8] sm:$0xf] }
  0xcb   :  { %v7408_v46 = vld [vmem:[#allocation5 + $0xd04] sm:$0xf]  ;;  %v6103_v51 = vor.u32 %v7344_v43, %v6100_v45  ;;  %3358 = vmatpush.bf16.msrb.mxu0 %v5847_v50  ;;  %v7053_v43 = vld [vmem:[#allocation5 + $0x1e4] sm:$0xf0] }
  0xcc   :  { %v6356_v47 = vld [vmem:[#allocation5 + $0xd20] sm:$0xf0] }
  0xcd   :  { %v7472_v48 = vld [vmem:[#allocation5 + $0xf04] sm:$0xf]  ;;  %v6359_v52 = vor.u32 %v7408_v46, %v6356_v47  ;;  %3371 = vmatpush.bf16.msrb.mxu1 %v6103_v51  ;;  %v7117_v46 = vld [vmem:[#allocation5 + $0x3e4] sm:$0xf0] }
  0xce   :  { %v6612_v49 = vld [vmem:[#allocation5 + $0xf20] sm:$0xf0]  ;;  %v5434_v47 = vld [vmem:[#allocation5 + $0x5c8] sm:$0xf] }
  0xcf   :  { %v7272_v53 = vld [vmem:[#allocation5 + $0x8c4] sm:$0xf]  ;;  %v6615_v56 = vor.u32 %v7472_v48, %v6612_v49  ;;  %3384 = vmatpush.bf16.msrb.mxu2 %v6359_v52  ;;  %v7181_v48 = vld [vmem:[#allocation5 + $0x5e4] sm:$0xf0] }
  0xd0   :  { %v5812_v54 = vld [vmem:[#allocation5 + $0x8e0] sm:$0xf0]  ;;  %v5690_v51 = vld [vmem:[#allocation5 + $0x7c8] sm:$0xf] }
  0xd1   :  { %v7336_v55 = vld [vmem:[#allocation5 + $0xac4] sm:$0xf]  ;;  %v5815_v62 = vor.u32 %v7272_v53, %v5812_v54  ;;  %3397 = vmatpush.bf16.msrb.mxu3 %v6615_v56  ;;  %v7245_v52 = vld [vmem:[#allocation5 + $0x7e4] sm:$0xf0]  ;;  %v4923_v54 = vor.u32 %v7053_v43, %v4922_v39  ;;  %v5435_v56 = vor.u32 %v7181_v48, %v5434_v47 }
  0xd2   :  { %v6068_v57 = vld [vmem:[#allocation5 + $0xae0] sm:$0xf0]  ;;  %v5306_v39 = vld [vmem:[#allocation5 + $0x4c8] sm:$0xf] }
  0xd3   :  { %v7400_v58 = vld [vmem:[#allocation5 + $0xcc4] sm:$0xf]  ;;  %v6071_v63 = vor.u32 %v7336_v55, %v6068_v57  ;;  %3359 = vmatpush.bf16.msrb.mxu0 %v5815_v62  ;;  %v5179_v55 = vor.u32 %v7117_v46, %v5178_v44  ;;  %v4890_v57 = vld [vmem:[#allocation5 + $0x188] sm:$0xf] }
  0xd4   :  { %v6324_v59 = vld [vmem:[#allocation5 + $0xce0] sm:$0xf0]  ;;  %v5402_v62 = vld [vmem:[#allocation5 + $0x588] sm:$0xf] }
  0xd5   :  { %v7464_v60 = vld [vmem:[#allocation5 + $0xec4] sm:$0xf]  ;;  %v6327_v0 = vor.u32 %v7400_v58, %v6324_v59  ;;  %3372 = vmatpush.bf16.msrb.mxu1 %v6071_v63  ;;  %v7045_v58 = vld [vmem:[#allocation5 + $0x1a4] sm:$0xf0] }
  0xd6   :  { %v6580_v61 = vld [vmem:[#allocation5 + $0xee0] sm:$0xf0]  ;;  %v5146_v59 = vld [vmem:[#allocation5 + $0x388] sm:$0xf] }
  0xd7   :  { %v7264_v1 = vld [vmem:[#allocation5 + $0x884] sm:$0xf]  ;;  %v6583_v4 = vor.u32 %v7464_v60, %v6580_v61  ;;  %3385 = vmatpush.bf16.msrb.mxu2 %v6327_v0  ;;  %v5691_v60 = vor.u32 %v7245_v52, %v5690_v51  ;;  %v7109_v61 = vld [vmem:[#allocation5 + $0x3a4] sm:$0xf0] }
  0xd8   :  { %v5780_v2 = vld [vmem:[#allocation5 + $0x8a0] sm:$0xf0]  ;;  %v7173_v63 = vld [vmem:[#allocation5 + $0x5a4] sm:$0xf0] }
  0xd9   :  { %v7328_v3 = vld [vmem:[#allocation5 + $0xa84] sm:$0xf]  ;;  %v5783_v10 = vor.u32 %v7264_v1, %v5780_v2  ;;  %3398 = vmatpush.bf16.msrb.mxu3 %v6583_v4  ;;  %v5658_v0 = vld [vmem:[#allocation5 + $0x788] sm:$0xf]  ;;  %v4891_v2 = vor.u32 %v7045_v58, %v4890_v57  ;;  %v5403_v4 = vor.u32 %v7173_v63, %v5402_v62 }
  0xda   :  { %v6036_v5 = vld [vmem:[#allocation5 + $0xaa0] sm:$0xf0]  ;;  %v7237_v1 = vld [vmem:[#allocation5 + $0x7a4] sm:$0xf0] }
  0xdb   :  { %v7392_v6 = vld [vmem:[#allocation5 + $0xc84] sm:$0xf]  ;;  %v6039_v11 = vor.u32 %v7328_v3, %v6036_v5  ;;  %3360 = vmatpush.bf16.msrb.mxu0 %v5783_v10  ;;  %v5147_v3 = vor.u32 %v7109_v61, %v5146_v59  ;;  %v4858_v5 = vld [vmem:[#allocation5 + $0x148] sm:$0xf] }
  0xdc   :  { %v6292_v7 = vld [vmem:[#allocation5 + $0xca0] sm:$0xf0]  ;;  %v5370_v10 = vld [vmem:[#allocation5 + $0x548] sm:$0xf] }
  0xdd   :  { %v7456_v8 = vld [vmem:[#allocation5 + $0xe84] sm:$0xf]  ;;  %v6295_v12 = vor.u32 %v7392_v6, %v6292_v7  ;;  %3373 = vmatpush.bf16.msrb.mxu1 %v6039_v11  ;;  %v7037_v6 = vld [vmem:[#allocation5 + $0x164] sm:$0xf0] }
  0xde   :  { %v6548_v9 = vld [vmem:[#allocation5 + $0xea0] sm:$0xf0]  ;;  %v5114_v7 = vld [vmem:[#allocation5 + $0x348] sm:$0xf] }
  0xdf   :  { %v7256_v13 = vld [vmem:[#allocation5 + $0x844] sm:$0xf]  ;;  %v6551_v16 = vor.u32 %v7456_v8, %v6548_v9  ;;  %3386 = vmatpush.bf16.msrb.mxu2 %v6295_v12  ;;  %v5659_v8 = vor.u32 %v7237_v1, %v5658_v0  ;;  %v7101_v9 = vld [vmem:[#allocation5 + $0x364] sm:$0xf0] }
  0xe0   :  { %v5748_v14 = vld [vmem:[#allocation5 + $0x860] sm:$0xf0]  ;;  %v7165_v11 = vld [vmem:[#allocation5 + $0x564] sm:$0xf0] }
  0xe1   :  { %v7320_v15 = vld [vmem:[#allocation5 + $0xa44] sm:$0xf]  ;;  %v5751_v22 = vor.u32 %v7256_v13, %v5748_v14  ;;  %3399 = vmatpush.bf16.msrb.mxu3 %v6551_v16  ;;  %v5626_v12 = vld [vmem:[#allocation5 + $0x748] sm:$0xf]  ;;  %v4859_v14 = vor.u32 %v7037_v6, %v4858_v5  ;;  %v5371_v16 = vor.u32 %v7165_v11, %v5370_v10 }
  0xe2   :  { %v6004_v17 = vld [vmem:[#allocation5 + $0xa60] sm:$0xf0]  ;;  %v7229_v13 = vld [vmem:[#allocation5 + $0x764] sm:$0xf0] }
  0xe3   :  { %v7384_v18 = vld [vmem:[#allocation5 + $0xc44] sm:$0xf]  ;;  %v6007_v25 = vor.u32 %v7320_v15, %v6004_v17  ;;  %3361 = vmatpush.bf16.msrb.mxu0 %v5751_v22  ;;  %v5115_v15 = vor.u32 %v7101_v9, %v5114_v7  ;;  %v4826_v17 = vld [vmem:[#allocation5 + $0x108] sm:$0xf] }
  0xe4   :  { %v6260_v19 = vld [vmem:[#allocation5 + $0xc60] sm:$0xf0]  ;;  %v5338_v22 = vld [vmem:[#allocation5 + $0x508] sm:$0xf] }
  0xe5   :  { %v7448_v20 = vld [vmem:[#allocation5 + $0xe44] sm:$0xf]  ;;  %v6263_v26 = vor.u32 %v7384_v18, %v6260_v19  ;;  %3374 = vmatpush.bf16.msrb.mxu1 %v6007_v25  ;;  %v7029_v18 = vld [vmem:[#allocation5 + $0x124] sm:$0xf0] }
  0xe6   :  { %v6516_v21 = vld [vmem:[#allocation5 + $0xe60] sm:$0xf0]  ;;  %v5082_v19 = vld [vmem:[#allocation5 + $0x308] sm:$0xf] }
  0xe7   :  { %v7248_v23 = vld [vmem:[#allocation5 + $0x804] sm:$0xf]  ;;  %v6519_v30 = vor.u32 %v7448_v20, %v6516_v21  ;;  %3387 = vmatpush.bf16.msrb.mxu2 %v6263_v26  ;;  %v5627_v20 = vor.u32 %v7229_v13, %v5626_v12  ;;  %v7093_v21 = vld [vmem:[#allocation5 + $0x324] sm:$0xf0]  ;;  %v4827_v26 = vor.u32 %v7029_v18, %v4826_v17 }
  0xe8   :  { %v5716_v24 = vld [vmem:[#allocation5 + $0x820] sm:$0xf0]  ;;  %v7221_v25 = vld [vmem:[#allocation5 + $0x724] sm:$0xf0] }
  0xe9   :  { %v7312_v27 = vld [vmem:[#allocation5 + $0xa04] sm:$0xf]  ;;  %v5719_v45 = vor.u32 %v7248_v23, %v5716_v24  ;;  %3400 = vmatpush.bf16.msrb.mxu3 %v6519_v30  ;;  %v7157_v23 = vld [vmem:[#allocation5 + $0x524] sm:$0xf0] }
  0xea   :  { %v5972_v28 = vld [vmem:[#allocation5 + $0xa20] sm:$0xf0]  ;;  %v5594_v24 = vld [vmem:[#allocation5 + $0x708] sm:$0xf] }
  0xeb   :  { %v7376_v29 = vld [vmem:[#allocation5 + $0xc04] sm:$0xf]  ;;  %v5975_v49 = vor.u32 %v7312_v27, %v5972_v28  ;;  %3362 = vmatpush.bf16.msrb.mxu0 %v5719_v45  ;;  %v5083_v27 = vor.u32 %v7093_v21, %v5082_v19  ;;  %v5339_v28 = vor.u32 %v7157_v23, %v5338_v22  ;;  %v7021_v30 = vld [vmem:[#allocation5 + $0xe4] sm:$0xf0] }
  0xec   :  { %v6228_v31 = vld [vmem:[#allocation5 + $0xc20] sm:$0xf0]  ;;  %v7149_v43 = vld [vmem:[#allocation5 + $0x4e4] sm:$0xf0] }
  0xed   :  { %v7440_v35 = vld [vmem:[#allocation5 + $0xe04] sm:$0xf]  ;;  %v6231_v50 = vor.u32 %v7376_v29, %v6228_v31  ;;  %3375 = vmatpush.bf16.msrb.mxu1 %v5975_v49  ;;  %v4794_v29 = vld [vmem:[#allocation5 + $0xc8] sm:$0xf]  ;;  %v5307_v48 = vor.u32 %v7149_v43, %v5306_v39 }
  0xee   :  { %v6484_v36 = vld [vmem:[#allocation5 + $0xe20] sm:$0xf0]  ;;  %3363 = vmatmul.bf16.vlgmr.msrb.gmra.mxu0 %v7770_v37  ;;  %v5050_v31 = vld [vmem:[#allocation5 + $0x2c8] sm:$0xf]  ;;  %v4795_v46 = vor.u32 %v7021_v30, %v4794_v29 }
  0xef   :  { %v6487_v53 = vor.u32 %v7440_v35, %v6484_v36  ;;  %3388 = vmatpush.bf16.msrb.mxu2 %v6231_v50  ;;  %3407 = vmatpush.bf16.msra.mxu0 %v4923_v54  ;;  %v5595_v35 = vor.u32 %v7221_v25, %v5594_v24  ;;  %v7085_v36 = vld [vmem:[#allocation5 + $0x2e4] sm:$0xf0] }
  0xf0   :  { %3376 = vmatmul.bf16.vlgmr.msrb.gmra.mxu1 %v7774_v40  ;;  %v5562_v44 = vld [vmem:[#allocation5 + $0x6c8] sm:$0xf]  ;;  %v5051_v47 = vor.u32 %v7085_v36, %v5050_v31 }
  0xf1   :  { %3401 = vmatpush.bf16.msrb.mxu3 %v6487_v53  ;;  %3420 = vmatpush.bf16.msra.mxu1 %v5179_v55  ;;  %v7213_v45 = vld [vmem:[#allocation5 + $0x6e4] sm:$0xf0] }
  0xf2   :  { %3389 = vmatmul.bf16.vlgmr.msrb.gmra.mxu2 %v7768_v32  ;;  %v4762_v49 = vld [vmem:[#allocation5 + $0x88] sm:$0xf]  ;;  %v5563_v52 = vor.u32 %v7213_v45, %v5562_v44 }
  0xf3   :  { %3433 = vmatpush.bf16.msra.mxu2 %v5435_v56  ;;  %3408 = vmatpush.bf16.msra.mxu0 %v4891_v2  ;;  %v7013_v50 = vld [vmem:[#allocation5 + $0xa4] sm:$0xf0] }
  0xf4   :  { %3402 = vmatmul.bf16.vlgmr.msrb.gmra.mxu3 %v7772_v38  ;;  %v5018_v51 = vld [vmem:[#allocation5 + $0x288] sm:$0xf]  ;;  %v4763_v58 = vor.u32 %v7013_v50, %v4762_v49 }
  0xf5   :  { %3446 = vmatpush.bf16.msra.mxu3 %v5691_v60  ;;  %3421 = vmatpush.bf16.msra.mxu1 %v5147_v3  ;;  %v7077_v53 = vld [vmem:[#allocation5 + $0x2a4] sm:$0xf0] }
  0xf6   :  { %v5274_v54 = vld [vmem:[#allocation5 + $0x488] sm:$0xf]  ;;  %v5019_v59 = vor.u32 %v7077_v53, %v5018_v51 }
  0xf7   :  { %3434 = vmatpush.bf16.msra.mxu2 %v5403_v4  ;;  %3409 = vmatpush.bf16.msra.mxu0 %v4859_v14  ;;  %v7141_v55 = vld [vmem:[#allocation5 + $0x4a4] sm:$0xf0] }
  0xf8   :  { %v5530_v56 = vld [vmem:[#allocation5 + $0x688] sm:$0xf]  ;;  %v5275_v60 = vor.u32 %v7141_v55, %v5274_v54 }
  0xf9   :  { %3447 = vmatpush.bf16.msra.mxu3 %v5659_v8  ;;  %3422 = vmatpush.bf16.msra.mxu1 %v5115_v15  ;;  %v7205_v57 = vld [vmem:[#allocation5 + $0x6a4] sm:$0xf0] }
  0xfa   :  { %v4730_v61 = vld [vmem:[#allocation5 + $0x48] sm:$0xf]  ;;  %v5531_v0 = vor.u32 %v7205_v57, %v5530_v56 }
  0xfb   :  { %3435 = vmatpush.bf16.msra.mxu2 %v5371_v16  ;;  %3410 = vmatpush.bf16.msra.mxu0 %v4827_v26  ;;  %v7005_v62 = vld [vmem:[#allocation5 + $0x64] sm:$0xf0] }
  0xfc   :  { %v4986_v63 = vld [vmem:[#allocation5 + $0x248] sm:$0xf]  ;;  %v4731_v6 = vor.u32 %v7005_v62, %v4730_v61 }
  0xfd   :  { %3448 = vmatpush.bf16.msra.mxu3 %v5627_v20  ;;  %3423 = vmatpush.bf16.msra.mxu1 %v5083_v27  ;;  %v7069_v1 = vld [vmem:[#allocation5 + $0x264] sm:$0xf0] }
  0xfe   :  { %v5242_v2 = vld [vmem:[#allocation5 + $0x448] sm:$0xf]  ;;  %v4987_v9 = vor.u32 %v7069_v1, %v4986_v63 }
  0xff   :  { %3436 = vmatpush.bf16.msra.mxu2 %v5339_v28  ;;  %3411 = vmatpush.bf16.msra.mxu0 %v4795_v46  ;;  %v7133_v3 = vld [vmem:[#allocation5 + $0x464] sm:$0xf0] }
 0x100   :  { %v5498_v4 = vld [vmem:[#allocation5 + $0x648] sm:$0xf]  ;;  %v5243_v10 = vor.u32 %v7133_v3, %v5242_v2 }
 0x101   :  { %3449 = vmatpush.bf16.msra.mxu3 %v5595_v35  ;;  %3424 = vmatpush.bf16.msra.mxu1 %v5051_v47  ;;  %v7197_v5 = vld [vmem:[#allocation5 + $0x664] sm:$0xf0] }
 0x102   :  { %v4698_v7 = vld [vmem:[#allocation5 + $0x8] sm:$0xf]  ;;  %v5499_v14 = vor.u32 %v7197_v5, %v5498_v4 }
 0x103   :  { %3437 = vmatpush.bf16.msra.mxu2 %v5307_v48  ;;  %3412 = vmatpush.bf16.msra.mxu0 %v4763_v58  ;;  %v6997_v8 = vld [vmem:[#allocation5 + $0x24] sm:$0xf0] }
 0x104   :  { %v4954_v11 = vld [vmem:[#allocation5 + $0x208] sm:$0xf]  ;;  %v4699_v21 = vor.u32 %v6997_v8, %v4698_v7 }
 0x105   :  { %3450 = vmatpush.bf16.msra.mxu3 %v5563_v52  ;;  %3425 = vmatpush.bf16.msra.mxu1 %v5019_v59  ;;  %v7061_v12 = vld [vmem:[#allocation5 + $0x224] sm:$0xf0] }
 0x106   :  { %v5210_v13 = vld [vmem:[#allocation5 + $0x408] sm:$0xf]  ;;  %v4955_v25 = vor.u32 %v7061_v12, %v4954_v11 }
 0x107   :  { %3438 = vmatpush.bf16.msra.mxu2 %v5275_v60  ;;  %v7125_v15 = vld [vmem:[#allocation5 + $0x424] sm:$0xf0]  ;;  %3413 = vmatpush.bf16.msra.mxu0 %v4731_v6 }
 0x108   :  { %v5466_v16 = vld [vmem:[#allocation5 + $0x608] sm:$0xf]  ;;  %v5211_v26 = vor.u32 %v7125_v15, %v5210_v13 }
 0x109   :  { %3451 = vmatpush.bf16.msra.mxu3 %v5531_v0  ;;  %v7189_v17 = vld [vmem:[#allocation5 + $0x624] sm:$0xf0]  ;;  %3426 = vmatpush.bf16.msra.mxu1 %v4987_v9 }
 0x10a   :  { %v5946_v18 = vld [vmem:[#allocation5 + $0x9c8] sm:$0xf]  ;;  %v5467_v29 = vor.u32 %v7189_v17, %v5466_v16 }
 0x10b   :  { %v7309_v19 = vld [vmem:[#allocation5 + $0x9e4] sm:$0xf0]  ;;  %3439 = vmatpush.bf16.msra.mxu2 %v5243_v10  ;;  %3414 = vmatpush.bf16.msra.mxu0 %v4699_v21 }
 0x10c   :  { %v6202_v20 = vld [vmem:[#allocation5 + $0xbc8] sm:$0xf]  ;;  %v5947_v30 = vor.u32 %v7309_v19, %v5946_v18 }
 0x10d   :  { %v7373_v22 = vld [vmem:[#allocation5 + $0xbe4] sm:$0xf0]  ;;  %3452 = vmatpush.bf16.msra.mxu3 %v5499_v14  ;;  %3427 = vmatpush.bf16.msra.mxu1 %v4955_v25 }
 0x10e   :  { %v6458_v23 = vld [vmem:[#allocation5 + $0xdc8] sm:$0xf]  ;;  %v6203_v31 = vor.u32 %v7373_v22, %v6202_v20  ;;  %3415 = vmatmul.bf16.vlgmr.msra.gmra.mxu0 %v7758_v34 }
 0x10f   :  { %v7437_v24 = vld [vmem:[#allocation5 + $0xde4] sm:$0xf0]  ;;  %3440 = vmatpush.bf16.msra.mxu2 %v5211_v26  ;;  %3459 = vmatpush.bf16.msrb.mxu0 %v5947_v30 }
 0x110   :  { %v6714_v27 = vld [vmem:[#allocation5 + $0xfc8] sm:$0xf]  ;;  %v6459_v35 = vor.u32 %v7437_v24, %v6458_v23  ;;  %3428 = vmatmul.bf16.vlgmr.msra.gmra.mxu1 %v7762_v42 }
 0x111   :  { %v7501_v28 = vld [vmem:[#allocation5 + $0xfe4] sm:$0xf0]  ;;  %3453 = vmatpush.bf16.msra.mxu3 %v5467_v29  ;;  %3472 = vmatpush.bf16.msrb.mxu1 %v6203_v31 }
 0x112   :  { %v5914_v36 = vld [vmem:[#allocation5 + $0x988] sm:$0xf]  ;;  %v6715_v44 = vor.u32 %v7501_v28, %v6714_v27  ;;  %3441 = vmatmul.bf16.vlgmr.msra.gmra.mxu2 %v7756_v33 }
 0x113   :  { %v7301_v39 = vld [vmem:[#allocation5 + $0x9a4] sm:$0xf0]  ;;  %3485 = vmatpush.bf16.msrb.mxu2 %v6459_v35  ;;  %v7792_v35 = vld [vmem:[#allocation7] sm:$0xff] }
 0x114   :  { %v6170_v43 = vld [vmem:[#allocation5 + $0xb88] sm:$0xf]  ;;  %v5915_v50 = vor.u32 %v7301_v39, %v5914_v36  ;;  %3454 = vmatmul.bf16.vlgmr.msra.gmra.mxu3 %v7760_v41 }
 0x115   :  { %v7365_v45 = vld [vmem:[#allocation5 + $0xba4] sm:$0xf0]  ;;  %3498 = vmatpush.bf16.msrb.mxu3 %v6715_v44 }
 0x116   :  { %v6426_v46 = vld [vmem:[#allocation5 + $0xd88] sm:$0xf]  ;;  %v6171_v51 = vor.u32 %v7365_v45, %v6170_v43  ;;  %3460 = vmatpush.bf16.msrb.mxu0 %v5915_v50 }
 0x117   :  { %v7429_v47 = vld [vmem:[#allocation5 + $0xda4] sm:$0xf0] }
 0x118   :  { %v6682_v48 = vld [vmem:[#allocation5 + $0xf88] sm:$0xf]  ;;  %v6427_v52 = vor.u32 %v7429_v47, %v6426_v46  ;;  %3473 = vmatpush.bf16.msrb.mxu1 %v6171_v51 }
 0x119   :  { %v7493_v49 = vld [vmem:[#allocation5 + $0xfa4] sm:$0xf0] }
 0x11a   :  { %v5882_v53 = vld [vmem:[#allocation5 + $0x948] sm:$0xf]  ;;  %v6683_v56 = vor.u32 %v7493_v49, %v6682_v48  ;;  %3486 = vmatpush.bf16.msrb.mxu2 %v6427_v52  ;;  %v623_v49 = vperm.slane %v7792_v35, 0 }
 0x11b   :  { %v7293_v54 = vld [vmem:[#allocation5 + $0x964] sm:$0xf0] }
 0x11c   :  { %v6138_v55 = vld [vmem:[#allocation5 + $0xb48] sm:$0xf]  ;;  %v5883_v62 = vor.u32 %v7293_v54, %v5882_v53  ;;  %3499 = vmatpush.bf16.msrb.mxu3 %v6683_v56 }
 0x11d   :  { %v7357_v57 = vld [vmem:[#allocation5 + $0xb64] sm:$0xf0] }
 0x11e   :  { %v6394_v58 = vld [vmem:[#allocation5 + $0xd48] sm:$0xf]  ;;  %v6139_v63 = vor.u32 %v7357_v57, %v6138_v55  ;;  %3461 = vmatpush.bf16.msrb.mxu0 %v5883_v62 }
 0x11f   :  { %v7421_v59 = vld [vmem:[#allocation5 + $0xd64] sm:$0xf0] }
 0x120   :  { %v6650_v60 = vld [vmem:[#allocation5 + $0xf48] sm:$0xf]  ;;  %v6395_v0 = vor.u32 %v7421_v59, %v6394_v58  ;;  %3474 = vmatpush.bf16.msrb.mxu1 %v6139_v63  ;;  %v3208_v59 = vpop.f32.mrf.mxu0 }
 0x121   :  { %v7485_v61 = vld [vmem:[#allocation5 + $0xf64] sm:$0xf0] }
 0x122   :  { %v5850_v1 = vld [vmem:[#allocation5 + $0x908] sm:$0xf]  ;;  %v6651_v4 = vor.u32 %v7485_v61, %v6650_v60  ;;  %3487 = vmatpush.bf16.msrb.mxu2 %v6395_v0 }
 0x123   :  { %v7285_v2 = vld [vmem:[#allocation5 + $0x924] sm:$0xf0] }
 0x124   :  { %v6106_v3 = vld [vmem:[#allocation5 + $0xb08] sm:$0xf]  ;;  %v5851_v10 = vor.u32 %v7285_v2, %v5850_v1  ;;  %3500 = vmatpush.bf16.msrb.mxu3 %v6651_v4  ;;  %v3209_v1 = vadd.f32 %v3208_v59, %v623_v49  ;;  %v7033_v49 = vld [vmem:[#allocation5 + $0x14c] sm:$0xf] }
 0x125   :  { %v7349_v5 = vld [vmem:[#allocation5 + $0xb24] sm:$0xf0] }
 0x126   :  { %v6362_v6 = vld [vmem:[#allocation5 + $0xd08] sm:$0xf]  ;;  %v6107_v11 = vor.u32 %v7349_v5, %v6106_v3  ;;  %3462 = vmatpush.bf16.msrb.mxu0 %v5851_v10 }
 0x127   :  { %v7413_v7 = vld [vmem:[#allocation5 + $0xd24] sm:$0xf0] }
 0x128   :  { %v6618_v8 = vld [vmem:[#allocation5 + $0xf08] sm:$0xf]  ;;  %v6363_v12 = vor.u32 %v7413_v7, %v6362_v6  ;;  %3475 = vmatpush.bf16.msrb.mxu1 %v6107_v11  ;;  %v7049_v6 = vld [vmem:[#allocation5 + $0x1cc] sm:$0xf] }
 0x129   :  { %v7477_v9 = vld [vmem:[#allocation5 + $0xf24] sm:$0xf0]  ;;  %v4924_v7 = vld [vmem:[#allocation5 + $0x1e8] sm:$0xf0] }
 0x12a   :  { %v5818_v13 = vld [vmem:[#allocation5 + $0x8c8] sm:$0xf]  ;;  %v6619_v16 = vor.u32 %v7477_v9, %v6618_v8  ;;  %3488 = vmatpush.bf16.msrb.mxu2 %v6363_v12  ;;  %v7113_v8 = vld [vmem:[#allocation5 + $0x3cc] sm:$0xf]  ;;  %v3221_v9 = vpop.f32.mrf.mxu1 }
 0x12b   :  { %v7277_v14 = vld [vmem:[#allocation5 + $0x8e4] sm:$0xf0]  ;;  %v5180_v11 = vld [vmem:[#allocation5 + $0x3e8] sm:$0xf0] }
 0x12c   :  { %v6074_v15 = vld [vmem:[#allocation5 + $0xac8] sm:$0xf]  ;;  %v5819_v22 = vor.u32 %v7277_v14, %v5818_v13  ;;  %3501 = vmatpush.bf16.msrb.mxu3 %v6619_v16  ;;  %v7177_v12 = vld [vmem:[#allocation5 + $0x5cc] sm:$0xf]  ;;  %v3222_v14 = vadd.f32 %v3221_v9, %v3209_v1 }
 0x12d   :  { %v7341_v17 = vld [vmem:[#allocation5 + $0xae4] sm:$0xf0]  ;;  %v5436_v13 = vld [vmem:[#allocation5 + $0x5e8] sm:$0xf0] }
 0x12e   :  { %v6330_v18 = vld [vmem:[#allocation5 + $0xcc8] sm:$0xf]  ;;  %v6075_v24 = vor.u32 %v7341_v17, %v6074_v15  ;;  %3463 = vmatpush.bf16.msrb.mxu0 %v5819_v22  ;;  %v7241_v17 = vld [vmem:[#allocation5 + $0x7cc] sm:$0xf]  ;;  %v5183_v22 = vor.u32 %v7113_v8, %v5180_v11 }
 0x12f   :  { %v7405_v19 = vld [vmem:[#allocation5 + $0xce4] sm:$0xf0]  ;;  %v7089_v1 = vld [vmem:[#allocation5 + $0x30c] sm:$0xf] }
 0x130   :  { %v6586_v20 = vld [vmem:[#allocation5 + $0xec8] sm:$0xf]  ;;  %v6331_v25 = vor.u32 %v7405_v19, %v6330_v18  ;;  %3476 = vmatpush.bf16.msrb.mxu1 %v6075_v24  ;;  %v5692_v18 = vld [vmem:[#allocation5 + $0x7e8] sm:$0xf0] }
 0x131   :  { %v7469_v21 = vld [vmem:[#allocation5 + $0xee4] sm:$0xf0]  ;;  %v7041_v24 = vld [vmem:[#allocation5 + $0x18c] sm:$0xf] }
 0x132   :  { %v5786_v23 = vld [vmem:[#allocation5 + $0x888] sm:$0xf]  ;;  %v6587_v29 = vor.u32 %v7469_v21, %v6586_v20  ;;  %3489 = vmatpush.bf16.msrb.mxu2 %v6331_v25  ;;  %v4927_v20 = vor.u32 %v7049_v6, %v4924_v7  ;;  %v3234_v21 = vpop.f32.mrf.mxu2  ;;  %v4892_v25 = vld [vmem:[#allocation5 + $0x1a8] sm:$0xf0] }
 0x133   :  { %v7269_v26 = vld [vmem:[#allocation5 + $0x8a4] sm:$0xf0]  ;;  %v5340_v6 = vld [vmem:[#allocation5 + $0x528] sm:$0xf0] }
 0x134   :  { %v6042_v27 = vld [vmem:[#allocation5 + $0xa88] sm:$0xf]  ;;  %v5787_v43 = vor.u32 %v7269_v26, %v5786_v23  ;;  %3502 = vmatpush.bf16.msrb.mxu3 %v6587_v29  ;;  %v5439_v23 = vor.u32 %v7177_v12, %v5436_v13  ;;  %v7105_v26 = vld [vmem:[#allocation5 + $0x38c] sm:$0xf]  ;;  %v5695_v29 = vor.u32 %v7241_v17, %v5692_v18 }
 0x135   :  { %v7333_v28 = vld [vmem:[#allocation5 + $0xaa4] sm:$0xf0]  ;;  %v7217_v7 = vld [vmem:[#allocation5 + $0x70c] sm:$0xf] }
 0x136   :  { %v6298_v30 = vld [vmem:[#allocation5 + $0xc88] sm:$0xf]  ;;  %v6043_v45 = vor.u32 %v7333_v28, %v6042_v27  ;;  %3464 = vmatpush.bf16.msrb.mxu0 %v5787_v43  ;;  %v3235_v27 = vadd.f32 %v3234_v21, %v3222_v14  ;;  %v3247_v28 = vpop.f32.mrf.mxu3  ;;  %v7233_v43 = vld [vmem:[#allocation5 + $0x78c] sm:$0xf] }
 0x137   :  { %v7397_v31 = vld [vmem:[#allocation5 + $0xca4] sm:$0xf0]  ;;  %v5596_v8 = vld [vmem:[#allocation5 + $0x728] sm:$0xf0] }
 0x138   :  { %v6554_v36 = vld [vmem:[#allocation5 + $0xe88] sm:$0xf]  ;;  %v6299_v46 = vor.u32 %v7397_v31, %v6298_v30  ;;  %3477 = vmatpush.bf16.msrb.mxu1 %v6043_v45  ;;  %v5148_v30 = vld [vmem:[#allocation5 + $0x3a8] sm:$0xf0]  ;;  %v3248_v45 = vadd.f32 %v3247_v28, %v3235_v27  ;;  %v5599_v18 = vor.u32 %v7217_v7, %v5596_v8 }
 0x139   :  { %v7461_v39 = vld [vmem:[#allocation5 + $0xea4] sm:$0xf0]  ;;  %v7169_v31 = vld [vmem:[#allocation5 + $0x58c] sm:$0xf] }
 0x13a   :  { %v5754_v44 = vld [vmem:[#allocation5 + $0x848] sm:$0xf]  ;;  %v6555_v50 = vor.u32 %v7461_v39, %v6554_v36  ;;  %3490 = vmatpush.bf16.msrb.mxu2 %v6299_v46  ;;  %v5404_v36 = vld [vmem:[#allocation5 + $0x5a8] sm:$0xf0]  ;;  %v3210_v39 = vpop.f32.mrf.mxu0  ;;  %v4895_v46 = vor.u32 %v7041_v24, %v4892_v25 }
 0x13b   :  { %v7261_v47 = vld [vmem:[#allocation5 + $0x864] sm:$0xf0]  ;;  %v7017_v13 = vld [vmem:[#allocation5 + $0xcc] sm:$0xf] }
 0x13c   :  { %v6010_v48 = vld [vmem:[#allocation5 + $0xa48] sm:$0xf]  ;;  %v5755_v56 = vor.u32 %v7261_v47, %v5754_v44  ;;  %3503 = vmatpush.bf16.msrb.mxu3 %v6555_v50  ;;  %v5660_v44 = vld [vmem:[#allocation5 + $0x7a8] sm:$0xf0]  ;;  %v5151_v47 = vor.u32 %v7105_v26, %v5148_v30 }
 0x13d   :  { %v7325_v51 = vld [vmem:[#allocation5 + $0xa64] sm:$0xf0]  ;;  %v4860_v50 = vld [vmem:[#allocation5 + $0x168] sm:$0xf0] }
 0x13e   :  { %v6266_v52 = vld [vmem:[#allocation5 + $0xc48] sm:$0xf]  ;;  %v6011_v60 = vor.u32 %v7325_v51, %v6010_v48  ;;  %3465 = vmatpush.bf16.msrb.mxu0 %v5755_v56  ;;  %v5407_v48 = vor.u32 %v7169_v31, %v5404_v36  ;;  %v7097_v51 = vld [vmem:[#allocation5 + $0x34c] sm:$0xf]  ;;  %v4863_v59 = vor.u32 %v7033_v49, %v4860_v50 }
 0x13f   :  { %v7389_v53 = vld [vmem:[#allocation5 + $0xc64] sm:$0xf0]  ;;  %v5372_v56 = vld [vmem:[#allocation5 + $0x568] sm:$0xf0] }
 0x140   :  { %v6522_v54 = vld [vmem:[#allocation5 + $0xe48] sm:$0xf]  ;;  %v6267_v61 = vor.u32 %v7389_v53, %v6266_v52  ;;  %3478 = vmatpush.bf16.msrb.mxu1 %v6011_v60  ;;  %v3223_v52 = vpop.f32.mrf.mxu1  ;;  %v5663_v53 = vor.u32 %v7233_v43, %v5660_v44  ;;  %v3236_v60 = vpop.f32.mrf.mxu2  ;;  %v4796_v14 = vld [vmem:[#allocation5 + $0xe8] sm:$0xf0] }
 0x141   :  { %v7453_v55 = vld [vmem:[#allocation5 + $0xe64] sm:$0xf0]  ;;  %v5308_v21 = vld [vmem:[#allocation5 + $0x4e8] sm:$0xf0]  ;;  %v4799_v25 = vor.u32 %v7017_v13, %v4796_v14 }
 0x142   :  { %v5722_v57 = vld [vmem:[#allocation5 + $0x808] sm:$0xf]  ;;  %v6523_v2 = vor.u32 %v7453_v55, %v6522_v54  ;;  %3491 = vmatpush.bf16.msrb.mxu2 %v6267_v61  ;;  %v5116_v54 = vld [vmem:[#allocation5 + $0x368] sm:$0xf0] }
 0x143   :  { %v7253_v58 = vld [vmem:[#allocation5 + $0x824] sm:$0xf0]  ;;  %v7161_v55 = vld [vmem:[#allocation5 + $0x54c] sm:$0xf]  ;;  %v5119_v61 = vor.u32 %v7097_v51, %v5116_v54 }
 0x144   :  { %v5978_v62 = vld [vmem:[#allocation5 + $0xa08] sm:$0xf]  ;;  %v5723_v10 = vor.u32 %v7253_v58, %v5722_v57  ;;  %3504 = vmatpush.bf16.msrb.mxu3 %v6523_v2  ;;  %v7225_v57 = vld [vmem:[#allocation5 + $0x74c] sm:$0xf]  ;;  %v3249_v2 = vpop.f32.mrf.mxu3 }
 0x145   :  { %v7317_v63 = vld [vmem:[#allocation5 + $0xa24] sm:$0xf0]  ;;  %v5628_v58 = vld [vmem:[#allocation5 + $0x768] sm:$0xf0] }
 0x146   :  { %v6234_v0 = vld [vmem:[#allocation5 + $0xc08] sm:$0xf]  ;;  %v5979_v15 = vor.u32 %v7317_v63, %v5978_v62  ;;  %3466 = vmatpush.bf16.msrb.mxu0 %v5723_v10  ;;  %v5375_v62 = vor.u32 %v7161_v55, %v5372_v56  ;;  %v7025_v63 = vld [vmem:[#allocation5 + $0x10c] sm:$0xf]  ;;  %v3260_v10 = vpop.f32.mrf.mxu0 }
 0x147   :  { %v7381_v3 = vld [vmem:[#allocation5 + $0xc24] sm:$0xf0]  ;;  %v7009_v28 = vld [vmem:[#allocation5 + $0x8c] sm:$0xf] }
 0x148   :  { %v6490_v4 = vld [vmem:[#allocation5 + $0xe08] sm:$0xf]  ;;  %v6235_v16 = vor.u32 %v7381_v3, %v6234_v0  ;;  %3479 = vmatpush.bf16.msrb.mxu1 %v5979_v15  ;;  %v4828_v0 = vld [vmem:[#allocation5 + $0x128] sm:$0xf0]  ;;  %v5631_v3 = vor.u32 %v7225_v57, %v5628_v58  ;;  %v3273_v17 = vpop.f32.mrf.mxu1  ;;  %v3286_v31 = vpop.f32.mrf.mxu2 }
 0x149   :  { %v7445_v5 = vld [vmem:[#allocation5 + $0xe24] sm:$0xf0]  ;;  %3467 = vmatmul.bf16.vlgmr.msrb.gmra.mxu0 %v7770_v37  ;;  %v4831_v9 = vor.u32 %v7025_v63, %v4828_v0  ;;  %v7081_v15 = vld [vmem:[#allocation5 + $0x2cc] sm:$0xf] }
 0x14a   :  { %v6491_v19 = vor.u32 %v7445_v5, %v6490_v4  ;;  %3492 = vmatpush.bf16.msrb.mxu2 %v6235_v16  ;;  %3511 = vmatpush.bf16.msra.mxu0 %v4927_v20  ;;  %v5084_v4 = vld [vmem:[#allocation5 + $0x328] sm:$0xf0]  ;;  %v3261_v16 = vadd.f32 %v3260_v10, %v3248_v45 }
 0x14b   :  { %3480 = vmatmul.bf16.vlgmr.msrb.gmra.mxu1 %v7774_v40  ;;  %v7153_v5 = vld [vmem:[#allocation5 + $0x50c] sm:$0xf]  ;;  %v5087_v11 = vor.u32 %v7089_v1, %v5084_v4 }
 0x14c   :  { %3505 = vmatpush.bf16.msrb.mxu3 %v6491_v19  ;;  %3524 = vmatpush.bf16.msra.mxu1 %v5183_v22  ;;  %v5343_v12 = vor.u32 %v7153_v5, %v5340_v6  ;;  %v5052_v19 = vld [vmem:[#allocation5 + $0x2e8] sm:$0xf0]  ;;  %v3274_v24 = vadd.f32 %v3273_v17, %v3261_v16 }
 0x14d   :  { %3493 = vmatmul.bf16.vlgmr.msrb.gmra.mxu2 %v7768_v32  ;;  %v7145_v20 = vld [vmem:[#allocation5 + $0x4cc] sm:$0xf]  ;;  %v5055_v26 = vor.u32 %v7081_v15, %v5052_v19 }
 0x14e   :  { %3537 = vmatpush.bf16.msra.mxu2 %v5439_v23  ;;  %3512 = vmatpush.bf16.msra.mxu0 %v4895_v46  ;;  %v7209_v22 = vld [vmem:[#allocation5 + $0x6cc] sm:$0xf]  ;;  %v5311_v27 = vor.u32 %v7145_v20, %v5308_v21  ;;  %v3287_v45 = vadd.f32 %v3286_v31, %v3274_v24  ;;  %v3299_v46 = vpop.f32.mrf.mxu3  ;;  %v3262_v51 = vpop.f32.mrf.mxu0 }
 0x14f   :  { %3506 = vmatmul.bf16.vlgmr.msrb.gmra.mxu3 %v7772_v38  ;;  %v5564_v23 = vld [vmem:[#allocation5 + $0x6e8] sm:$0xf0] }
 0x150   :  { %3550 = vmatpush.bf16.msra.mxu3 %v5695_v29  ;;  %3525 = vmatpush.bf16.msra.mxu1 %v5151_v47  ;;  %v4764_v29 = vld [vmem:[#allocation5 + $0xa8] sm:$0xf0]  ;;  %v5567_v36 = vor.u32 %v7209_v22, %v5564_v23  ;;  %v7799_v50 = vadd.f32 %v3299_v46, %v3287_v45  ;;  %v3275_v57 = vpop.f32.mrf.mxu1  ;;  %v3288_v8 = vpop.f32.mrf.mxu2 }
 0x151   :  { %v7073_v30 = vld [vmem:[#allocation5 + $0x28c] sm:$0xf]  ;;  %v4767_v49 = vor.u32 %v7009_v28, %v4764_v29 }
 0x152   :  { %3538 = vmatpush.bf16.msra.mxu2 %v5407_v48  ;;  %3513 = vmatpush.bf16.msra.mxu0 %v4863_v59  ;;  %v5020_v39 = vld [vmem:[#allocation5 + $0x2a8] sm:$0xf0] }
 0x153   :  { %v7137_v43 = vld [vmem:[#allocation5 + $0x48c] sm:$0xf]  ;;  %v5023_v52 = vor.u32 %v7073_v30, %v5020_v39 }
 0x154   :  { %3551 = vmatpush.bf16.msra.mxu3 %v5663_v53  ;;  %3526 = vmatpush.bf16.msra.mxu1 %v5119_v61  ;;  %v5276_v44 = vld [vmem:[#allocation5 + $0x4a8] sm:$0xf0] }
 0x155   :  { %v7201_v47 = vld [vmem:[#allocation5 + $0x68c] sm:$0xf]  ;;  %v5279_v53 = vor.u32 %v7137_v43, %v5276_v44 }
 0x156   :  { %3539 = vmatpush.bf16.msra.mxu2 %v5375_v62  ;;  %3514 = vmatpush.bf16.msra.mxu0 %v4831_v9  ;;  %v5532_v48 = vld [vmem:[#allocation5 + $0x6a8] sm:$0xf0]  ;;  %v3301_v13 = vpop.f32.mrf.mxu3 }
 0x157   :  { %v7001_v54 = vld [vmem:[#allocation5 + $0x4c] sm:$0xf]  ;;  %v5535_v58 = vor.u32 %v7201_v47, %v5532_v48 }
 0x158   :  { %3552 = vmatpush.bf16.msra.mxu3 %v5631_v3  ;;  %3527 = vmatpush.bf16.msra.mxu1 %v5087_v11  ;;  %v4732_v55 = vld [vmem:[#allocation5 + $0x68] sm:$0xf0] }
 0x159   :  { %v7065_v56 = vld [vmem:[#allocation5 + $0x24c] sm:$0xf]  ;;  %v4735_v0 = vor.u32 %v7001_v54, %v4732_v55 }
 0x15a   :  { %3540 = vmatpush.bf16.msra.mxu2 %v5343_v12  ;;  %3515 = vmatpush.bf16.msra.mxu0 %v4799_v25  ;;  %v4988_v59 = vld [vmem:[#allocation5 + $0x268] sm:$0xf0] }
 0x15b   :  { %v7129_v60 = vld [vmem:[#allocation5 + $0x44c] sm:$0xf]  ;;  %v4991_v3 = vor.u32 %v7065_v56, %v4988_v59 }
 0x15c   :  { %3553 = vmatpush.bf16.msra.mxu3 %v5599_v18  ;;  %3528 = vmatpush.bf16.msra.mxu1 %v5055_v26  ;;  %v5244_v61 = vld [vmem:[#allocation5 + $0x468] sm:$0xf0] }
 0x15d   :  { %v7193_v62 = vld [vmem:[#allocation5 + $0x64c] sm:$0xf]  ;;  %v5247_v4 = vor.u32 %v7129_v60, %v5244_v61 }
 0x15e   :  { %3541 = vmatpush.bf16.msra.mxu2 %v5311_v27  ;;  %v5500_v63 = vld [vmem:[#allocation5 + $0x668] sm:$0xf0]  ;;  %3516 = vmatpush.bf16.msra.mxu0 %v4767_v49 }
 0x15f   :  { %v6993_v1 = vld [vmem:[#allocation5 + $0xc] sm:$0xf]  ;;  %v5503_v9 = vor.u32 %v7193_v62, %v5500_v63 }
 0x160   :  { %3554 = vmatpush.bf16.msra.mxu3 %v5567_v36  ;;  %v4700_v2 = vld [vmem:[#allocation5 + $0x28] sm:$0xf0]  ;;  %3529 = vmatpush.bf16.msra.mxu1 %v5023_v52 }
 0x161   :  { %v7057_v5 = vld [vmem:[#allocation5 + $0x20c] sm:$0xf]  ;;  %v4703_v17 = vor.u32 %v6993_v1, %v4700_v2  ;;  %v624_v2 = vperm.slane %v7792_v35, 1 }
 0x162   :  { %3542 = vmatpush.bf16.msra.mxu2 %v5279_v53  ;;  %v4956_v6 = vld [vmem:[#allocation5 + $0x228] sm:$0xf0]  ;;  %3517 = vmatpush.bf16.msra.mxu0 %v4735_v0 }
 0x163   :  { %v7121_v7 = vld [vmem:[#allocation5 + $0x40c] sm:$0xf]  ;;  %v4959_v21 = vor.u32 %v7057_v5, %v4956_v6 }
 0x164   :  { %3555 = vmatpush.bf16.msra.mxu3 %v5535_v58  ;;  %v5212_v10 = vld [vmem:[#allocation5 + $0x428] sm:$0xf0]  ;;  %3530 = vmatpush.bf16.msra.mxu1 %v4991_v3 }
 0x165   :  { %v7185_v11 = vld [vmem:[#allocation5 + $0x60c] sm:$0xf]  ;;  %v5215_v22 = vor.u32 %v7121_v7, %v5212_v10  ;;  %v3312_v10 = vpop.f32.mrf.mxu0 }
 0x166   :  { %v5468_v12 = vld [vmem:[#allocation5 + $0x628] sm:$0xf0]  ;;  %3543 = vmatpush.bf16.msra.mxu2 %v5247_v4  ;;  %3518 = vmatpush.bf16.msra.mxu0 %v4703_v17  ;;  %v3325_v17 = vpop.f32.mrf.mxu1 }
 0x167   :  { %v7305_v14 = vld [vmem:[#allocation5 + $0x9cc] sm:$0xf]  ;;  %v5471_v25 = vor.u32 %v7185_v11, %v5468_v12 }
 0x168   :  { %v5948_v15 = vld [vmem:[#allocation5 + $0x9e8] sm:$0xf0]  ;;  %3556 = vmatpush.bf16.msra.mxu3 %v5503_v9  ;;  %3531 = vmatpush.bf16.msra.mxu1 %v4959_v21 }
 0x169   :  { %v7369_v16 = vld [vmem:[#allocation5 + $0xbcc] sm:$0xf]  ;;  %v5951_v26 = vor.u32 %v7305_v14, %v5948_v15  ;;  %3519 = vmatmul.bf16.vlgmr.msra.gmra.mxu0 %v7758_v34 }
 0x16a   :  { %v6204_v18 = vld [vmem:[#allocation5 + $0xbe8] sm:$0xf0]  ;;  %3544 = vmatpush.bf16.msra.mxu2 %v5215_v22 }
 0x16b   :  { %v7433_v19 = vld [vmem:[#allocation5 + $0xdcc] sm:$0xf]  ;;  %v6207_v27 = vor.u32 %v7369_v16, %v6204_v18  ;;  %3563 = vmatpush.bf16.msrb.mxu0 %v5951_v26  ;;  %3532 = vmatmul.bf16.vlgmr.msra.gmra.mxu1 %v7762_v42  ;;  %v3313_v16 = vadd.f32 %v3312_v10, %v624_v2 }
 0x16c   :  { %v6460_v20 = vld [vmem:[#allocation5 + $0xde8] sm:$0xf0]  ;;  %3557 = vmatpush.bf16.msra.mxu3 %v5471_v25 }
 0x16d   :  { %v7497_v23 = vld [vmem:[#allocation5 + $0xfcc] sm:$0xf]  ;;  %v6463_v28 = vor.u32 %v7433_v19, %v6460_v20  ;;  %3576 = vmatpush.bf16.msrb.mxu1 %v6207_v27  ;;  %3545 = vmatmul.bf16.vlgmr.msra.gmra.mxu2 %v7756_v33 }
 0x16e   :  { %v6716_v24 = vld [vmem:[#allocation5 + $0xfe8] sm:$0xf0] }
 0x16f   :  { %v7297_v29 = vld [vmem:[#allocation5 + $0x98c] sm:$0xf]  ;;  %v6719_v36 = vor.u32 %v7497_v23, %v6716_v24  ;;  %3589 = vmatpush.bf16.msrb.mxu2 %v6463_v28  ;;  %3558 = vmatmul.bf16.vlgmr.msra.gmra.mxu3 %v7760_v41  ;;  %v3326_v23 = vadd.f32 %v3325_v17, %v3313_v16  ;;  %v5186_v16 = vld [vmem:[#allocation5 + $0x3d0] sm:$0xf] }
 0x170   :  { %v5916_v30 = vld [vmem:[#allocation5 + $0x9a8] sm:$0xf0] }
 0x171   :  { %v7361_v31 = vld [vmem:[#allocation5 + $0xb8c] sm:$0xf]  ;;  %v5919_v47 = vor.u32 %v7297_v29, %v5916_v30  ;;  %3602 = vmatpush.bf16.msrb.mxu3 %v6719_v36  ;;  %v3338_v30 = vpop.f32.mrf.mxu2 }
 0x172   :  { %v6172_v39 = vld [vmem:[#allocation5 + $0xba8] sm:$0xf0] }
 0x173   :  { %v7425_v43 = vld [vmem:[#allocation5 + $0xd8c] sm:$0xf]  ;;  %v6175_v48 = vor.u32 %v7361_v31, %v6172_v39  ;;  %3564 = vmatpush.bf16.msrb.mxu0 %v5919_v47 }
 0x174   :  { %v6428_v44 = vld [vmem:[#allocation5 + $0xda8] sm:$0xf0] }
 0x175   :  { %v7489_v45 = vld [vmem:[#allocation5 + $0xf8c] sm:$0xf]  ;;  %v6431_v49 = vor.u32 %v7425_v43, %v6428_v44  ;;  %3577 = vmatpush.bf16.msrb.mxu1 %v6175_v48  ;;  %v3339_v44 = vadd.f32 %v3338_v30, %v3326_v23  ;;  %v7246_v23 = vld [vmem:[#allocation5 + $0x7ec] sm:$0xf0] }
 0x176   :  { %v6684_v46 = vld [vmem:[#allocation5 + $0xfa8] sm:$0xf0]  ;;  %v5154_v30 = vld [vmem:[#allocation5 + $0x390] sm:$0xf] }
 0x177   :  { %v7289_v51 = vld [vmem:[#allocation5 + $0x94c] sm:$0xf]  ;;  %v6687_v54 = vor.u32 %v7489_v45, %v6684_v46  ;;  %3590 = vmatpush.bf16.msrb.mxu2 %v6431_v49  ;;  %v3351_v45 = vpop.f32.mrf.mxu3 }
 0x178   :  { %v5884_v52 = vld [vmem:[#allocation5 + $0x968] sm:$0xf0]  ;;  %v7806_v49 = vadd.f32 %v3351_v45, %v3339_v44  ;;  %v5666_v44 = vld [vmem:[#allocation5 + $0x790] sm:$0xf] }
 0x179   :  { %v7353_v53 = vld [vmem:[#allocation5 + $0xb4c] sm:$0xf]  ;;  %v5887_v60 = vor.u32 %v7289_v51, %v5884_v52  ;;  %3603 = vmatpush.bf16.msrb.mxu3 %v6687_v54  ;;  %v3314_v51 = vpop.f32.mrf.mxu0  ;;  %v7238_v45 = vld [vmem:[#allocation5 + $0x7ac] sm:$0xf0] }
 0x17a   :  { %v6140_v55 = vld [vmem:[#allocation5 + $0xb68] sm:$0xf0]  ;;  %v4866_v51 = vld [vmem:[#allocation5 + $0x150] sm:$0xf] }
 0x17b   :  { %v7417_v56 = vld [vmem:[#allocation5 + $0xd4c] sm:$0xf]  ;;  %v6143_v62 = vor.u32 %v7353_v53, %v6140_v55  ;;  %3565 = vmatpush.bf16.msrb.mxu0 %v5887_v60 }
 0x17c   :  { %v6396_v57 = vld [vmem:[#allocation5 + $0xd68] sm:$0xf0] }
 0x17d   :  { %v7481_v58 = vld [vmem:[#allocation5 + $0xf4c] sm:$0xf]  ;;  %v6399_v63 = vor.u32 %v7417_v56, %v6396_v57  ;;  %3578 = vmatpush.bf16.msrb.mxu1 %v6143_v62  ;;  %v3327_v57 = vpop.f32.mrf.mxu1 }
 0x17e   :  { %v6652_v59 = vld [vmem:[#allocation5 + $0xf68] sm:$0xf0]  ;;  %v7166_v57 = vld [vmem:[#allocation5 + $0x56c] sm:$0xf0] }
 0x17f   :  { %v7281_v61 = vld [vmem:[#allocation5 + $0x90c] sm:$0xf]  ;;  %v6655_v3 = vor.u32 %v7481_v58, %v6652_v59  ;;  %3591 = vmatpush.bf16.msrb.mxu2 %v6399_v63 }
 0x180   :  { %v5852_v0 = vld [vmem:[#allocation5 + $0x928] sm:$0xf0] }
 0x181   :  { %v7345_v1 = vld [vmem:[#allocation5 + $0xb0c] sm:$0xf]  ;;  %v5855_v9 = vor.u32 %v7281_v61, %v5852_v0  ;;  %3604 = vmatpush.bf16.msrb.mxu3 %v6655_v3 }
 0x182   :  { %v6108_v4 = vld [vmem:[#allocation5 + $0xb28] sm:$0xf0] }
 0x183   :  { %v7409_v5 = vld [vmem:[#allocation5 + $0xd0c] sm:$0xf]  ;;  %v6111_v11 = vor.u32 %v7345_v1, %v6108_v4  ;;  %3566 = vmatpush.bf16.msrb.mxu0 %v5855_v9 }
 0x184   :  { %v6364_v6 = vld [vmem:[#allocation5 + $0xd28] sm:$0xf0] }
 0x185   :  { %v7473_v7 = vld [vmem:[#allocation5 + $0xf0c] sm:$0xf]  ;;  %v6367_v12 = vor.u32 %v7409_v5, %v6364_v6  ;;  %3579 = vmatpush.bf16.msrb.mxu1 %v6111_v11 }
 0x186   :  { %v6620_v8 = vld [vmem:[#allocation5 + $0xf28] sm:$0xf0] }
 0x187   :  { %v7273_v13 = vld [vmem:[#allocation5 + $0x8cc] sm:$0xf]  ;;  %v6623_v35 = vor.u32 %v7473_v7, %v6620_v8  ;;  %3592 = vmatpush.bf16.msrb.mxu2 %v6367_v12  ;;  %v3340_v8 = vpop.f32.mrf.mxu2 }
 0x188   :  { %v5820_v14 = vld [vmem:[#allocation5 + $0x8e8] sm:$0xf0] }
 0x189   :  { %v7337_v15 = vld [vmem:[#allocation5 + $0xacc] sm:$0xf]  ;;  %v5823_v24 = vor.u32 %v7273_v13, %v5820_v14  ;;  %3605 = vmatpush.bf16.msrb.mxu3 %v6623_v35  ;;  %v3353_v13 = vpop.f32.mrf.mxu3  ;;  %v4930_v14 = vld [vmem:[#allocation5 + $0x1d0] sm:$0xf] }
 0x18a   :  { %v6076_v18 = vld [vmem:[#allocation5 + $0xae8] sm:$0xf0]  ;;  %v7118_v35 = vld [vmem:[#allocation5 + $0x3ec] sm:$0xf0] }
 0x18b   :  { %v7401_v19 = vld [vmem:[#allocation5 + $0xccc] sm:$0xf]  ;;  %v6079_v25 = vor.u32 %v7337_v15, %v6076_v18  ;;  %3567 = vmatpush.bf16.msrb.mxu0 %v5823_v24  ;;  %v7054_v15 = vld [vmem:[#allocation5 + $0x1ec] sm:$0xf0] }
 0x18c   :  { %v6332_v20 = vld [vmem:[#allocation5 + $0xce8] sm:$0xf0]  ;;  %v5442_v18 = vld [vmem:[#allocation5 + $0x5d0] sm:$0xf] }
 0x18d   :  { %v7465_v21 = vld [vmem:[#allocation5 + $0xecc] sm:$0xf]  ;;  %v6335_v26 = vor.u32 %v7401_v19, %v6332_v20  ;;  %3580 = vmatpush.bf16.msrb.mxu1 %v6079_v25  ;;  %v7182_v19 = vld [vmem:[#allocation5 + $0x5ec] sm:$0xf0]  ;;  %v4931_v25 = vor.u32 %v7054_v15, %v4930_v14 }
 0x18e   :  { %v6588_v22 = vld [vmem:[#allocation5 + $0xee8] sm:$0xf0]  ;;  %v7022_v13 = vld [vmem:[#allocation5 + $0xec] sm:$0xf0] }
 0x18f   :  { %v7265_v27 = vld [vmem:[#allocation5 + $0x88c] sm:$0xf]  ;;  %v6591_v31 = vor.u32 %v7465_v21, %v6588_v22  ;;  %3593 = vmatpush.bf16.msrb.mxu2 %v6335_v26  ;;  %v5698_v22 = vld [vmem:[#allocation5 + $0x7d0] sm:$0xf]  ;;  %v5187_v26 = vor.u32 %v7118_v35, %v5186_v16  ;;  %v3377_v16 = vpop.f32.mrf.mxu1 }
 0x190   :  { %v5788_v28 = vld [vmem:[#allocation5 + $0x8a8] sm:$0xf0]  ;;  %v5058_v14 = vld [vmem:[#allocation5 + $0x2d0] sm:$0xf] }
 0x191   :  { %v7329_v29 = vld [vmem:[#allocation5 + $0xa8c] sm:$0xf]  ;;  %v5791_v48 = vor.u32 %v7265_v27, %v5788_v28  ;;  %3606 = vmatpush.bf16.msrb.mxu3 %v6591_v31  ;;  %v5443_v27 = vor.u32 %v7182_v19, %v5442_v18  ;;  %v4898_v28 = vld [vmem:[#allocation5 + $0x190] sm:$0xf]  ;;  %v5699_v31 = vor.u32 %v7246_v23, %v5698_v22 }
 0x192   :  { %v6044_v36 = vld [vmem:[#allocation5 + $0xaa8] sm:$0xf0]  ;;  %v7086_v35 = vld [vmem:[#allocation5 + $0x2ec] sm:$0xf0] }
 0x193   :  { %v7393_v39 = vld [vmem:[#allocation5 + $0xc8c] sm:$0xf]  ;;  %v6047_v52 = vor.u32 %v7329_v29, %v6044_v36  ;;  %3568 = vmatpush.bf16.msrb.mxu0 %v5791_v48  ;;  %v7046_v29 = vld [vmem:[#allocation5 + $0x1ac] sm:$0xf0] }
 0x194   :  { %v6300_v43 = vld [vmem:[#allocation5 + $0xca8] sm:$0xf0]  ;;  %v7110_v36 = vld [vmem:[#allocation5 + $0x3ac] sm:$0xf0] }
 0x195   :  { %v7457_v46 = vld [vmem:[#allocation5 + $0xe8c] sm:$0xf]  ;;  %v6303_v53 = vor.u32 %v7393_v39, %v6300_v43  ;;  %3581 = vmatpush.bf16.msrb.mxu1 %v6047_v52  ;;  %v5410_v39 = vld [vmem:[#allocation5 + $0x590] sm:$0xf] }
 0x196   :  { %v6556_v47 = vld [vmem:[#allocation5 + $0xea8] sm:$0xf0]  ;;  %v7174_v43 = vld [vmem:[#allocation5 + $0x5ac] sm:$0xf0] }
 0x197   :  { %v7257_v54 = vld [vmem:[#allocation5 + $0x84c] sm:$0xf]  ;;  %v6559_v58 = vor.u32 %v7457_v46, %v6556_v47  ;;  %3594 = vmatpush.bf16.msrb.mxu2 %v6303_v53  ;;  %v4899_v46 = vor.u32 %v7046_v29, %v4898_v28  ;;  %v5155_v47 = vor.u32 %v7110_v36, %v5154_v30  ;;  %v5411_v48 = vor.u32 %v7174_v43, %v5410_v39  ;;  %v7038_v52 = vld [vmem:[#allocation5 + $0x16c] sm:$0xf0]  ;;  %v3390_v29 = vpop.f32.mrf.mxu2  ;;  %v3403_v43 = vpop.f32.mrf.mxu3 }
 0x198   :  { %v5756_v55 = vld [vmem:[#allocation5 + $0x868] sm:$0xf0]  ;;  %v5122_v53 = vld [vmem:[#allocation5 + $0x350] sm:$0xf] }
 0x199   :  { %v7321_v56 = vld [vmem:[#allocation5 + $0xa4c] sm:$0xf]  ;;  %v5759_v0 = vor.u32 %v7257_v54, %v5756_v55  ;;  %3607 = vmatpush.bf16.msrb.mxu3 %v6559_v58  ;;  %v5667_v54 = vor.u32 %v7238_v45, %v5666_v44  ;;  %v7102_v55 = vld [vmem:[#allocation5 + $0x36c] sm:$0xf0] }
 0x19a   :  { %v6012_v59 = vld [vmem:[#allocation5 + $0xa68] sm:$0xf0]  ;;  %v5634_v58 = vld [vmem:[#allocation5 + $0x750] sm:$0xf] }
 0x19b   :  { %v7385_v60 = vld [vmem:[#allocation5 + $0xc4c] sm:$0xf]  ;;  %v6015_v3 = vor.u32 %v7321_v56, %v6012_v59  ;;  %3569 = vmatpush.bf16.msrb.mxu0 %v5759_v0  ;;  %v5378_v56 = vld [vmem:[#allocation5 + $0x550] sm:$0xf] }
 0x19c   :  { %v6268_v61 = vld [vmem:[#allocation5 + $0xc68] sm:$0xf0]  ;;  %v7230_v59 = vld [vmem:[#allocation5 + $0x76c] sm:$0xf0] }
 0x19d   :  { %v7449_v62 = vld [vmem:[#allocation5 + $0xe4c] sm:$0xf]  ;;  %v6271_v4 = vor.u32 %v7385_v60, %v6268_v61  ;;  %3582 = vmatpush.bf16.msrb.mxu1 %v6015_v3  ;;  %v4867_v60 = vor.u32 %v7038_v52, %v4866_v51  ;;  %v5123_v61 = vor.u32 %v7102_v55, %v5122_v53  ;;  %v7030_v0 = vld [vmem:[#allocation5 + $0x12c] sm:$0xf0] }
 0x19e   :  { %v6524_v63 = vld [vmem:[#allocation5 + $0xe68] sm:$0xf0]  ;;  %v7094_v3 = vld [vmem:[#allocation5 + $0x32c] sm:$0xf0] }
 0x19f   :  { %v7249_v1 = vld [vmem:[#allocation5 + $0x80c] sm:$0xf]  ;;  %v6527_v9 = vor.u32 %v7449_v62, %v6524_v63  ;;  %3595 = vmatpush.bf16.msrb.mxu2 %v6271_v4  ;;  %v5379_v62 = vor.u32 %v7166_v57, %v5378_v56  ;;  %v4834_v63 = vld [vmem:[#allocation5 + $0x110] sm:$0xf]  ;;  %v3379_v56 = vpop.f32.mrf.mxu1 }
 0x1a0   :  { %v5724_v2 = vld [vmem:[#allocation5 + $0x828] sm:$0xf0]  ;;  %v5346_v4 = vld [vmem:[#allocation5 + $0x510] sm:$0xf]  ;;  %v4835_v8 = vor.u32 %v7030_v0, %v4834_v63 }
 0x1a1   :  { %v7313_v5 = vld [vmem:[#allocation5 + $0xa0c] sm:$0xf]  ;;  %v5727_v17 = vor.u32 %v7249_v1, %v5724_v2  ;;  %3608 = vmatpush.bf16.msrb.mxu3 %v6527_v9  ;;  %v5090_v1 = vld [vmem:[#allocation5 + $0x310] sm:$0xf]  ;;  %v5635_v2 = vor.u32 %v7230_v59, %v5634_v58  ;;  %v3364_v9 = vpop.f32.mrf.mxu0 }
 0x1a2   :  { %v5980_v6 = vld [vmem:[#allocation5 + $0xa28] sm:$0xf0]  ;;  %v3365_v15 = vadd.f32 %v3364_v9, %v7806_v49  ;;  %v5314_v18 = vld [vmem:[#allocation5 + $0x4d0] sm:$0xf] }
 0x1a3   :  { %v7377_v7 = vld [vmem:[#allocation5 + $0xc0c] sm:$0xf]  ;;  %v5983_v20 = vor.u32 %v7313_v5, %v5980_v6  ;;  %3570 = vmatpush.bf16.msrb.mxu0 %v5727_v17  ;;  %v7158_v5 = vld [vmem:[#allocation5 + $0x52c] sm:$0xf0] }
 0x1a4   :  { %v6236_v10 = vld [vmem:[#allocation5 + $0xc28] sm:$0xf0]  ;;  %v5602_v6 = vld [vmem:[#allocation5 + $0x710] sm:$0xf]  ;;  %v3378_v22 = vadd.f32 %v3377_v16, %v3365_v15 }
 0x1a5   :  { %v7441_v11 = vld [vmem:[#allocation5 + $0xe0c] sm:$0xf]  ;;  %v6239_v21 = vor.u32 %v7377_v7, %v6236_v10  ;;  %3583 = vmatpush.bf16.msrb.mxu1 %v5983_v20  ;;  %v7222_v7 = vld [vmem:[#allocation5 + $0x72c] sm:$0xf0]  ;;  %v5091_v10 = vor.u32 %v7094_v3, %v5090_v1 }
 0x1a6   :  { %v6492_v12 = vld [vmem:[#allocation5 + $0xe28] sm:$0xf0]  ;;  %3571 = vmatmul.bf16.vlgmr.msrb.gmra.mxu0 %v7770_v37  ;;  %v5603_v17 = vor.u32 %v7222_v7, %v5602_v6  ;;  %v7150_v19 = vld [vmem:[#allocation5 + $0x4ec] sm:$0xf0]  ;;  %v3391_v39 = vadd.f32 %v3390_v29, %v3378_v22  ;;  %v3392_v7 = vpop.f32.mrf.mxu2 }
 0x1a7   :  { %v6495_v24 = vor.u32 %v7441_v11, %v6492_v12  ;;  %3596 = vmatpush.bf16.msrb.mxu2 %v6239_v21  ;;  %3615 = vmatpush.bf16.msra.mxu0 %v4931_v25  ;;  %v5347_v11 = vor.u32 %v7158_v5, %v5346_v4  ;;  %v4802_v12 = vld [vmem:[#allocation5 + $0xd0] sm:$0xf]  ;;  %v5315_v25 = vor.u32 %v7150_v19, %v5314_v18 }
 0x1a8   :  { %3584 = vmatmul.bf16.vlgmr.msrb.gmra.mxu1 %v7774_v40  ;;  %v5570_v20 = vld [vmem:[#allocation5 + $0x6d0] sm:$0xf]  ;;  %v4803_v23 = vor.u32 %v7022_v13, %v4802_v12  ;;  %v3405_v12 = vpop.f32.mrf.mxu3 }
 0x1a9   :  { %3609 = vmatpush.bf16.msrb.mxu3 %v6495_v24  ;;  %3628 = vmatpush.bf16.msra.mxu1 %v5187_v26  ;;  %v7214_v21 = vld [vmem:[#allocation5 + $0x6ec] sm:$0xf0]  ;;  %v5059_v24 = vor.u32 %v7086_v35, %v5058_v14 }
 0x1aa   :  { %3597 = vmatmul.bf16.vlgmr.msrb.gmra.mxu2 %v7768_v32  ;;  %v4770_v26 = vld [vmem:[#allocation5 + $0x90] sm:$0xf]  ;;  %v5571_v49 = vor.u32 %v7214_v21, %v5570_v20 }
 0x1ab   :  { %3641 = vmatpush.bf16.msra.mxu2 %v5443_v27  ;;  %3616 = vmatpush.bf16.msra.mxu0 %v4899_v46  ;;  %v7014_v27 = vld [vmem:[#allocation5 + $0xac] sm:$0xf0] }
 0x1ac   :  { %3610 = vmatmul.bf16.vlgmr.msrb.gmra.mxu3 %v7772_v38  ;;  %v5026_v28 = vld [vmem:[#allocation5 + $0x290] sm:$0xf]  ;;  %v4771_v46 = vor.u32 %v7014_v27, %v4770_v26 }
 0x1ad   :  { %3654 = vmatpush.bf16.msra.mxu3 %v5699_v31  ;;  %3629 = vmatpush.bf16.msra.mxu1 %v5155_v47  ;;  %v7078_v30 = vld [vmem:[#allocation5 + $0x2ac] sm:$0xf0]  ;;  %v7813_v47 = vadd.f32 %v3403_v43, %v3391_v39 }
 0x1ae   :  { %v5282_v31 = vld [vmem:[#allocation5 + $0x490] sm:$0xf]  ;;  %v5027_v51 = vor.u32 %v7078_v30, %v5026_v28 }
 0x1af   :  { %3642 = vmatpush.bf16.msra.mxu2 %v5411_v48  ;;  %3617 = vmatpush.bf16.msra.mxu0 %v4867_v60  ;;  %v7142_v36 = vld [vmem:[#allocation5 + $0x4ac] sm:$0xf0]  ;;  %v3366_v48 = vpop.f32.mrf.mxu0 }
 0x1b0   :  { %v5538_v44 = vld [vmem:[#allocation5 + $0x690] sm:$0xf]  ;;  %v5283_v52 = vor.u32 %v7142_v36, %v5282_v31 }
 0x1b1   :  { %3655 = vmatpush.bf16.msra.mxu3 %v5667_v54  ;;  %3630 = vmatpush.bf16.msra.mxu1 %v5123_v61  ;;  %v7206_v45 = vld [vmem:[#allocation5 + $0x6ac] sm:$0xf0] }
 0x1b2   :  { %v4738_v53 = vld [vmem:[#allocation5 + $0x50] sm:$0xf]  ;;  %v5539_v57 = vor.u32 %v7206_v45, %v5538_v44 }
 0x1b3   :  { %3643 = vmatpush.bf16.msra.mxu2 %v5379_v62  ;;  %3618 = vmatpush.bf16.msra.mxu0 %v4835_v8  ;;  %v7006_v54 = vld [vmem:[#allocation5 + $0x6c] sm:$0xf0] }
 0x1b4   :  { %v4994_v55 = vld [vmem:[#allocation5 + $0x250] sm:$0xf]  ;;  %v4739_v63 = vor.u32 %v7006_v54, %v4738_v53 }
 0x1b5   :  { %3656 = vmatpush.bf16.msra.mxu3 %v5635_v2  ;;  %3631 = vmatpush.bf16.msra.mxu1 %v5091_v10  ;;  %v7070_v58 = vld [vmem:[#allocation5 + $0x26c] sm:$0xf0] }
 0x1b6   :  { %v5250_v59 = vld [vmem:[#allocation5 + $0x450] sm:$0xf]  ;;  %v4995_v2 = vor.u32 %v7070_v58, %v4994_v55 }
 0x1b7   :  { %3644 = vmatpush.bf16.msra.mxu2 %v5347_v11  ;;  %3619 = vmatpush.bf16.msra.mxu0 %v4803_v23  ;;  %v7134_v60 = vld [vmem:[#allocation5 + $0x46c] sm:$0xf0] }
 0x1b8   :  { %v5506_v61 = vld [vmem:[#allocation5 + $0x650] sm:$0xf]  ;;  %v5251_v3 = vor.u32 %v7134_v60, %v5250_v59 }
 0x1b9   :  { %3657 = vmatpush.bf16.msra.mxu3 %v5603_v17  ;;  %3632 = vmatpush.bf16.msra.mxu1 %v5059_v24  ;;  %v7198_v62 = vld [vmem:[#allocation5 + $0x66c] sm:$0xf0] }
 0x1ba   :  { %v4706_v0 = vld [vmem:[#allocation5 + $0x10] sm:$0xf]  ;;  %v5507_v8 = vor.u32 %v7198_v62, %v5506_v61 }
 0x1bb   :  { %3645 = vmatpush.bf16.msra.mxu2 %v5315_v25  ;;  %3620 = vmatpush.bf16.msra.mxu0 %v4771_v46  ;;  %v6998_v1 = vld [vmem:[#allocation5 + $0x2c] sm:$0xf0] }
 0x1bc   :  { %v4962_v4 = vld [vmem:[#allocation5 + $0x210] sm:$0xf]  ;;  %v4707_v16 = vor.u32 %v6998_v1, %v4706_v0  ;;  %v7819_v1 = vld [vmem:[#allocation7] sm:$0xff] }
 0x1bd   :  { %3658 = vmatpush.bf16.msra.mxu3 %v5571_v49  ;;  %3633 = vmatpush.bf16.msra.mxu1 %v5027_v51  ;;  %v7062_v5 = vld [vmem:[#allocation5 + $0x22c] sm:$0xf0] }
 0x1be   :  { %v5218_v6 = vld [vmem:[#allocation5 + $0x410] sm:$0xf]  ;;  %v4963_v19 = vor.u32 %v7062_v5, %v4962_v4 }
 0x1bf   :  { %3646 = vmatpush.bf16.msra.mxu2 %v5283_v52  ;;  %v7126_v9 = vld [vmem:[#allocation5 + $0x42c] sm:$0xf0]  ;;  %3621 = vmatpush.bf16.msra.mxu0 %v4739_v63 }
 0x1c0   :  { %v5474_v10 = vld [vmem:[#allocation5 + $0x610] sm:$0xf]  ;;  %v5219_v20 = vor.u32 %v7126_v9, %v5218_v6 }
 0x1c1   :  { %3659 = vmatpush.bf16.msra.mxu3 %v5539_v57  ;;  %v7190_v11 = vld [vmem:[#allocation5 + $0x62c] sm:$0xf0]  ;;  %3634 = vmatpush.bf16.msra.mxu1 %v4995_v2  ;;  %v625_v2 = vperm.slane %v7819_v1, 2 }
 0x1c2   :  { %v5954_v13 = vld [vmem:[#allocation5 + $0x9d0] sm:$0xf]  ;;  %v5475_v23 = vor.u32 %v7190_v11, %v5474_v10  ;;  %v3416_v10 = vpop.f32.mrf.mxu0 }
 0x1c3   :  { %v7310_v14 = vld [vmem:[#allocation5 + $0x9ec] sm:$0xf0]  ;;  %3647 = vmatpush.bf16.msra.mxu2 %v5251_v3  ;;  %3622 = vmatpush.bf16.msra.mxu0 %v4707_v16  ;;  %v3417_v16 = vadd.f32 %v3416_v10, %v625_v2 }
 0x1c4   :  { %v6210_v15 = vld [vmem:[#allocation5 + $0xbd0] sm:$0xf]  ;;  %v5955_v24 = vor.u32 %v7310_v14, %v5954_v13 }
 0x1c5   :  { %v7374_v17 = vld [vmem:[#allocation5 + $0xbec] sm:$0xf0]  ;;  %3660 = vmatpush.bf16.msra.mxu3 %v5507_v8  ;;  %3635 = vmatpush.bf16.msra.mxu1 %v4963_v19 }
 0x1c6   :  { %v6466_v35 = vld [vmem:[#allocation5 + $0xdd0] sm:$0xf]  ;;  %v6211_v25 = vor.u32 %v7374_v17, %v6210_v15  ;;  %3623 = vmatmul.bf16.vlgmr.msra.gmra.mxu0 %v7758_v34  ;;  %v3429_v17 = vpop.f32.mrf.mxu1 }
 0x1c7   :  { %v7438_v18 = vld [vmem:[#allocation5 + $0xdec] sm:$0xf0]  ;;  %3648 = vmatpush.bf16.msra.mxu2 %v5219_v20  ;;  %3667 = vmatpush.bf16.msrb.mxu0 %v5955_v24 }
 0x1c8   :  { %v6722_v21 = vld [vmem:[#allocation5 + $0xfd0] sm:$0xf]  ;;  %v6467_v26 = vor.u32 %v7438_v18, %v6466_v35  ;;  %3636 = vmatmul.bf16.vlgmr.msra.gmra.mxu1 %v7762_v42 }
 0x1c9   :  { %v7502_v22 = vld [vmem:[#allocation5 + $0xfec] sm:$0xf0]  ;;  %3661 = vmatpush.bf16.msra.mxu3 %v5475_v23  ;;  %3680 = vmatpush.bf16.msrb.mxu1 %v6211_v25  ;;  %v3430_v23 = vadd.f32 %v3429_v17, %v3417_v16  ;;  %v7050_v16 = vld [vmem:[#allocation5 + $0x1d4] sm:$0xf] }
 0x1ca   :  { %v5922_v27 = vld [vmem:[#allocation5 + $0x990] sm:$0xf]  ;;  %v6723_v49 = vor.u32 %v7502_v22, %v6722_v21  ;;  %3649 = vmatmul.bf16.vlgmr.msra.gmra.mxu2 %v7756_v33  ;;  %v4932_v17 = vld [vmem:[#allocation5 + $0x1f0] sm:$0xf0] }
 0x1cb   :  { %v7302_v28 = vld [vmem:[#allocation5 + $0x9ac] sm:$0xf0]  ;;  %3693 = vmatpush.bf16.msrb.mxu2 %v6467_v26 }
 0x1cc   :  { %v6178_v29 = vld [vmem:[#allocation5 + $0xb90] sm:$0xf]  ;;  %v5923_v44 = vor.u32 %v7302_v28, %v5922_v27  ;;  %3662 = vmatmul.bf16.vlgmr.msra.gmra.mxu3 %v7760_v41 }
 0x1cd   :  { %v7366_v30 = vld [vmem:[#allocation5 + $0xbac] sm:$0xf0]  ;;  %3706 = vmatpush.bf16.msrb.mxu3 %v6723_v49  ;;  %v3442_v49 = vpop.f32.mrf.mxu2 }
 0x1ce   :  { %v6434_v31 = vld [vmem:[#allocation5 + $0xd90] sm:$0xf]  ;;  %v6179_v45 = vor.u32 %v7366_v30, %v6178_v29  ;;  %3668 = vmatpush.bf16.msrb.mxu0 %v5923_v44  ;;  %v3455_v44 = vpop.f32.mrf.mxu3 }
 0x1cf   :  { %v7430_v36 = vld [vmem:[#allocation5 + $0xdac] sm:$0xf0] }
 0x1d0   :  { %v6690_v39 = vld [vmem:[#allocation5 + $0xf90] sm:$0xf]  ;;  %v6435_v46 = vor.u32 %v7430_v36, %v6434_v31  ;;  %3681 = vmatpush.bf16.msrb.mxu1 %v6179_v45 }
 0x1d1   :  { %v7494_v43 = vld [vmem:[#allocation5 + $0xfac] sm:$0xf0] }
 0x1d2   :  { %v5890_v48 = vld [vmem:[#allocation5 + $0x950] sm:$0xf]  ;;  %v6691_v53 = vor.u32 %v7494_v43, %v6690_v39  ;;  %3694 = vmatpush.bf16.msrb.mxu2 %v6435_v46  ;;  %v3443_v43 = vadd.f32 %v3442_v49, %v3430_v23  ;;  %v7042_v49 = vld [vmem:[#allocation5 + $0x194] sm:$0xf] }
 0x1d3   :  { %v7294_v51 = vld [vmem:[#allocation5 + $0x96c] sm:$0xf0] }
 0x1d4   :  { %v6146_v52 = vld [vmem:[#allocation5 + $0xb50] sm:$0xf]  ;;  %v5891_v59 = vor.u32 %v7294_v51, %v5890_v48  ;;  %3707 = vmatpush.bf16.msrb.mxu3 %v6691_v53  ;;  %v7822_v51 = vadd.f32 %v3455_v44, %v3443_v43  ;;  %v7170_v43 = vld [vmem:[#allocation5 + $0x594] sm:$0xf] }
 0x1d5   :  { %v7358_v54 = vld [vmem:[#allocation5 + $0xb6c] sm:$0xf0]  ;;  %v3444_v10 = vpop.f32.mrf.mxu2  ;;  %v5412_v44 = vld [vmem:[#allocation5 + $0x5b0] sm:$0xf0] }
 0x1d6   :  { %v6402_v55 = vld [vmem:[#allocation5 + $0xd50] sm:$0xf]  ;;  %v6147_v61 = vor.u32 %v7358_v54, %v6146_v52  ;;  %3669 = vmatpush.bf16.msrb.mxu0 %v5891_v59  ;;  %v3418_v52 = vpop.f32.mrf.mxu0  ;;  %v7218_v10 = vld [vmem:[#allocation5 + $0x714] sm:$0xf] }
 0x1d7   :  { %v7422_v56 = vld [vmem:[#allocation5 + $0xd6c] sm:$0xf0] }
 0x1d8   :  { %v6658_v57 = vld [vmem:[#allocation5 + $0xf50] sm:$0xf]  ;;  %v6403_v62 = vor.u32 %v7422_v56, %v6402_v55  ;;  %3682 = vmatpush.bf16.msrb.mxu1 %v6147_v61 }
 0x1d9   :  { %v7486_v58 = vld [vmem:[#allocation5 + $0xf6c] sm:$0xf0] }
 0x1da   :  { %v5858_v60 = vld [vmem:[#allocation5 + $0x910] sm:$0xf]  ;;  %v6659_v3 = vor.u32 %v7486_v58, %v6658_v57  ;;  %3695 = vmatpush.bf16.msrb.mxu2 %v6403_v62  ;;  %v3431_v58 = vpop.f32.mrf.mxu1 }
 0x1db   :  { %v7286_v63 = vld [vmem:[#allocation5 + $0x92c] sm:$0xf0]  ;;  %v5124_v58 = vld [vmem:[#allocation5 + $0x370] sm:$0xf0] }
 0x1dc   :  { %v6114_v0 = vld [vmem:[#allocation5 + $0xb10] sm:$0xf]  ;;  %v5859_v9 = vor.u32 %v7286_v63, %v5858_v60  ;;  %3708 = vmatpush.bf16.msrb.mxu3 %v6659_v3 }
 0x1dd   :  { %v7350_v4 = vld [vmem:[#allocation5 + $0xb2c] sm:$0xf0] }
 0x1de   :  { %v6370_v5 = vld [vmem:[#allocation5 + $0xd10] sm:$0xf]  ;;  %v6115_v11 = vor.u32 %v7350_v4, %v6114_v0  ;;  %3670 = vmatpush.bf16.msrb.mxu0 %v5859_v9 }
 0x1df   :  { %v7414_v6 = vld [vmem:[#allocation5 + $0xd2c] sm:$0xf0] }
 0x1e0   :  { %v6626_v7 = vld [vmem:[#allocation5 + $0xf10] sm:$0xf]  ;;  %v6371_v12 = vor.u32 %v7414_v6, %v6370_v5  ;;  %3683 = vmatpush.bf16.msrb.mxu1 %v6115_v11 }
 0x1e1   :  { %v7478_v8 = vld [vmem:[#allocation5 + $0xf2c] sm:$0xf0] }
 0x1e2   :  { %v5826_v13 = vld [vmem:[#allocation5 + $0x8d0] sm:$0xf]  ;;  %v6627_v35 = vor.u32 %v7478_v8, %v6626_v7  ;;  %3696 = vmatpush.bf16.msrb.mxu2 %v6371_v12 }
 0x1e3   :  { %v7278_v14 = vld [vmem:[#allocation5 + $0x8ec] sm:$0xf0] }
 0x1e4   :  { %v6082_v15 = vld [vmem:[#allocation5 + $0xad0] sm:$0xf]  ;;  %v5827_v24 = vor.u32 %v7278_v14, %v5826_v13  ;;  %3709 = vmatpush.bf16.msrb.mxu3 %v6627_v35  ;;  %v7114_v35 = vld [vmem:[#allocation5 + $0x3d4] sm:$0xf] }
 0x1e5   :  { %v7342_v18 = vld [vmem:[#allocation5 + $0xaec] sm:$0xf0] }
 0x1e6   :  { %v6338_v19 = vld [vmem:[#allocation5 + $0xcd0] sm:$0xf]  ;;  %v6083_v25 = vor.u32 %v7342_v18, %v6082_v15  ;;  %3671 = vmatpush.bf16.msrb.mxu0 %v5827_v24  ;;  %v3457_v15 = vpop.f32.mrf.mxu3  ;;  %v7242_v24 = vld [vmem:[#allocation5 + $0x7d4] sm:$0xf] }
 0x1e7   :  { %v7406_v20 = vld [vmem:[#allocation5 + $0xcec] sm:$0xf0] }
 0x1e8   :  { %v6594_v21 = vld [vmem:[#allocation5 + $0xed0] sm:$0xf]  ;;  %v6339_v26 = vor.u32 %v7406_v20, %v6338_v19  ;;  %3684 = vmatpush.bf16.msrb.mxu1 %v6083_v25  ;;  %v5188_v19 = vld [vmem:[#allocation5 + $0x3f0] sm:$0xf0] }
 0x1e9   :  { %v7470_v22 = vld [vmem:[#allocation5 + $0xeec] sm:$0xf0]  ;;  %v7178_v20 = vld [vmem:[#allocation5 + $0x5d4] sm:$0xf] }
 0x1ea   :  { %v5794_v27 = vld [vmem:[#allocation5 + $0x890] sm:$0xf]  ;;  %v6595_v30 = vor.u32 %v7470_v22, %v6594_v21  ;;  %3697 = vmatpush.bf16.msrb.mxu2 %v6339_v26  ;;  %v5444_v21 = vld [vmem:[#allocation5 + $0x5f0] sm:$0xf0] }
 0x1eb   :  { %v7270_v28 = vld [vmem:[#allocation5 + $0x8ac] sm:$0xf0]  ;;  %v5700_v25 = vld [vmem:[#allocation5 + $0x7f0] sm:$0xf0] }
 0x1ec   :  { %v6050_v29 = vld [vmem:[#allocation5 + $0xa90] sm:$0xf]  ;;  %v5795_v48 = vor.u32 %v7270_v28, %v5794_v27  ;;  %3710 = vmatpush.bf16.msrb.mxu3 %v6595_v30  ;;  %v4935_v27 = vor.u32 %v7050_v16, %v4932_v17  ;;  %v5191_v28 = vor.u32 %v7114_v35, %v5188_v19  ;;  %v4900_v30 = vld [vmem:[#allocation5 + $0x1b0] sm:$0xf0]  ;;  %v3481_v19 = vpop.f32.mrf.mxu1 }
 0x1ed   :  { %v7334_v31 = vld [vmem:[#allocation5 + $0xaac] sm:$0xf0]  ;;  %v7018_v16 = vld [vmem:[#allocation5 + $0xd4] sm:$0xf] }
 0x1ee   :  { %v6306_v36 = vld [vmem:[#allocation5 + $0xc90] sm:$0xf]  ;;  %v6051_v53 = vor.u32 %v7334_v31, %v6050_v29  ;;  %3672 = vmatpush.bf16.msrb.mxu0 %v5795_v48  ;;  %v5447_v29 = vor.u32 %v7178_v20, %v5444_v21  ;;  %v7106_v31 = vld [vmem:[#allocation5 + $0x394] sm:$0xf]  ;;  %v4903_v48 = vor.u32 %v7042_v49, %v4900_v30 }
 0x1ef   :  { %v7398_v39 = vld [vmem:[#allocation5 + $0xcac] sm:$0xf0]  ;;  %v4804_v17 = vld [vmem:[#allocation5 + $0xf0] sm:$0xf0] }
 0x1f0   :  { %v6562_v45 = vld [vmem:[#allocation5 + $0xe90] sm:$0xf]  ;;  %v6307_v54 = vor.u32 %v7398_v39, %v6306_v36  ;;  %3685 = vmatpush.bf16.msrb.mxu1 %v6051_v53  ;;  %v5703_v36 = vor.u32 %v7242_v24, %v5700_v25  ;;  %v5156_v39 = vld [vmem:[#allocation5 + $0x3b0] sm:$0xf0]  ;;  %v5415_v53 = vor.u32 %v7170_v43, %v5412_v44 }
 0x1f1   :  { %v7462_v46 = vld [vmem:[#allocation5 + $0xeac] sm:$0xf0]  ;;  %v5159_v52 = vor.u32 %v7106_v31, %v5156_v39  ;;  %v7082_v35 = vld [vmem:[#allocation5 + $0x2d4] sm:$0xf] }
 0x1f2   :  { %v5762_v55 = vld [vmem:[#allocation5 + $0x850] sm:$0xf]  ;;  %v6563_v59 = vor.u32 %v7462_v46, %v6562_v45  ;;  %3698 = vmatpush.bf16.msrb.mxu2 %v6307_v54  ;;  %v7234_v45 = vld [vmem:[#allocation5 + $0x794] sm:$0xf] }
 0x1f3   :  { %v7262_v56 = vld [vmem:[#allocation5 + $0x86c] sm:$0xf0]  ;;  %v5668_v46 = vld [vmem:[#allocation5 + $0x7b0] sm:$0xf0] }
 0x1f4   :  { %v6018_v57 = vld [vmem:[#allocation5 + $0xa50] sm:$0xf]  ;;  %v5763_v2 = vor.u32 %v7262_v56, %v5762_v55  ;;  %3711 = vmatpush.bf16.msrb.mxu3 %v6563_v59  ;;  %v7034_v54 = vld [vmem:[#allocation5 + $0x154] sm:$0xf] }
 0x1f5   :  { %v7326_v60 = vld [vmem:[#allocation5 + $0xa6c] sm:$0xf0]  ;;  %v4868_v55 = vld [vmem:[#allocation5 + $0x170] sm:$0xf0] }
 0x1f6   :  { %v6274_v61 = vld [vmem:[#allocation5 + $0xc50] sm:$0xf]  ;;  %v6019_v5 = vor.u32 %v7326_v60, %v6018_v57  ;;  %3673 = vmatpush.bf16.msrb.mxu0 %v5763_v2  ;;  %v7098_v56 = vld [vmem:[#allocation5 + $0x354] sm:$0xf]  ;;  %v5671_v57 = vor.u32 %v7234_v45, %v5668_v46  ;;  %v3507_v46 = vpop.f32.mrf.mxu3 }
 0x1f7   :  { %v7390_v62 = vld [vmem:[#allocation5 + $0xc6c] sm:$0xf0]  ;;  %v7162_v59 = vld [vmem:[#allocation5 + $0x554] sm:$0xf] }
 0x1f8   :  { %v6530_v63 = vld [vmem:[#allocation5 + $0xe50] sm:$0xf]  ;;  %v6275_v6 = vor.u32 %v7390_v62, %v6274_v61  ;;  %3686 = vmatpush.bf16.msrb.mxu1 %v6019_v5  ;;  %v5380_v60 = vld [vmem:[#allocation5 + $0x570] sm:$0xf0] }
 0x1f9   :  { %v7454_v0 = vld [vmem:[#allocation5 + $0xe6c] sm:$0xf0]  ;;  %v7226_v61 = vld [vmem:[#allocation5 + $0x754] sm:$0xf]  ;;  %v5383_v2 = vor.u32 %v7162_v59, %v5380_v60 }
 0x1fa   :  { %v5730_v3 = vld [vmem:[#allocation5 + $0x810] sm:$0xf]  ;;  %v6531_v11 = vor.u32 %v7454_v0, %v6530_v63  ;;  %3699 = vmatpush.bf16.msrb.mxu2 %v6275_v6  ;;  %v5636_v62 = vld [vmem:[#allocation5 + $0x770] sm:$0xf0]  ;;  %v4871_v63 = vor.u32 %v7034_v54, %v4868_v55  ;;  %v5127_v0 = vor.u32 %v7098_v56, %v5124_v58 }
 0x1fb   :  { %v7254_v4 = vld [vmem:[#allocation5 + $0x82c] sm:$0xf0]  ;;  %v7090_v5 = vld [vmem:[#allocation5 + $0x314] sm:$0xf]  ;;  %v5639_v6 = vor.u32 %v7226_v61, %v5636_v62  ;;  %v3483_v61 = vpop.f32.mrf.mxu1 }
 0x1fc   :  { %v5986_v7 = vld [vmem:[#allocation5 + $0xa10] sm:$0xf]  ;;  %v5731_v18 = vor.u32 %v7254_v4, %v5730_v3  ;;  %3712 = vmatpush.bf16.msrb.mxu3 %v6531_v11  ;;  %v7026_v3 = vld [vmem:[#allocation5 + $0x114] sm:$0xf] }
 0x1fd   :  { %v7318_v8 = vld [vmem:[#allocation5 + $0xa2c] sm:$0xf0]  ;;  %v4836_v4 = vld [vmem:[#allocation5 + $0x130] sm:$0xf0] }
 0x1fe   :  { %v6242_v9 = vld [vmem:[#allocation5 + $0xc10] sm:$0xf]  ;;  %v5987_v22 = vor.u32 %v7318_v8, %v5986_v7  ;;  %3674 = vmatpush.bf16.msrb.mxu0 %v5731_v18  ;;  %v5092_v7 = vld [vmem:[#allocation5 + $0x330] sm:$0xf0] }
 0x1ff   :  { %v7382_v12 = vld [vmem:[#allocation5 + $0xc2c] sm:$0xf0]  ;;  %v7154_v8 = vld [vmem:[#allocation5 + $0x514] sm:$0xf] }
 0x200   :  { %v6498_v13 = vld [vmem:[#allocation5 + $0xe10] sm:$0xf]  ;;  %v6243_v23 = vor.u32 %v7382_v12, %v6242_v9  ;;  %3687 = vmatpush.bf16.msrb.mxu1 %v5987_v22  ;;  %v5348_v9 = vld [vmem:[#allocation5 + $0x530] sm:$0xf0]  ;;  %v4839_v12 = vor.u32 %v7026_v3, %v4836_v4 }
 0x201   :  { %v7446_v14 = vld [vmem:[#allocation5 + $0xe2c] sm:$0xf0]  ;;  %3675 = vmatmul.bf16.vlgmr.msrb.gmra.mxu0 %v7770_v37  ;;  %v5604_v11 = vld [vmem:[#allocation5 + $0x730] sm:$0xf0]  ;;  %v5351_v15 = vor.u32 %v7154_v8, %v5348_v9 }
 0x202   :  { %v6499_v26 = vor.u32 %v7446_v14, %v6498_v13  ;;  %3700 = vmatpush.bf16.msrb.mxu2 %v6243_v23  ;;  %3719 = vmatpush.bf16.msra.mxu0 %v4935_v27  ;;  %v3468_v13 = vpop.f32.mrf.mxu0  ;;  %v5095_v14 = vor.u32 %v7090_v5, %v5092_v7  ;;  %v5607_v20 = vor.u32 %v7218_v10, %v5604_v11  ;;  %v5060_v21 = vld [vmem:[#allocation5 + $0x2f0] sm:$0xf0] }
 0x203   :  { %3688 = vmatmul.bf16.vlgmr.msrb.gmra.mxu1 %v7774_v40  ;;  %v3469_v18 = vadd.f32 %v3468_v13, %v7822_v51  ;;  %v7146_v22 = vld [vmem:[#allocation5 + $0x4d4] sm:$0xf]  ;;  %v4807_v27 = vor.u32 %v7018_v16, %v4804_v17 }
 0x204   :  { %3713 = vmatpush.bf16.msrb.mxu3 %v6499_v26  ;;  %3732 = vmatpush.bf16.msra.mxu1 %v5191_v28  ;;  %v5316_v23 = vld [vmem:[#allocation5 + $0x4f0] sm:$0xf0]  ;;  %v5063_v28 = vor.u32 %v7082_v35, %v5060_v21  ;;  %v3509_v35 = vpop.f32.mrf.mxu3 }
 0x205   :  { %3701 = vmatmul.bf16.vlgmr.msrb.gmra.mxu2 %v7768_v32  ;;  %v7210_v24 = vld [vmem:[#allocation5 + $0x6d4] sm:$0xf]  ;;  %v3482_v26 = vadd.f32 %v3481_v19, %v3469_v18 }
 0x206   :  { %3745 = vmatpush.bf16.msra.mxu2 %v5447_v29  ;;  %3720 = vmatpush.bf16.msra.mxu0 %v4903_v48  ;;  %v5572_v25 = vld [vmem:[#allocation5 + $0x6f0] sm:$0xf0]  ;;  %v5319_v29 = vor.u32 %v7146_v22, %v5316_v23 }
 0x207   :  { %3714 = vmatmul.bf16.vlgmr.msrb.gmra.mxu3 %v7772_v38  ;;  %v7010_v49 = vld [vmem:[#allocation5 + $0x94] sm:$0xf]  ;;  %v5575_v51 = vor.u32 %v7210_v24, %v5572_v25 }
 0x208   :  { %3758 = vmatpush.bf16.msra.mxu3 %v5703_v36  ;;  %3733 = vmatpush.bf16.msra.mxu1 %v5159_v52  ;;  %v4772_v30 = vld [vmem:[#allocation5 + $0xb0] sm:$0xf0]  ;;  %v3494_v36 = vpop.f32.mrf.mxu2 }
 0x209   :  { %v7074_v31 = vld [vmem:[#allocation5 + $0x294] sm:$0xf]  ;;  %v3495_v45 = vadd.f32 %v3494_v36, %v3482_v26 }
 0x20a   :  { %3746 = vmatpush.bf16.msra.mxu2 %v5415_v53  ;;  %3721 = vmatpush.bf16.msra.mxu0 %v4871_v63  ;;  %v5028_v39 = vld [vmem:[#allocation5 + $0x2b0] sm:$0xf0]  ;;  %v4775_v53 = vor.u32 %v7010_v49, %v4772_v30  ;;  %v3470_v55 = vpop.f32.mrf.mxu0 }
 0x20b   :  { %v7138_v43 = vld [vmem:[#allocation5 + $0x494] sm:$0xf]  ;;  %v7829_v54 = vadd.f32 %v3507_v46, %v3495_v45  ;;  %v5031_v56 = vor.u32 %v7074_v31, %v5028_v39 }
 0x20c   :  { %3759 = vmatpush.bf16.msra.mxu3 %v5671_v57  ;;  %3734 = vmatpush.bf16.msra.mxu1 %v5127_v0  ;;  %v5284_v44 = vld [vmem:[#allocation5 + $0x4b0] sm:$0xf0] }
 0x20d   :  { %v7202_v48 = vld [vmem:[#allocation5 + $0x694] sm:$0xf]  ;;  %v5287_v57 = vor.u32 %v7138_v43, %v5284_v44 }
 0x20e   :  { %3747 = vmatpush.bf16.msra.mxu2 %v5383_v2  ;;  %3722 = vmatpush.bf16.msra.mxu0 %v4839_v12  ;;  %v5540_v52 = vld [vmem:[#allocation5 + $0x6b0] sm:$0xf0] }
 0x20f   :  { %v7002_v58 = vld [vmem:[#allocation5 + $0x54] sm:$0xf]  ;;  %v5543_v62 = vor.u32 %v7202_v48, %v5540_v52 }
 0x210   :  { %3760 = vmatpush.bf16.msra.mxu3 %v5639_v6  ;;  %3735 = vmatpush.bf16.msra.mxu1 %v5095_v14  ;;  %v4740_v59 = vld [vmem:[#allocation5 + $0x70] sm:$0xf0]  ;;  %v3496_v13 = vpop.f32.mrf.mxu2 }
 0x211   :  { %v7066_v60 = vld [vmem:[#allocation5 + $0x254] sm:$0xf]  ;;  %v4743_v5 = vor.u32 %v7002_v58, %v4740_v59 }
 0x212   :  { %3748 = vmatpush.bf16.msra.mxu2 %v5351_v15  ;;  %3723 = vmatpush.bf16.msra.mxu0 %v4807_v27  ;;  %v4996_v63 = vld [vmem:[#allocation5 + $0x270] sm:$0xf0] }
 0x213   :  { %v7130_v0 = vld [vmem:[#allocation5 + $0x454] sm:$0xf]  ;;  %v4999_v8 = vor.u32 %v7066_v60, %v4996_v63 }
 0x214   :  { %3761 = vmatpush.bf16.msra.mxu3 %v5607_v20  ;;  %3736 = vmatpush.bf16.msra.mxu1 %v5063_v28  ;;  %v5252_v2 = vld [vmem:[#allocation5 + $0x470] sm:$0xf0] }
 0x215   :  { %v7194_v3 = vld [vmem:[#allocation5 + $0x654] sm:$0xf]  ;;  %v5255_v9 = vor.u32 %v7130_v0, %v5252_v2 }
 0x216   :  { %3749 = vmatpush.bf16.msra.mxu2 %v5319_v29  ;;  %v5508_v4 = vld [vmem:[#allocation5 + $0x670] sm:$0xf0]  ;;  %3724 = vmatpush.bf16.msra.mxu0 %v4775_v53 }
 0x217   :  { %v6994_v6 = vld [vmem:[#allocation5 + $0x14] sm:$0xf]  ;;  %v5511_v14 = vor.u32 %v7194_v3, %v5508_v4 }
 0x218   :  { %3762 = vmatpush.bf16.msra.mxu3 %v5575_v51  ;;  %v4708_v7 = vld [vmem:[#allocation5 + $0x30] sm:$0xf0]  ;;  %3737 = vmatpush.bf16.msra.mxu1 %v5031_v56 }
 0x219   :  { %v7058_v10 = vld [vmem:[#allocation5 + $0x214] sm:$0xf]  ;;  %v4711_v21 = vor.u32 %v6994_v6, %v4708_v7 }
 0x21a   :  { %3750 = vmatpush.bf16.msra.mxu2 %v5287_v57  ;;  %v4964_v11 = vld [vmem:[#allocation5 + $0x230] sm:$0xf0]  ;;  %3725 = vmatpush.bf16.msra.mxu0 %v4743_v5 }
 0x21b   :  { %v7122_v12 = vld [vmem:[#allocation5 + $0x414] sm:$0xf]  ;;  %v4967_v25 = vor.u32 %v7058_v10, %v4964_v11 }
 0x21c   :  { %3763 = vmatpush.bf16.msra.mxu3 %v5543_v62  ;;  %v5220_v15 = vld [vmem:[#allocation5 + $0x430] sm:$0xf0]  ;;  %3738 = vmatpush.bf16.msra.mxu1 %v4999_v8 }
 0x21d   :  { %v7186_v16 = vld [vmem:[#allocation5 + $0x614] sm:$0xf]  ;;  %v5223_v26 = vor.u32 %v7122_v12, %v5220_v15 }
 0x21e   :  { %v5476_v17 = vld [vmem:[#allocation5 + $0x630] sm:$0xf0]  ;;  %3751 = vmatpush.bf16.msra.mxu2 %v5255_v9  ;;  %3726 = vmatpush.bf16.msra.mxu0 %v4711_v21  ;;  %v626_v9 = vperm.slane %v7819_v1, 3 }
 0x21f   :  { %v7306_v18 = vld [vmem:[#allocation5 + $0x9d4] sm:$0xf]  ;;  %v5479_v29 = vor.u32 %v7186_v16, %v5476_v17  ;;  %v3520_v17 = vpop.f32.mrf.mxu0 }
 0x220   :  { %v5956_v19 = vld [vmem:[#allocation5 + $0x9f0] sm:$0xf0]  ;;  %3764 = vmatpush.bf16.msra.mxu3 %v5511_v14  ;;  %3739 = vmatpush.bf16.msra.mxu1 %v4967_v25 }
 0x221   :  { %v7370_v20 = vld [vmem:[#allocation5 + $0xbd4] sm:$0xf]  ;;  %v5959_v49 = vor.u32 %v7306_v18, %v5956_v19  ;;  %3727 = vmatmul.bf16.vlgmr.msra.gmra.mxu0 %v7758_v34 }
 0x222   :  { %v6212_v22 = vld [vmem:[#allocation5 + $0xbf0] sm:$0xf0]  ;;  %3752 = vmatpush.bf16.msra.mxu2 %v5223_v26 }
 0x223   :  { %v7434_v23 = vld [vmem:[#allocation5 + $0xdd4] sm:$0xf]  ;;  %v6215_v30 = vor.u32 %v7370_v20, %v6212_v22  ;;  %3771 = vmatpush.bf16.msrb.mxu0 %v5959_v49  ;;  %3740 = vmatmul.bf16.vlgmr.msra.gmra.mxu1 %v7762_v42  ;;  %v3521_v22 = vadd.f32 %v3520_v17, %v626_v9 }
 0x224   :  { %v6468_v24 = vld [vmem:[#allocation5 + $0xdf0] sm:$0xf0]  ;;  %3765 = vmatpush.bf16.msra.mxu3 %v5479_v29 }
 0x225   :  { %v7498_v27 = vld [vmem:[#allocation5 + $0xfd4] sm:$0xf]  ;;  %v6471_v31 = vor.u32 %v7434_v23, %v6468_v24  ;;  %3784 = vmatpush.bf16.msrb.mxu1 %v6215_v30  ;;  %3753 = vmatmul.bf16.vlgmr.msra.gmra.mxu2 %v7756_v33  ;;  %v3533_v23 = vpop.f32.mrf.mxu1 }
 0x226   :  { %v6724_v28 = vld [vmem:[#allocation5 + $0xff0] sm:$0xf0]  ;;  %v3534_v29 = vadd.f32 %v3533_v23, %v3521_v22  ;;  %v4938_v22 = vld [vmem:[#allocation5 + $0x1d8] sm:$0xf] }
 0x227   :  { %v7298_v36 = vld [vmem:[#allocation5 + $0x994] sm:$0xf]  ;;  %v6727_v43 = vor.u32 %v7498_v27, %v6724_v28  ;;  %3797 = vmatpush.bf16.msrb.mxu2 %v6471_v31  ;;  %3766 = vmatmul.bf16.vlgmr.msra.gmra.mxu3 %v7760_v41  ;;  %v7055_v23 = vld [vmem:[#allocation5 + $0x1f4] sm:$0xf0] }
 0x228   :  { %v5924_v51 = vld [vmem:[#allocation5 + $0x9b0] sm:$0xf0] }
 0x229   :  { %v7362_v39 = vld [vmem:[#allocation5 + $0xb94] sm:$0xf]  ;;  %v5927_v53 = vor.u32 %v7298_v36, %v5924_v51  ;;  %3810 = vmatpush.bf16.msrb.mxu3 %v6727_v43  ;;  %v3546_v43 = vpop.f32.mrf.mxu2 }
 0x22a   :  { %v6180_v44 = vld [vmem:[#allocation5 + $0xbb0] sm:$0xf0] }
 0x22b   :  { %v7426_v45 = vld [vmem:[#allocation5 + $0xd94] sm:$0xf]  ;;  %v6183_v55 = vor.u32 %v7362_v39, %v6180_v44  ;;  %3772 = vmatpush.bf16.msrb.mxu0 %v5927_v53  ;;  %v3559_v53 = vpop.f32.mrf.mxu3 }
 0x22c   :  { %v6436_v46 = vld [vmem:[#allocation5 + $0xdb0] sm:$0xf0] }
 0x22d   :  { %v7490_v48 = vld [vmem:[#allocation5 + $0xf94] sm:$0xf]  ;;  %v6439_v56 = vor.u32 %v7426_v45, %v6436_v46  ;;  %3785 = vmatpush.bf16.msrb.mxu1 %v6183_v55 }
 0x22e   :  { %v6692_v52 = vld [vmem:[#allocation5 + $0xfb0] sm:$0xf0] }
 0x22f   :  { %v7290_v57 = vld [vmem:[#allocation5 + $0x954] sm:$0xf]  ;;  %v6695_v60 = vor.u32 %v7490_v48, %v6692_v52  ;;  %3798 = vmatpush.bf16.msrb.mxu2 %v6439_v56  ;;  %v3547_v52 = vadd.f32 %v3546_v43, %v3534_v29  ;;  %v4906_v43 = vld [vmem:[#allocation5 + $0x198] sm:$0xf] }
 0x230   :  { %v5892_v58 = vld [vmem:[#allocation5 + $0x970] sm:$0xf0] }
 0x231   :  { %v7354_v59 = vld [vmem:[#allocation5 + $0xb54] sm:$0xf]  ;;  %v5895_v3 = vor.u32 %v7290_v57, %v5892_v58  ;;  %3811 = vmatpush.bf16.msrb.mxu3 %v6695_v60  ;;  %v7836_v58 = vadd.f32 %v3559_v53, %v3547_v52  ;;  %v3548_v17 = vpop.f32.mrf.mxu2  ;;  %v5418_v52 = vld [vmem:[#allocation5 + $0x598] sm:$0xf] }
 0x232   :  { %v6148_v61 = vld [vmem:[#allocation5 + $0xb70] sm:$0xf0]  ;;  %v7175_v53 = vld [vmem:[#allocation5 + $0x5b4] sm:$0xf0] }
 0x233   :  { %v7418_v62 = vld [vmem:[#allocation5 + $0xd54] sm:$0xf]  ;;  %v6151_v5 = vor.u32 %v7354_v59, %v6148_v61  ;;  %3773 = vmatpush.bf16.msrb.mxu0 %v5895_v3  ;;  %v3522_v59 = vpop.f32.mrf.mxu0  ;;  %v5610_v17 = vld [vmem:[#allocation5 + $0x718] sm:$0xf] }
 0x234   :  { %v6404_v63 = vld [vmem:[#allocation5 + $0xd70] sm:$0xf0] }
 0x235   :  { %v7482_v0 = vld [vmem:[#allocation5 + $0xf54] sm:$0xf]  ;;  %v6407_v6 = vor.u32 %v7418_v62, %v6404_v63  ;;  %3786 = vmatpush.bf16.msrb.mxu1 %v6151_v5 }
 0x236   :  { %v6660_v2 = vld [vmem:[#allocation5 + $0xf70] sm:$0xf0] }
 0x237   :  { %v7282_v4 = vld [vmem:[#allocation5 + $0x914] sm:$0xf]  ;;  %v6663_v10 = vor.u32 %v7482_v0, %v6660_v2  ;;  %3799 = vmatpush.bf16.msrb.mxu2 %v6407_v6  ;;  %v3535_v2 = vpop.f32.mrf.mxu1 }
 0x238   :  { %v5860_v7 = vld [vmem:[#allocation5 + $0x930] sm:$0xf0]  ;;  %v7103_v2 = vld [vmem:[#allocation5 + $0x374] sm:$0xf0] }
 0x239   :  { %v7346_v8 = vld [vmem:[#allocation5 + $0xb14] sm:$0xf]  ;;  %v5863_v16 = vor.u32 %v7282_v4, %v5860_v7  ;;  %3812 = vmatpush.bf16.msrb.mxu3 %v6663_v10 }
 0x23a   :  { %v6116_v11 = vld [vmem:[#allocation5 + $0xb30] sm:$0xf0] }
 0x23b   :  { %v7410_v12 = vld [vmem:[#allocation5 + $0xd14] sm:$0xf]  ;;  %v6119_v35 = vor.u32 %v7346_v8, %v6116_v11  ;;  %3774 = vmatpush.bf16.msrb.mxu0 %v5863_v16 }
 0x23c   :  { %v6372_v13 = vld [vmem:[#allocation5 + $0xd30] sm:$0xf0] }
 0x23d   :  { %v7474_v14 = vld [vmem:[#allocation5 + $0xf14] sm:$0xf]  ;;  %v6375_v18 = vor.u32 %v7410_v12, %v6372_v13  ;;  %3787 = vmatpush.bf16.msrb.mxu1 %v6119_v35 }
 0x23e   :  { %v6628_v15 = vld [vmem:[#allocation5 + $0xf30] sm:$0xf0] }
 0x23f   :  { %v7274_v19 = vld [vmem:[#allocation5 + $0x8d4] sm:$0xf]  ;;  %v6631_v1 = vor.u32 %v7474_v14, %v6628_v15  ;;  %3800 = vmatpush.bf16.msrb.mxu2 %v6375_v18 }
 0x240   :  { %v5828_v20 = vld [vmem:[#allocation5 + $0x8f0] sm:$0xf0] }
 0x241   :  { %v7338_v21 = vld [vmem:[#allocation5 + $0xad4] sm:$0xf]  ;;  %v5831_v49 = vor.u32 %v7274_v19, %v5828_v20  ;;  %3813 = vmatpush.bf16.msrb.mxu3 %v6631_v1  ;;  %v5194_v1 = vld [vmem:[#allocation5 + $0x3d8] sm:$0xf] }
 0x242   :  { %v6084_v24 = vld [vmem:[#allocation5 + $0xaf0] sm:$0xf0] }
 0x243   :  { %v7402_v25 = vld [vmem:[#allocation5 + $0xcd4] sm:$0xf]  ;;  %v6087_v30 = vor.u32 %v7338_v21, %v6084_v24  ;;  %3775 = vmatpush.bf16.msrb.mxu0 %v5831_v49  ;;  %v3561_v21 = vpop.f32.mrf.mxu3  ;;  %v5706_v49 = vld [vmem:[#allocation5 + $0x7d8] sm:$0xf] }
 0x244   :  { %v6340_v26 = vld [vmem:[#allocation5 + $0xcf0] sm:$0xf0] }
 0x245   :  { %v7466_v27 = vld [vmem:[#allocation5 + $0xed4] sm:$0xf]  ;;  %v6343_v31 = vor.u32 %v7402_v25, %v6340_v26  ;;  %3788 = vmatpush.bf16.msrb.mxu1 %v6087_v30  ;;  %v7119_v25 = vld [vmem:[#allocation5 + $0x3f4] sm:$0xf0] }
 0x246   :  { %v6596_v28 = vld [vmem:[#allocation5 + $0xef0] sm:$0xf0]  ;;  %v5450_v26 = vld [vmem:[#allocation5 + $0x5d8] sm:$0xf] }
 0x247   :  { %v7266_v36 = vld [vmem:[#allocation5 + $0x894] sm:$0xf]  ;;  %v6599_v44 = vor.u32 %v7466_v27, %v6596_v28  ;;  %3801 = vmatpush.bf16.msrb.mxu2 %v6343_v31  ;;  %v7183_v27 = vld [vmem:[#allocation5 + $0x5f4] sm:$0xf0] }
 0x248   :  { %v5796_v51 = vld [vmem:[#allocation5 + $0x8b0] sm:$0xf0]  ;;  %v7247_v30 = vld [vmem:[#allocation5 + $0x7f4] sm:$0xf0] }
 0x249   :  { %v7330_v39 = vld [vmem:[#allocation5 + $0xa94] sm:$0xf]  ;;  %v5799_v57 = vor.u32 %v7266_v36, %v5796_v51  ;;  %3814 = vmatpush.bf16.msrb.mxu3 %v6599_v44  ;;  %v4939_v36 = vor.u32 %v7055_v23, %v4938_v22  ;;  %v5195_v51 = vor.u32 %v7119_v25, %v5194_v1  ;;  %v7047_v44 = vld [vmem:[#allocation5 + $0x1b4] sm:$0xf0]  ;;  %v3585_v25 = vpop.f32.mrf.mxu1 }
 0x24a   :  { %v6052_v45 = vld [vmem:[#allocation5 + $0xab0] sm:$0xf0]  ;;  %v4810_v22 = vld [vmem:[#allocation5 + $0xd8] sm:$0xf] }
 0x24b   :  { %v7394_v46 = vld [vmem:[#allocation5 + $0xc94] sm:$0xf]  ;;  %v6055_v60 = vor.u32 %v7330_v39, %v6052_v45  ;;  %3776 = vmatpush.bf16.msrb.mxu0 %v5799_v57  ;;  %v5451_v39 = vor.u32 %v7183_v27, %v5450_v26  ;;  %v5162_v45 = vld [vmem:[#allocation5 + $0x398] sm:$0xf]  ;;  %v4907_v57 = vor.u32 %v7047_v44, %v4906_v43 }
 0x24c   :  { %v6308_v48 = vld [vmem:[#allocation5 + $0xcb0] sm:$0xf0]  ;;  %v7023_v23 = vld [vmem:[#allocation5 + $0xf4] sm:$0xf0] }
 0x24d   :  { %v7458_v55 = vld [vmem:[#allocation5 + $0xe94] sm:$0xf]  ;;  %v6311_v61 = vor.u32 %v7394_v46, %v6308_v48  ;;  %3789 = vmatpush.bf16.msrb.mxu1 %v6055_v60  ;;  %v5707_v46 = vor.u32 %v7247_v30, %v5706_v49  ;;  %v7111_v48 = vld [vmem:[#allocation5 + $0x3b4] sm:$0xf0]  ;;  %v5419_v60 = vor.u32 %v7175_v53, %v5418_v52 }
 0x24e   :  { %v6564_v56 = vld [vmem:[#allocation5 + $0xeb0] sm:$0xf0]  ;;  %v5163_v59 = vor.u32 %v7111_v48, %v5162_v45  ;;  %v5066_v1 = vld [vmem:[#allocation5 + $0x2d8] sm:$0xf] }
 0x24f   :  { %v7258_v62 = vld [vmem:[#allocation5 + $0x854] sm:$0xf]  ;;  %v6567_v3 = vor.u32 %v7458_v55, %v6564_v56  ;;  %3802 = vmatpush.bf16.msrb.mxu2 %v6311_v61  ;;  %v5674_v55 = vld [vmem:[#allocation5 + $0x798] sm:$0xf] }
 0x250   :  { %v5764_v63 = vld [vmem:[#allocation5 + $0x870] sm:$0xf0]  ;;  %v7239_v56 = vld [vmem:[#allocation5 + $0x7b4] sm:$0xf0] }
 0x251   :  { %v7322_v0 = vld [vmem:[#allocation5 + $0xa54] sm:$0xf]  ;;  %v5767_v9 = vor.u32 %v7258_v62, %v5764_v63  ;;  %3815 = vmatpush.bf16.msrb.mxu3 %v6567_v3  ;;  %v4874_v61 = vld [vmem:[#allocation5 + $0x158] sm:$0xf] }
 0x252   :  { %v6020_v4 = vld [vmem:[#allocation5 + $0xa70] sm:$0xf0]  ;;  %v7039_v62 = vld [vmem:[#allocation5 + $0x174] sm:$0xf0] }
 0x253   :  { %v7386_v5 = vld [vmem:[#allocation5 + $0xc54] sm:$0xf]  ;;  %v6023_v12 = vor.u32 %v7322_v0, %v6020_v4  ;;  %3777 = vmatpush.bf16.msrb.mxu0 %v5767_v9  ;;  %v5130_v63 = vld [vmem:[#allocation5 + $0x358] sm:$0xf]  ;;  %v5675_v0 = vor.u32 %v7239_v56, %v5674_v55  ;;  %v3611_v56 = vpop.f32.mrf.mxu3 }
 0x254   :  { %v6276_v6 = vld [vmem:[#allocation5 + $0xc70] sm:$0xf0]  ;;  %v5386_v3 = vld [vmem:[#allocation5 + $0x558] sm:$0xf] }
 0x255   :  { %v7450_v7 = vld [vmem:[#allocation5 + $0xe54] sm:$0xf]  ;;  %v6279_v13 = vor.u32 %v7386_v5, %v6276_v6  ;;  %3790 = vmatpush.bf16.msrb.mxu1 %v6023_v12  ;;  %v7167_v4 = vld [vmem:[#allocation5 + $0x574] sm:$0xf0] }
 0x256   :  { %v6532_v8 = vld [vmem:[#allocation5 + $0xe70] sm:$0xf0]  ;;  %v5642_v5 = vld [vmem:[#allocation5 + $0x758] sm:$0xf]  ;;  %v5387_v9 = vor.u32 %v7167_v4, %v5386_v3 }
 0x257   :  { %v7250_v10 = vld [vmem:[#allocation5 + $0x814] sm:$0xf]  ;;  %v6535_v35 = vor.u32 %v7450_v7, %v6532_v8  ;;  %3803 = vmatpush.bf16.msrb.mxu2 %v6279_v13  ;;  %v7231_v6 = vld [vmem:[#allocation5 + $0x774] sm:$0xf0]  ;;  %v4875_v7 = vor.u32 %v7039_v62, %v4874_v61  ;;  %v5131_v8 = vor.u32 %v7103_v2, %v5130_v63 }
 0x258   :  { %v5732_v11 = vld [vmem:[#allocation5 + $0x830] sm:$0xf0]  ;;  %v5098_v12 = vld [vmem:[#allocation5 + $0x318] sm:$0xf]  ;;  %v5643_v13 = vor.u32 %v7231_v6, %v5642_v5  ;;  %v3587_v5 = vpop.f32.mrf.mxu1 }
 0x259   :  { %v7314_v14 = vld [vmem:[#allocation5 + $0xa14] sm:$0xf]  ;;  %v5735_v24 = vor.u32 %v7250_v10, %v5732_v11  ;;  %3816 = vmatpush.bf16.msrb.mxu3 %v6535_v35  ;;  %v4842_v10 = vld [vmem:[#allocation5 + $0x118] sm:$0xf] }
 0x25a   :  { %v5988_v15 = vld [vmem:[#allocation5 + $0xa30] sm:$0xf0]  ;;  %v7031_v11 = vld [vmem:[#allocation5 + $0x134] sm:$0xf0] }
 0x25b   :  { %v7378_v16 = vld [vmem:[#allocation5 + $0xc14] sm:$0xf]  ;;  %v5991_v28 = vor.u32 %v7314_v14, %v5988_v15  ;;  %3778 = vmatpush.bf16.msrb.mxu0 %v5735_v24  ;;  %v7095_v14 = vld [vmem:[#allocation5 + $0x334] sm:$0xf0] }
 0x25c   :  { %v6244_v18 = vld [vmem:[#allocation5 + $0xc30] sm:$0xf0]  ;;  %v5354_v15 = vld [vmem:[#allocation5 + $0x518] sm:$0xf] }
 0x25d   :  { %v7442_v19 = vld [vmem:[#allocation5 + $0xe14] sm:$0xf]  ;;  %v6247_v29 = vor.u32 %v7378_v16, %v6244_v18  ;;  %3791 = vmatpush.bf16.msrb.mxu1 %v5991_v28  ;;  %v7159_v16 = vld [vmem:[#allocation5 + $0x534] sm:$0xf0]  ;;  %v4843_v18 = vor.u32 %v7031_v11, %v4842_v10 }
 0x25e   :  { %v6500_v20 = vld [vmem:[#allocation5 + $0xe30] sm:$0xf0]  ;;  %3779 = vmatmul.bf16.vlgmr.msrb.gmra.mxu0 %v7770_v37  ;;  %v7223_v35 = vld [vmem:[#allocation5 + $0x734] sm:$0xf0]  ;;  %v5355_v21 = vor.u32 %v7159_v16, %v5354_v15 }
 0x25f   :  { %v6503_v31 = vor.u32 %v7442_v19, %v6500_v20  ;;  %3804 = vmatpush.bf16.msrb.mxu2 %v6247_v29  ;;  %3823 = vmatpush.bf16.msra.mxu0 %v4939_v36  ;;  %v3572_v19 = vpop.f32.mrf.mxu0  ;;  %v5099_v20 = vor.u32 %v7095_v14, %v5098_v12  ;;  %v5611_v26 = vor.u32 %v7223_v35, %v5610_v17  ;;  %v7087_v27 = vld [vmem:[#allocation5 + $0x2f4] sm:$0xf0] }
 0x260   :  { %3792 = vmatmul.bf16.vlgmr.msrb.gmra.mxu1 %v7774_v40  ;;  %v3573_v24 = vadd.f32 %v3572_v19, %v7836_v58  ;;  %v5322_v28 = vld [vmem:[#allocation5 + $0x4d8] sm:$0xf]  ;;  %v4811_v36 = vor.u32 %v7023_v23, %v4810_v22 }
 0x261   :  { %3817 = vmatpush.bf16.msrb.mxu3 %v6503_v31  ;;  %3836 = vmatpush.bf16.msra.mxu1 %v5195_v51  ;;  %v7151_v29 = vld [vmem:[#allocation5 + $0x4f4] sm:$0xf0]  ;;  %v5067_v51 = vor.u32 %v7087_v27, %v5066_v1  ;;  %v3613_v1 = vpop.f32.mrf.mxu3 }
 0x262   :  { %3805 = vmatmul.bf16.vlgmr.msrb.gmra.mxu2 %v7768_v32  ;;  %v5578_v49 = vld [vmem:[#allocation5 + $0x6d8] sm:$0xf]  ;;  %v3586_v31 = vadd.f32 %v3585_v25, %v3573_v24 }
 0x263   :  { %3849 = vmatpush.bf16.msra.mxu2 %v5451_v39  ;;  %3824 = vmatpush.bf16.msra.mxu0 %v4907_v57  ;;  %v7215_v30 = vld [vmem:[#allocation5 + $0x6f4] sm:$0xf0]  ;;  %v5323_v39 = vor.u32 %v7151_v29, %v5322_v28 }
 0x264   :  { %3818 = vmatmul.bf16.vlgmr.msrb.gmra.mxu3 %v7772_v38  ;;  %v4778_v43 = vld [vmem:[#allocation5 + $0x98] sm:$0xf]  ;;  %v5579_v58 = vor.u32 %v7215_v30, %v5578_v49 }
 0x265   :  { %3862 = vmatpush.bf16.msra.mxu3 %v5707_v46  ;;  %3837 = vmatpush.bf16.msra.mxu1 %v5163_v59  ;;  %v7015_v44 = vld [vmem:[#allocation5 + $0xb4] sm:$0xf0]  ;;  %v3598_v46 = vpop.f32.mrf.mxu2 }
 0x266   :  { %v5034_v45 = vld [vmem:[#allocation5 + $0x298] sm:$0xf]  ;;  %v3599_v55 = vadd.f32 %v3598_v46, %v3586_v31 }
 0x267   :  { %3850 = vmatpush.bf16.msra.mxu2 %v5419_v60  ;;  %3825 = vmatpush.bf16.msra.mxu0 %v4875_v7  ;;  %v7079_v48 = vld [vmem:[#allocation5 + $0x2b4] sm:$0xf0]  ;;  %v4779_v60 = vor.u32 %v7015_v44, %v4778_v43  ;;  %v3574_v62 = vpop.f32.mrf.mxu0 }
 0x268   :  { %v5290_v52 = vld [vmem:[#allocation5 + $0x498] sm:$0xf]  ;;  %v7843_v61 = vadd.f32 %v3611_v56, %v3599_v55  ;;  %v5035_v63 = vor.u32 %v7079_v48, %v5034_v45 }
 0x269   :  { %3863 = vmatpush.bf16.msra.mxu3 %v5675_v0  ;;  %3838 = vmatpush.bf16.msra.mxu1 %v5131_v8  ;;  %v7143_v53 = vld [vmem:[#allocation5 + $0x4b4] sm:$0xf0] }
 0x26a   :  { %v5546_v57 = vld [vmem:[#allocation5 + $0x698] sm:$0xf]  ;;  %v5291_v0 = vor.u32 %v7143_v53, %v5290_v52 }
 0x26b   :  { %3851 = vmatpush.bf16.msra.mxu2 %v5387_v9  ;;  %3826 = vmatpush.bf16.msra.mxu0 %v4843_v18  ;;  %v7207_v59 = vld [vmem:[#allocation5 + $0x6b4] sm:$0xf0] }
 0x26c   :  { %v4746_v2 = vld [vmem:[#allocation5 + $0x58] sm:$0xf]  ;;  %v5547_v6 = vor.u32 %v7207_v59, %v5546_v57 }
 0x26d   :  { %3864 = vmatpush.bf16.msra.mxu3 %v5643_v13  ;;  %3839 = vmatpush.bf16.msra.mxu1 %v5099_v20  ;;  %v7007_v3 = vld [vmem:[#allocation5 + $0x74] sm:$0xf0]  ;;  %v3600_v19 = vpop.f32.mrf.mxu2 }
 0x26e   :  { %v5002_v4 = vld [vmem:[#allocation5 + $0x258] sm:$0xf]  ;;  %v4747_v12 = vor.u32 %v7007_v3, %v4746_v2 }
 0x26f   :  { %3852 = vmatpush.bf16.msra.mxu2 %v5355_v21  ;;  %3827 = vmatpush.bf16.msra.mxu0 %v4811_v36  ;;  %v7071_v7 = vld [vmem:[#allocation5 + $0x274] sm:$0xf0]  ;;  %v3624_v1 = vpop.f32.mrf.mxu0 }
 0x270   :  { %v5258_v8 = vld [vmem:[#allocation5 + $0x458] sm:$0xf]  ;;  %v5003_v15 = vor.u32 %v7071_v7, %v5002_v4 }
 0x271   :  { %3865 = vmatpush.bf16.msra.mxu3 %v5611_v26  ;;  %3840 = vmatpush.bf16.msra.mxu1 %v5067_v51  ;;  %v7135_v9 = vld [vmem:[#allocation5 + $0x474] sm:$0xf0] }
 0x272   :  { %v5514_v10 = vld [vmem:[#allocation5 + $0x658] sm:$0xf]  ;;  %v5259_v16 = vor.u32 %v7135_v9, %v5258_v8 }
 0x273   :  { %3853 = vmatpush.bf16.msra.mxu2 %v5323_v39  ;;  %v7199_v11 = vld [vmem:[#allocation5 + $0x674] sm:$0xf0]  ;;  %3828 = vmatpush.bf16.msra.mxu0 %v4779_v60 }
 0x274   :  { %v4714_v13 = vld [vmem:[#allocation5 + $0x18] sm:$0xf]  ;;  %v5515_v20 = vor.u32 %v7199_v11, %v5514_v10 }
 0x275   :  { %3866 = vmatpush.bf16.msra.mxu3 %v5579_v58  ;;  %v6999_v14 = vld [vmem:[#allocation5 + $0x34] sm:$0xf0]  ;;  %3841 = vmatpush.bf16.msra.mxu1 %v5035_v63 }
 0x276   :  { %v4970_v17 = vld [vmem:[#allocation5 + $0x218] sm:$0xf]  ;;  %v4715_v27 = vor.u32 %v6999_v14, %v4714_v13 }
 0x277   :  { %3854 = vmatpush.bf16.msra.mxu2 %v5291_v0  ;;  %v7063_v35 = vld [vmem:[#allocation5 + $0x234] sm:$0xf0]  ;;  %3829 = vmatpush.bf16.msra.mxu0 %v4747_v12 }
 0x278   :  { %v5226_v18 = vld [vmem:[#allocation5 + $0x418] sm:$0xf]  ;;  %v4971_v30 = vor.u32 %v7063_v35, %v4970_v17 }
 0x279   :  { %3867 = vmatpush.bf16.msra.mxu3 %v5547_v6  ;;  %v7127_v21 = vld [vmem:[#allocation5 + $0x434] sm:$0xf0]  ;;  %3842 = vmatpush.bf16.msra.mxu1 %v5003_v15 }
 0x27a   :  { %v5482_v22 = vld [vmem:[#allocation5 + $0x618] sm:$0xf]  ;;  %v5227_v31 = vor.u32 %v7127_v21, %v5226_v18 }
 0x27b   :  { %v7191_v23 = vld [vmem:[#allocation5 + $0x634] sm:$0xf0]  ;;  %3855 = vmatpush.bf16.msra.mxu2 %v5259_v16  ;;  %3830 = vmatpush.bf16.msra.mxu0 %v4715_v27  ;;  %v7849_v16 = vld [vmem:[#allocation7] sm:$0xff] }
 0x27c   :  { %v5962_v24 = vld [vmem:[#allocation5 + $0x9d8] sm:$0xf]  ;;  %v5483_v39 = vor.u32 %v7191_v23, %v5482_v22  ;;  %v627_v17 = vperm.slane %v7849_v16, 4 }
 0x27d   :  { %v7311_v25 = vld [vmem:[#allocation5 + $0x9f4] sm:$0xf0]  ;;  %3868 = vmatpush.bf16.msra.mxu3 %v5515_v20  ;;  %3843 = vmatpush.bf16.msra.mxu1 %v4971_v30 }
 0x27e   :  { %v6218_v26 = vld [vmem:[#allocation5 + $0xbd8] sm:$0xf]  ;;  %v5963_v43 = vor.u32 %v7311_v25, %v5962_v24  ;;  %3831 = vmatmul.bf16.vlgmr.msra.gmra.mxu0 %v7758_v34 }
 0x27f   :  { %v7375_v28 = vld [vmem:[#allocation5 + $0xbf4] sm:$0xf0]  ;;  %3856 = vmatpush.bf16.msra.mxu2 %v5227_v31 }
 0x280   :  { %v6474_v29 = vld [vmem:[#allocation5 + $0xdd8] sm:$0xf]  ;;  %v6219_v44 = vor.u32 %v7375_v28, %v6218_v26  ;;  %3875 = vmatpush.bf16.msrb.mxu0 %v5963_v43  ;;  %3844 = vmatmul.bf16.vlgmr.msra.gmra.mxu1 %v7762_v42 }
 0x281   :  { %v7439_v49 = vld [vmem:[#allocation5 + $0xdf4] sm:$0xf0]  ;;  %3869 = vmatpush.bf16.msra.mxu3 %v5483_v39 }
 0x282   :  { %v6730_v36 = vld [vmem:[#allocation5 + $0xfd8] sm:$0xf]  ;;  %v6475_v45 = vor.u32 %v7439_v49, %v6474_v29  ;;  %3888 = vmatpush.bf16.msrb.mxu1 %v6219_v44  ;;  %3857 = vmatmul.bf16.vlgmr.msra.gmra.mxu2 %v7756_v33  ;;  %v3625_v29 = vadd.f32 %v3624_v1, %v627_v17  ;;  %v3637_v49 = vpop.f32.mrf.mxu1 }
 0x283   :  { %v7503_v51 = vld [vmem:[#allocation5 + $0xff4] sm:$0xf0] }
 0x284   :  { %v5930_v46 = vld [vmem:[#allocation5 + $0x998] sm:$0xf]  ;;  %v6731_v52 = vor.u32 %v7503_v51, %v6730_v36  ;;  %3901 = vmatpush.bf16.msrb.mxu2 %v6475_v45  ;;  %3870 = vmatmul.bf16.vlgmr.msra.gmra.mxu3 %v7760_v41  ;;  %v3638_v44 = vadd.f32 %v3637_v49, %v3625_v29 }
 0x285   :  { %v7303_v58 = vld [vmem:[#allocation5 + $0x9b4] sm:$0xf0] }
 0x286   :  { %v6186_v48 = vld [vmem:[#allocation5 + $0xb98] sm:$0xf]  ;;  %v5931_v60 = vor.u32 %v7303_v58, %v5930_v46  ;;  %3914 = vmatpush.bf16.msrb.mxu3 %v6731_v52 }
 0x287   :  { %v7367_v53 = vld [vmem:[#allocation5 + $0xbb4] sm:$0xf0] }
 0x288   :  { %v6442_v55 = vld [vmem:[#allocation5 + $0xd98] sm:$0xf]  ;;  %v6187_v62 = vor.u32 %v7367_v53, %v6186_v48  ;;  %3876 = vmatpush.bf16.msrb.mxu0 %v5931_v60 }
 0x289   :  { %v7431_v56 = vld [vmem:[#allocation5 + $0xdb4] sm:$0xf0] }
 0x28a   :  { %v6698_v57 = vld [vmem:[#allocation5 + $0xf98] sm:$0xf]  ;;  %v6443_v63 = vor.u32 %v7431_v56, %v6442_v55  ;;  %3889 = vmatpush.bf16.msrb.mxu1 %v6187_v62  ;;  %v3650_v55 = vpop.f32.mrf.mxu2 }
 0x28b   :  { %v7495_v59 = vld [vmem:[#allocation5 + $0xfb4] sm:$0xf0]  ;;  %v3651_v62 = vadd.f32 %v3650_v55, %v3638_v44  ;;  %v5452_v44 = vld [vmem:[#allocation5 + $0x5f8] sm:$0xf0] }
 0x28c   :  { %v5898_v0 = vld [vmem:[#allocation5 + $0x958] sm:$0xf]  ;;  %v6699_v4 = vor.u32 %v7495_v59, %v6698_v57  ;;  %3902 = vmatpush.bf16.msrb.mxu2 %v6443_v63  ;;  %v3663_v63 = vpop.f32.mrf.mxu3 }
 0x28d   :  { %v7295_v2 = vld [vmem:[#allocation5 + $0x974] sm:$0xf0] }
 0x28e   :  { %v6154_v3 = vld [vmem:[#allocation5 + $0xb58] sm:$0xf]  ;;  %v5899_v10 = vor.u32 %v7295_v2, %v5898_v0  ;;  %3915 = vmatpush.bf16.msrb.mxu3 %v6699_v4  ;;  %v7852_v4 = vadd.f32 %v3663_v63, %v3651_v62  ;;  %v5164_v63 = vld [vmem:[#allocation5 + $0x3b8] sm:$0xf0] }
 0x28f   :  { %v7359_v5 = vld [vmem:[#allocation5 + $0xb74] sm:$0xf0] }
 0x290   :  { %v6410_v6 = vld [vmem:[#allocation5 + $0xd58] sm:$0xf]  ;;  %v6155_v12 = vor.u32 %v7359_v5, %v6154_v3  ;;  %3877 = vmatpush.bf16.msrb.mxu0 %v5899_v10  ;;  %v3626_v5 = vpop.f32.mrf.mxu0 }
 0x291   :  { %v7423_v7 = vld [vmem:[#allocation5 + $0xd74] sm:$0xf0]  ;;  %v5676_v5 = vld [vmem:[#allocation5 + $0x7b8] sm:$0xf0] }
 0x292   :  { %v6666_v8 = vld [vmem:[#allocation5 + $0xf58] sm:$0xf]  ;;  %v6411_v13 = vor.u32 %v7423_v7, %v6410_v6  ;;  %3890 = vmatpush.bf16.msrb.mxu1 %v6155_v12 }
 0x293   :  { %v7487_v9 = vld [vmem:[#allocation5 + $0xf74] sm:$0xf0] }
 0x294   :  { %v5866_v11 = vld [vmem:[#allocation5 + $0x918] sm:$0xf]  ;;  %v6667_v35 = vor.u32 %v7487_v9, %v6666_v8  ;;  %3903 = vmatpush.bf16.msrb.mxu2 %v6411_v13  ;;  %v3665_v49 = vpop.f32.mrf.mxu3 }
 0x295   :  { %v7287_v14 = vld [vmem:[#allocation5 + $0x934] sm:$0xf0] }
 0x296   :  { %v6122_v15 = vld [vmem:[#allocation5 + $0xb18] sm:$0xf]  ;;  %v5867_v23 = vor.u32 %v7287_v14, %v5866_v11  ;;  %3916 = vmatpush.bf16.msrb.mxu3 %v6667_v35  ;;  %v3639_v11 = vpop.f32.mrf.mxu1 }
 0x297   :  { %v7351_v18 = vld [vmem:[#allocation5 + $0xb34] sm:$0xf0]  ;;  %v7099_v11 = vld [vmem:[#allocation5 + $0x35c] sm:$0xf] }
 0x298   :  { %v6378_v19 = vld [vmem:[#allocation5 + $0xd18] sm:$0xf]  ;;  %v6123_v24 = vor.u32 %v7351_v18, %v6122_v15  ;;  %3878 = vmatpush.bf16.msrb.mxu0 %v5867_v23  ;;  %v3676_v49 = vpop.f32.mrf.mxu0 }
 0x299   :  { %v7415_v20 = vld [vmem:[#allocation5 + $0xd34] sm:$0xf0] }
 0x29a   :  { %v6634_v21 = vld [vmem:[#allocation5 + $0xf18] sm:$0xf]  ;;  %v6379_v25 = vor.u32 %v7415_v20, %v6378_v19  ;;  %3891 = vmatpush.bf16.msrb.mxu1 %v6123_v24 }
 0x29b   :  { %v7479_v22 = vld [vmem:[#allocation5 + $0xf34] sm:$0xf0] }
 0x29c   :  { %v5834_v26 = vld [vmem:[#allocation5 + $0x8d8] sm:$0xf]  ;;  %v6635_v30 = vor.u32 %v7479_v22, %v6634_v21  ;;  %3904 = vmatpush.bf16.msrb.mxu2 %v6379_v25  ;;  %v3652_v25 = vpop.f32.mrf.mxu2 }
 0x29d   :  { %v7279_v27 = vld [vmem:[#allocation5 + $0x8f4] sm:$0xf0]  ;;  %v7155_v25 = vld [vmem:[#allocation5 + $0x51c] sm:$0xf] }
 0x29e   :  { %v6090_v28 = vld [vmem:[#allocation5 + $0xad8] sm:$0xf]  ;;  %v5835_v45 = vor.u32 %v7279_v27, %v5834_v26  ;;  %3917 = vmatpush.bf16.msrb.mxu3 %v6635_v30  ;;  %v7051_v30 = vld [vmem:[#allocation5 + $0x1dc] sm:$0xf] }
 0x29f   :  { %v7343_v31 = vld [vmem:[#allocation5 + $0xaf4] sm:$0xf0] }
 0x2a0   :  { %v6346_v36 = vld [vmem:[#allocation5 + $0xcd8] sm:$0xf]  ;;  %v6091_v46 = vor.u32 %v7343_v31, %v6090_v28  ;;  %3879 = vmatpush.bf16.msrb.mxu0 %v5835_v45  ;;  %v4940_v31 = vld [vmem:[#allocation5 + $0x1f8] sm:$0xf0] }
 0x2a1   :  { %v7407_v51 = vld [vmem:[#allocation5 + $0xcf4] sm:$0xf0] }
 0x2a2   :  { %v6602_v39 = vld [vmem:[#allocation5 + $0xed8] sm:$0xf]  ;;  %v6347_v58 = vor.u32 %v7407_v51, %v6346_v36  ;;  %3892 = vmatpush.bf16.msrb.mxu1 %v6091_v46  ;;  %v7115_v36 = vld [vmem:[#allocation5 + $0x3dc] sm:$0xf] }
 0x2a3   :  { %v7471_v43 = vld [vmem:[#allocation5 + $0xef4] sm:$0xf0] }
 0x2a4   :  { %v5802_v48 = vld [vmem:[#allocation5 + $0x898] sm:$0xf]  ;;  %v6603_v56 = vor.u32 %v7471_v43, %v6602_v39  ;;  %3905 = vmatpush.bf16.msrb.mxu2 %v6347_v58  ;;  %v5196_v39 = vld [vmem:[#allocation5 + $0x3f8] sm:$0xf0] }
 0x2a5   :  { %v7271_v52 = vld [vmem:[#allocation5 + $0x8b4] sm:$0xf0]  ;;  %v7179_v43 = vld [vmem:[#allocation5 + $0x5dc] sm:$0xf]  ;;  %v5199_v55 = vor.u32 %v7115_v36, %v5196_v39 }
 0x2a6   :  { %v6058_v53 = vld [vmem:[#allocation5 + $0xa98] sm:$0xf]  ;;  %v5803_v3 = vor.u32 %v7271_v52, %v5802_v48  ;;  %3918 = vmatpush.bf16.msrb.mxu3 %v6603_v56  ;;  %v7243_v58 = vld [vmem:[#allocation5 + $0x7dc] sm:$0xf]  ;;  %v5455_v56 = vor.u32 %v7179_v43, %v5452_v44  ;;  %v3677_v43 = vadd.f32 %v3676_v49, %v7852_v4  ;;  %v3689_v44 = vpop.f32.mrf.mxu1 }
 0x2a7   :  { %v7335_v57 = vld [vmem:[#allocation5 + $0xab4] sm:$0xf0]  ;;  %v5708_v48 = vld [vmem:[#allocation5 + $0x7f8] sm:$0xf0] }
 0x2a8   :  { %v6314_v59 = vld [vmem:[#allocation5 + $0xc98] sm:$0xf]  ;;  %v6059_v6 = vor.u32 %v7335_v57, %v6058_v53  ;;  %3880 = vmatpush.bf16.msrb.mxu0 %v5803_v3  ;;  %v4943_v53 = vor.u32 %v7051_v30, %v4940_v31  ;;  %v7043_v57 = vld [vmem:[#allocation5 + $0x19c] sm:$0xf]  ;;  %v5711_v62 = vor.u32 %v7243_v58, %v5708_v48 }
 0x2a9   :  { %v7399_v60 = vld [vmem:[#allocation5 + $0xcb4] sm:$0xf0]  ;;  %v7235_v3 = vld [vmem:[#allocation5 + $0x79c] sm:$0xf] }
 0x2aa   :  { %v6570_v0 = vld [vmem:[#allocation5 + $0xe98] sm:$0xf]  ;;  %v6315_v7 = vor.u32 %v7399_v60, %v6314_v59  ;;  %3893 = vmatpush.bf16.msrb.mxu1 %v6059_v6  ;;  %v4908_v59 = vld [vmem:[#allocation5 + $0x1b8] sm:$0xf0] }
 0x2ab   :  { %v7463_v2 = vld [vmem:[#allocation5 + $0xeb4] sm:$0xf0]  ;;  %v7107_v60 = vld [vmem:[#allocation5 + $0x39c] sm:$0xf]  ;;  %v4911_v6 = vor.u32 %v7043_v57, %v4908_v59 }
 0x2ac   :  { %v5770_v8 = vld [vmem:[#allocation5 + $0x858] sm:$0xf]  ;;  %v6571_v12 = vor.u32 %v7463_v2, %v6570_v0  ;;  %3906 = vmatpush.bf16.msrb.mxu2 %v6315_v7  ;;  %v7171_v0 = vld [vmem:[#allocation5 + $0x59c] sm:$0xf]  ;;  %v5167_v7 = vor.u32 %v7107_v60, %v5164_v63 }
 0x2ad   :  { %v7263_v9 = vld [vmem:[#allocation5 + $0x874] sm:$0xf0]  ;;  %v5420_v2 = vld [vmem:[#allocation5 + $0x5b8] sm:$0xf0] }
 0x2ae   :  { %v6026_v10 = vld [vmem:[#allocation5 + $0xa58] sm:$0xf]  ;;  %v5771_v18 = vor.u32 %v7263_v9, %v5770_v8  ;;  %3919 = vmatpush.bf16.msrb.mxu3 %v6571_v12  ;;  %v5423_v8 = vor.u32 %v7171_v0, %v5420_v2  ;;  %v7035_v9 = vld [vmem:[#allocation5 + $0x15c] sm:$0xf]  ;;  %v5679_v12 = vor.u32 %v7235_v3, %v5676_v5  ;;  %v3702_v0 = vpop.f32.mrf.mxu2 }
 0x2af   :  { %v7327_v13 = vld [vmem:[#allocation5 + $0xa74] sm:$0xf0]  ;;  %v7019_v36 = vld [vmem:[#allocation5 + $0xdc] sm:$0xf] }
 0x2b0   :  { %v6282_v14 = vld [vmem:[#allocation5 + $0xc58] sm:$0xf]  ;;  %v6027_v21 = vor.u32 %v7327_v13, %v6026_v10  ;;  %3881 = vmatpush.bf16.msrb.mxu0 %v5771_v18  ;;  %v4876_v10 = vld [vmem:[#allocation5 + $0x178] sm:$0xf0] }
 0x2b1   :  { %v7391_v15 = vld [vmem:[#allocation5 + $0xc74] sm:$0xf0]  ;;  %v5132_v13 = vld [vmem:[#allocation5 + $0x378] sm:$0xf0]  ;;  %v4879_v18 = vor.u32 %v7035_v9, %v4876_v10 }
 0x2b2   :  { %v6538_v17 = vld [vmem:[#allocation5 + $0xe58] sm:$0xf]  ;;  %v6283_v22 = vor.u32 %v7391_v15, %v6282_v14  ;;  %3894 = vmatpush.bf16.msrb.mxu1 %v6027_v21  ;;  %v7163_v14 = vld [vmem:[#allocation5 + $0x55c] sm:$0xf] }
 0x2b3   :  { %v7455_v35 = vld [vmem:[#allocation5 + $0xe74] sm:$0xf0]  ;;  %v5388_v15 = vld [vmem:[#allocation5 + $0x578] sm:$0xf0] }
 0x2b4   :  { %v5738_v19 = vld [vmem:[#allocation5 + $0x818] sm:$0xf]  ;;  %v6539_v26 = vor.u32 %v7455_v35, %v6538_v17  ;;  %3907 = vmatpush.bf16.msrb.mxu2 %v6283_v22  ;;  %v7227_v17 = vld [vmem:[#allocation5 + $0x75c] sm:$0xf] }
 0x2b5   :  { %v7255_v20 = vld [vmem:[#allocation5 + $0x834] sm:$0xf0]  ;;  %v5644_v35 = vld [vmem:[#allocation5 + $0x778] sm:$0xf0] }
 0x2b6   :  { %v5994_v23 = vld [vmem:[#allocation5 + $0xa18] sm:$0xf]  ;;  %v5739_v51 = vor.u32 %v7255_v20, %v5738_v19  ;;  %3920 = vmatpush.bf16.msrb.mxu3 %v6539_v26  ;;  %v5135_v19 = vor.u32 %v7099_v11, %v5132_v13  ;;  %v5391_v20 = vor.u32 %v7163_v14, %v5388_v15  ;;  %v7027_v21 = vld [vmem:[#allocation5 + $0x11c] sm:$0xf] }
 0x2b7   :  { %v7319_v1 = vld [vmem:[#allocation5 + $0xa34] sm:$0xf0]  ;;  %v4844_v22 = vld [vmem:[#allocation5 + $0x138] sm:$0xf0] }
 0x2b8   :  { %v6250_v24 = vld [vmem:[#allocation5 + $0xc18] sm:$0xf]  ;;  %v5995_v45 = vor.u32 %v7319_v1, %v5994_v23  ;;  %3882 = vmatpush.bf16.msrb.mxu0 %v5739_v51  ;;  %v7091_v23 = vld [vmem:[#allocation5 + $0x31c] sm:$0xf]  ;;  %v5647_v1 = vor.u32 %v7227_v17, %v5644_v35 }
 0x2b9   :  { %v7383_v27 = vld [vmem:[#allocation5 + $0xc34] sm:$0xf0]  ;;  %v5356_v26 = vld [vmem:[#allocation5 + $0x538] sm:$0xf0] }
 0x2ba   :  { %v6506_v28 = vld [vmem:[#allocation5 + $0xe18] sm:$0xf]  ;;  %v6251_v46 = vor.u32 %v7383_v27, %v6250_v24  ;;  %3895 = vmatpush.bf16.msrb.mxu1 %v5995_v45  ;;  %v5100_v24 = vld [vmem:[#allocation5 + $0x338] sm:$0xf0]  ;;  %v5359_v31 = vor.u32 %v7155_v25, %v5356_v26 }
 0x2bb   :  { %v7447_v29 = vld [vmem:[#allocation5 + $0xe34] sm:$0xf0]  ;;  %3883 = vmatmul.bf16.vlgmr.msrb.gmra.mxu0 %v7770_v37  ;;  %v7219_v27 = vld [vmem:[#allocation5 + $0x71c] sm:$0xf]  ;;  %v5103_v30 = vor.u32 %v7091_v23, %v5100_v24 }
 0x2bc   :  { %v6507_v52 = vor.u32 %v7447_v29, %v6506_v28  ;;  %3908 = vmatpush.bf16.msrb.mxu2 %v6251_v46  ;;  %3927 = vmatpush.bf16.msra.mxu0 %v4943_v53  ;;  %v5612_v28 = vld [vmem:[#allocation5 + $0x738] sm:$0xf0]  ;;  %v4847_v29 = vor.u32 %v7027_v21, %v4844_v22 }
 0x2bd   :  { %3896 = vmatmul.bf16.vlgmr.msrb.gmra.mxu1 %v7774_v40  ;;  %v4812_v51 = vld [vmem:[#allocation5 + $0xf8] sm:$0xf0]  ;;  %v5615_v45 = vor.u32 %v7219_v27, %v5612_v28 }
 0x2be   :  { %3921 = vmatpush.bf16.msrb.mxu3 %v6507_v52  ;;  %3940 = vmatpush.bf16.msra.mxu1 %v5199_v55  ;;  %v7083_v39 = vld [vmem:[#allocation5 + $0x2dc] sm:$0xf]  ;;  %v3690_v55 = vadd.f32 %v3689_v44, %v3677_v43 }
 0x2bf   :  { %3909 = vmatmul.bf16.vlgmr.msrb.gmra.mxu2 %v7768_v32  ;;  %v5068_v46 = vld [vmem:[#allocation5 + $0x2f8] sm:$0xf0] }
 0x2c0   :  { %3953 = vmatpush.bf16.msra.mxu2 %v5455_v56  ;;  %3928 = vmatpush.bf16.msra.mxu0 %v4911_v6  ;;  %v7147_v58 = vld [vmem:[#allocation5 + $0x4dc] sm:$0xf]  ;;  %v4815_v56 = vor.u32 %v7019_v36, %v4812_v51  ;;  %v5071_v57 = vor.u32 %v7083_v39, %v5068_v46  ;;  %v3703_v6 = vadd.f32 %v3702_v0, %v3690_v55 }
 0x2c1   :  { %3922 = vmatmul.bf16.vlgmr.msrb.gmra.mxu3 %v7772_v38  ;;  %v5324_v48 = vld [vmem:[#allocation5 + $0x4f8] sm:$0xf0] }
 0x2c2   :  { %3966 = vmatpush.bf16.msra.mxu3 %v5711_v62  ;;  %3941 = vmatpush.bf16.msra.mxu1 %v5167_v7  ;;  %v7211_v52 = vld [vmem:[#allocation5 + $0x6dc] sm:$0xf]  ;;  %v5327_v59 = vor.u32 %v7147_v58, %v5324_v48  ;;  %v3715_v7 = vpop.f32.mrf.mxu3 }
 0x2c3   :  { %v5580_v53 = vld [vmem:[#allocation5 + $0x6f8] sm:$0xf0]  ;;  %v7859_v11 = vadd.f32 %v3715_v7, %v3703_v6 }
 0x2c4   :  { %3954 = vmatpush.bf16.msra.mxu2 %v5423_v8  ;;  %3929 = vmatpush.bf16.msra.mxu0 %v4879_v18  ;;  %v7011_v60 = vld [vmem:[#allocation5 + $0x9c] sm:$0xf]  ;;  %v5583_v4 = vor.u32 %v7211_v52, %v5580_v53  ;;  %v3691_v18 = vpop.f32.mrf.mxu1 }
 0x2c5   :  { %v4780_v62 = vld [vmem:[#allocation5 + $0xb8] sm:$0xf0] }
 0x2c6   :  { %3967 = vmatpush.bf16.msra.mxu3 %v5679_v12  ;;  %3942 = vmatpush.bf16.msra.mxu1 %v5135_v19  ;;  %v7075_v63 = vld [vmem:[#allocation5 + $0x29c] sm:$0xf]  ;;  %v4783_v10 = vor.u32 %v7011_v60, %v4780_v62  ;;  %v3678_v12 = vpop.f32.mrf.mxu0 }
 0x2c7   :  { %v5036_v2 = vld [vmem:[#allocation5 + $0x2b8] sm:$0xf0] }
 0x2c8   :  { %3955 = vmatpush.bf16.msra.mxu2 %v5391_v20  ;;  %3930 = vmatpush.bf16.msra.mxu0 %v4847_v29  ;;  %v7139_v3 = vld [vmem:[#allocation5 + $0x49c] sm:$0xf]  ;;  %v5039_v13 = vor.u32 %v7075_v63, %v5036_v2 }
 0x2c9   :  { %v5292_v5 = vld [vmem:[#allocation5 + $0x4b8] sm:$0xf0] }
 0x2ca   :  { %3968 = vmatpush.bf16.msra.mxu3 %v5647_v1  ;;  %3943 = vmatpush.bf16.msra.mxu1 %v5103_v30  ;;  %v7203_v8 = vld [vmem:[#allocation5 + $0x69c] sm:$0xf]  ;;  %v5295_v14 = vor.u32 %v7139_v3, %v5292_v5  ;;  %v3717_v44 = vpop.f32.mrf.mxu3 }
 0x2cb   :  { %v5548_v9 = vld [vmem:[#allocation5 + $0x6b8] sm:$0xf0] }
 0x2cc   :  { %3956 = vmatpush.bf16.msra.mxu2 %v5359_v31  ;;  %3931 = vmatpush.bf16.msra.mxu0 %v4815_v56  ;;  %v7003_v15 = vld [vmem:[#allocation5 + $0x5c] sm:$0xf]  ;;  %v5551_v19 = vor.u32 %v7203_v8, %v5548_v9  ;;  %v3704_v31 = vpop.f32.mrf.mxu2 }
 0x2cd   :  { %v4748_v17 = vld [vmem:[#allocation5 + $0x78] sm:$0xf0] }
 0x2ce   :  { %3969 = vmatpush.bf16.msra.mxu3 %v5615_v45  ;;  %3944 = vmatpush.bf16.msra.mxu1 %v5071_v57  ;;  %v7067_v35 = vld [vmem:[#allocation5 + $0x25c] sm:$0xf]  ;;  %v4751_v24 = vor.u32 %v7003_v15, %v4748_v17 }
 0x2cf   :  { %v5004_v20 = vld [vmem:[#allocation5 + $0x278] sm:$0xf0] }
 0x2d0   :  { %3957 = vmatpush.bf16.msra.mxu2 %v5327_v59  ;;  %v7131_v21 = vld [vmem:[#allocation5 + $0x45c] sm:$0xf]  ;;  %3932 = vmatpush.bf16.msra.mxu0 %v4783_v10  ;;  %v5007_v27 = vor.u32 %v7067_v35, %v5004_v20 }
 0x2d1   :  { %v5260_v22 = vld [vmem:[#allocation5 + $0x478] sm:$0xf0] }
 0x2d2   :  { %3970 = vmatpush.bf16.msra.mxu3 %v5583_v4  ;;  %v7195_v23 = vld [vmem:[#allocation5 + $0x65c] sm:$0xf]  ;;  %3945 = vmatpush.bf16.msra.mxu1 %v5039_v13  ;;  %v5263_v28 = vor.u32 %v7131_v21, %v5260_v22 }
 0x2d3   :  { %v5516_v1 = vld [vmem:[#allocation5 + $0x678] sm:$0xf0] }
 0x2d4   :  { %v6995_v25 = vld [vmem:[#allocation5 + $0x1c] sm:$0xf]  ;;  %3958 = vmatpush.bf16.msra.mxu2 %v5295_v14  ;;  %v5519_v36 = vor.u32 %v7195_v23, %v5516_v1  ;;  %3933 = vmatpush.bf16.msra.mxu0 %v4751_v24 }
 0x2d5   :  { %v4716_v26 = vld [vmem:[#allocation5 + $0x38] sm:$0xf0] }
 0x2d6   :  { %v7059_v29 = vld [vmem:[#allocation5 + $0x21c] sm:$0xf]  ;;  %3971 = vmatpush.bf16.msra.mxu3 %v5551_v19  ;;  %v4719_v48 = vor.u32 %v6995_v25, %v4716_v26  ;;  %3946 = vmatpush.bf16.msra.mxu1 %v5007_v27 }
 0x2d7   :  { %v4972_v49 = vld [vmem:[#allocation5 + $0x238] sm:$0xf0] }
 0x2d8   :  { %v7123_v30 = vld [vmem:[#allocation5 + $0x41c] sm:$0xf]  ;;  %3959 = vmatpush.bf16.msra.mxu2 %v5263_v28  ;;  %v4975_v56 = vor.u32 %v7059_v29, %v4972_v49  ;;  %3934 = vmatpush.bf16.msra.mxu0 %v4719_v48 }
 0x2d9   :  { %v5228_v51 = vld [vmem:[#allocation5 + $0x438] sm:$0xf0] }
 0x2da   :  { %v7187_v39 = vld [vmem:[#allocation5 + $0x61c] sm:$0xf]  ;;  %v5231_v57 = vor.u32 %v7123_v30, %v5228_v51  ;;  %3972 = vmatpush.bf16.msra.mxu3 %v5519_v36  ;;  %3947 = vmatpush.bf16.msra.mxu1 %v4975_v56  ;;  %v7865_v51 = vpop.f32.mrf.mxu0 }
 0x2db   :  { %v5484_v43 = vld [vmem:[#allocation5 + $0x638] sm:$0xf0]  ;;  %3935 = vmatmul.bf16.vlgmr.msra.gmra.mxu0 %v7758_v34 }
 0x2dc   :  { %v7307_v45 = vld [vmem:[#allocation5 + $0x9dc] sm:$0xf]  ;;  %v5487_v62 = vor.u32 %v7187_v39, %v5484_v43  ;;  %3960 = vmatpush.bf16.msra.mxu2 %v5231_v57 }
 0x2dd   :  { %v5964_v46 = vld [vmem:[#allocation5 + $0x9f8] sm:$0xf0]  ;;  %3948 = vmatmul.bf16.vlgmr.msra.gmra.mxu1 %v7762_v42 }
 0x2de   :  { %v7371_v58 = vld [vmem:[#allocation5 + $0xbdc] sm:$0xf]  ;;  %v5967_v63 = vor.u32 %v7307_v45, %v5964_v46  ;;  %3973 = vmatpush.bf16.msra.mxu3 %v5487_v62  ;;  %v7867_v46 = vpop.f32.mrf.mxu1 }
 0x2df   :  { %v6220_v52 = vld [vmem:[#allocation5 + $0xbf8] sm:$0xf0]  ;;  %3961 = vmatmul.bf16.vlgmr.msra.gmra.mxu2 %v7756_v33 }
 0x2e0   :  { %v7435_v53 = vld [vmem:[#allocation5 + $0xddc] sm:$0xf]  ;;  %v6223_v0 = vor.u32 %v7371_v58, %v6220_v52  ;;  %3979 = vmatpush.bf16.msrb.mxu0 %v5967_v63 }
 0x2e1   :  { %v6476_v55 = vld [vmem:[#allocation5 + $0xdf8] sm:$0xf0]  ;;  %3974 = vmatmul.bf16.vlgmr.msra.gmra.mxu3 %v7760_v41 }
 0x2e2   :  { %v7499_v59 = vld [vmem:[#allocation5 + $0xfdc] sm:$0xf]  ;;  %v6479_v4 = vor.u32 %v7435_v53, %v6476_v55  ;;  %3992 = vmatpush.bf16.msrb.mxu1 %v6223_v0 }
 0x2e3   :  { %v6732_v60 = vld [vmem:[#allocation5 + $0xff8] sm:$0xf0] }
 0x2e4   :  { %v7299_v2 = vld [vmem:[#allocation5 + $0x99c] sm:$0xf]  ;;  %v6735_v6 = vor.u32 %v7499_v59, %v6732_v60  ;;  %4005 = vmatpush.bf16.msrb.mxu2 %v6479_v4  ;;  %v7869_v4 = vpop.f32.mrf.mxu2 }
 0x2e5   :  { %v5932_v3 = vld [vmem:[#allocation5 + $0x9b8] sm:$0xf0] }
 0x2e6   :  { %v7363_v5 = vld [vmem:[#allocation5 + $0xb9c] sm:$0xf]  ;;  %v5935_v13 = vor.u32 %v7299_v2, %v5932_v3  ;;  %4018 = vmatpush.bf16.msrb.mxu3 %v6735_v6 }
 0x2e7   :  { %v6188_v7 = vld [vmem:[#allocation5 + $0xbb8] sm:$0xf0] }
 0x2e8   :  { %v7427_v8 = vld [vmem:[#allocation5 + $0xd9c] sm:$0xf]  ;;  %v6191_v14 = vor.u32 %v7363_v5, %v6188_v7  ;;  %3980 = vmatpush.bf16.msrb.mxu0 %v5935_v13  ;;  %v7871_v7 = vpop.f32.mrf.mxu3 }
 0x2e9   :  { %v6444_v9 = vld [vmem:[#allocation5 + $0xdb8] sm:$0xf0] }
 0x2ea   :  { %v7491_v10 = vld [vmem:[#allocation5 + $0xf9c] sm:$0xf]  ;;  %v6447_v15 = vor.u32 %v7427_v8, %v6444_v9  ;;  %3993 = vmatpush.bf16.msrb.mxu1 %v6191_v14 }
 0x2eb   :  { %v6700_v12 = vld [vmem:[#allocation5 + $0xfb8] sm:$0xf0] }
 0x2ec   :  { %v7291_v17 = vld [vmem:[#allocation5 + $0x95c] sm:$0xf]  ;;  %v6703_v19 = vor.u32 %v7491_v10, %v6700_v12  ;;  %4006 = vmatpush.bf16.msrb.mxu2 %v6447_v15  ;;  %v3730_v12 = vpop.f32.mrf.mxu0 }
 0x2ed   :  { %v5900_v35 = vld [vmem:[#allocation5 + $0x978] sm:$0xf0] }
 0x2ee   :  { %v7355_v18 = vld [vmem:[#allocation5 + $0xb5c] sm:$0xf]  ;;  %v5903_v24 = vor.u32 %v7291_v17, %v5900_v35  ;;  %4019 = vmatpush.bf16.msrb.mxu3 %v6703_v19 }
 0x2ef   :  { %v6156_v20 = vld [vmem:[#allocation5 + $0xb78] sm:$0xf0] }
 0x2f0   :  { %v7419_v21 = vld [vmem:[#allocation5 + $0xd5c] sm:$0xf]  ;;  %v6159_v25 = vor.u32 %v7355_v18, %v6156_v20  ;;  %3981 = vmatpush.bf16.msrb.mxu0 %v5903_v24  ;;  %v3743_v18 = vpop.f32.mrf.mxu1 }
 0x2f1   :  { %v6412_v22 = vld [vmem:[#allocation5 + $0xd78] sm:$0xf0] }
 0x2f2   :  { %v7483_v23 = vld [vmem:[#allocation5 + $0xf5c] sm:$0xf]  ;;  %v6415_v26 = vor.u32 %v7419_v21, %v6412_v22  ;;  %3994 = vmatpush.bf16.msrb.mxu1 %v6159_v25 }
 0x2f3   :  { %v6668_v1 = vld [vmem:[#allocation5 + $0xf78] sm:$0xf0] }
 0x2f4   :  { %v7283_v27 = vld [vmem:[#allocation5 + $0x91c] sm:$0xf]  ;;  %v6671_v29 = vor.u32 %v7483_v23, %v6668_v1  ;;  %4007 = vmatpush.bf16.msrb.mxu2 %v6415_v26 }
 0x2f5   :  { %v5868_v28 = vld [vmem:[#allocation5 + $0x938] sm:$0xf0] }
 0x2f6   :  { %v7347_v33 = vld [vmem:[#allocation5 + $0xb1c] sm:$0xf]  ;;  %v5871_v41 = vor.u32 %v7283_v27, %v5868_v28  ;;  %4020 = vmatpush.bf16.msrb.mxu3 %v6671_v29  ;;  %v3756_v29 = vpop.f32.mrf.mxu2 }
 0x2f7   :  { %v6124_v49 = vld [vmem:[#allocation5 + $0xb38] sm:$0xf0]  ;;  %v7528_v29 = vld [vmem:[%s8101_s3 + $0xc0] sm:$0xff] }
 0x2f8   :  { %v7411_v30 = vld [vmem:[#allocation5 + $0xd1c] sm:$0xf]  ;;  %v6127_v42 = vor.u32 %v7347_v33, %v6124_v49  ;;  %3982 = vmatpush.bf16.msrb.mxu0 %v5871_v41 }
 0x2f9   :  { %v6380_v31 = vld [vmem:[#allocation5 + $0xd38] sm:$0xf0] }
 0x2fa   :  { %v7475_v36 = vld [vmem:[#allocation5 + $0xf1c] sm:$0xf]  ;;  %v6383_v39 = vor.u32 %v7411_v30, %v6380_v31  ;;  %3995 = vmatpush.bf16.msrb.mxu1 %v6127_v42 }
 0x2fb   :  { %v6636_v34 = vld [vmem:[#allocation5 + $0xf38] sm:$0xf0] }
 0x2fc   :  { %v7275_v43 = vld [vmem:[#allocation5 + $0x8dc] sm:$0xf]  ;;  %v6639_v58 = vor.u32 %v7475_v36, %v6636_v34  ;;  %4008 = vmatpush.bf16.msrb.mxu2 %v6383_v39  ;;  %v3769_v34 = vpop.f32.mrf.mxu3 }
 0x2fd   :  { %v5836_v44 = vld [vmem:[#allocation5 + $0x8f8] sm:$0xf0] }
 0x2fe   :  { %v7339_v45 = vld [vmem:[#allocation5 + $0xadc] sm:$0xf]  ;;  %v5839_v57 = vor.u32 %v7275_v43, %v5836_v44  ;;  %4021 = vmatpush.bf16.msrb.mxu3 %v6639_v58  ;;  %v7511_v58 = vld [vmem:[%s8101_s3 + $0x38] sm:$0xff] }
 0x2ff   :  { %v6092_v48 = vld [vmem:[#allocation5 + $0xaf8] sm:$0xf0] }
 0x300   :  { %v7403_v52 = vld [vmem:[#allocation5 + $0xcdc] sm:$0xf]  ;;  %v6095_v59 = vor.u32 %v7339_v45, %v6092_v48  ;;  %3983 = vmatpush.bf16.msrb.mxu0 %v5839_v57  ;;  %v7519_v48 = vld [vmem:[%s8101_s3 + $0x78] sm:$0xff] }
 0x301   :  { %v6348_v53 = vld [vmem:[#allocation5 + $0xcf8] sm:$0xf0] }
 0x302   :  { %v7467_v55 = vld [vmem:[#allocation5 + $0xedc] sm:$0xf]  ;;  %v6351_v60 = vor.u32 %v7403_v52, %v6348_v53  ;;  %3996 = vmatpush.bf16.msrb.mxu1 %v6095_v59  ;;  %v7527_v52 = vld [vmem:[%s8101_s3 + $0xb8] sm:$0xff] }
 0x303   :  { %v6604_v56 = vld [vmem:[#allocation5 + $0xef8] sm:$0xf0]  ;;  %v7535_v53 = vld [vmem:[%s8101_s3 + $0xf8] sm:$0xff] }
 0x304   :  { %v7267_v62 = vld [vmem:[#allocation5 + $0x89c] sm:$0xf]  ;;  %v6607_v2 = vor.u32 %v7467_v55, %v6604_v56  ;;  %4009 = vmatpush.bf16.msrb.mxu2 %v6351_v60  ;;  %v7509_v60 = vld [vmem:[%s8101_s3 + $0x28] sm:$0xff]  ;;  %v7943_v12 = vpop.f32.mrf.mxu3 }
 0x305   :  { %v5804_v63 = vld [vmem:[#allocation5 + $0x8b8] sm:$0xf0] }
 0x306   :  { %v7331_v0 = vld [vmem:[#allocation5 + $0xa9c] sm:$0xf]  ;;  %v5807_v10 = vor.u32 %v7267_v62, %v5804_v63  ;;  %4022 = vmatpush.bf16.msrb.mxu3 %v6607_v2  ;;  %v7525_v62 = vld [vmem:[%s8101_s3 + $0xa8] sm:$0xff]  ;;  %v7516_v63 = vld [vmem:[%s8101_s3 + $0x60] sm:$0xff]  ;;  %v7924_v2 = vpop.f32.mrf.mxu1 }
 0x307   :  { %v6060_v3 = vld [vmem:[#allocation5 + $0xab8] sm:$0xf0] }
 0x308   :  { %v7395_v5 = vld [vmem:[#allocation5 + $0xc9c] sm:$0xf]  ;;  %v6063_v13 = vor.u32 %v7331_v0, %v6060_v3  ;;  %3984 = vmatpush.bf16.msrb.mxu0 %v5807_v10  ;;  %v7524_v0 = vld [vmem:[%s8101_s3 + $0xa0] sm:$0xff]  ;;  %v7531_v10 = vld [vmem:[%s8101_s3 + $0xd8] sm:$0xff] }
 0x309   :  { %v6316_v6 = vld [vmem:[#allocation5 + $0xcb8] sm:$0xf0]  ;;  %v7532_v3 = vld [vmem:[%s8101_s3 + $0xe0] sm:$0xff] }
 0x30a   :  { %v7459_v8 = vld [vmem:[#allocation5 + $0xe9c] sm:$0xf]  ;;  %v6319_v14 = vor.u32 %v7395_v5, %v6316_v6  ;;  %3997 = vmatpush.bf16.msrb.mxu1 %v6063_v13  ;;  %v7507_v5 = vld [vmem:[%s8101_s3 + $0x18] sm:$0xff] }
 0x30b   :  { %v6572_v9 = vld [vmem:[#allocation5 + $0xeb8] sm:$0xf0]  ;;  %v7515_v6 = vld [vmem:[%s8101_s3 + $0x58] sm:$0xff] }
 0x30c   :  { %v7259_v15 = vld [vmem:[#allocation5 + $0x85c] sm:$0xf]  ;;  %v6575_v19 = vor.u32 %v7459_v8, %v6572_v9  ;;  %4010 = vmatpush.bf16.msrb.mxu2 %v6319_v14  ;;  %v7523_v8 = vld [vmem:[%s8101_s3 + $0x98] sm:$0xff]  ;;  %v7938_v9 = vpop.f32.mrf.mxu2 }
 0x30d   :  { %v5772_v17 = vld [vmem:[#allocation5 + $0x878] sm:$0xf0] }
 0x30e   :  { %v7323_v35 = vld [vmem:[#allocation5 + $0xa5c] sm:$0xf]  ;;  %v5775_v24 = vor.u32 %v7259_v15, %v5772_v17  ;;  %4023 = vmatpush.bf16.msrb.mxu3 %v6575_v19  ;;  %v628_v19 = vperm.slane %v7849_v16, 5  ;;  %v7529_v16 = vld [vmem:[%s8101_s3 + $0xc8] sm:$0xff] }
 0x30f   :  { %v6028_v20 = vld [vmem:[#allocation5 + $0xa78] sm:$0xf0] }
 0x310   :  { %v7387_v21 = vld [vmem:[#allocation5 + $0xc5c] sm:$0xf]  ;;  %v6031_v25 = vor.u32 %v7323_v35, %v6028_v20  ;;  %3985 = vmatpush.bf16.msrb.mxu0 %v5775_v24  ;;  %v3795_v35 = vpop.f32.mrf.mxu1  ;;  %v7505_v20 = vld [vmem:[%s8101_s3 + $0x8] sm:$0xff]  ;;  %v3729_v24 = vadd.f32 %v7865_v51, %v628_v19  ;;  %v4033_v51 = vmax.f32 %v7829_v54, 0.0  ;;  %v7559_v54 = vld [vmem:[%s8101_s3 + $0x1b8] sm:$0xff] }
 0x311   :  { %v6284_v22 = vld [vmem:[#allocation5 + $0xc78] sm:$0xf0]  ;;  %v4035_v35 = vmax.f32 %v7859_v11, 0.0 }
 0x312   :  { %v7451_v23 = vld [vmem:[#allocation5 + $0xe5c] sm:$0xf]  ;;  %v6287_v26 = vor.u32 %v7387_v21, %v6284_v22  ;;  %3998 = vmatpush.bf16.msrb.mxu1 %v6031_v25  ;;  %v7513_v21 = vld [vmem:[%s8101_s3 + $0x48] sm:$0xff]  ;;  %v7504_v25 = vld [vmem:[%s8101_s3] sm:$0xff]  ;;  %v4041_v34 = vpack.c.bf16 %v4033_v51, %v4033_v51 }
 0x313   :  { %v6540_v1 = vld [vmem:[#allocation5 + $0xe78] sm:$0xf0]  ;;  %v7521_v22 = vld [vmem:[%s8101_s3 + $0x88] sm:$0xff] }
 0x314   :  { %v7251_v27 = vld [vmem:[#allocation5 + $0x81c] sm:$0xf]  ;;  %v6543_v49 = vor.u32 %v7451_v23, %v6540_v1  ;;  %4011 = vmatpush.bf16.msrb.mxu2 %v6287_v26  ;;  %v3808_v23 = vpop.f32.mrf.mxu2  ;;  %v3821_v1 = vpop.f32.mrf.mxu3  ;;  %v4031_v26 = vmax.f32 %v7799_v50, 0.0  ;;  %v7543_v50 = vld [vmem:[%s8101_s3 + $0x138] sm:$0xff] }
 0x315   :  { %v5740_v28 = vld [vmem:[#allocation5 + $0x838] sm:$0xf0] }
 0x316   :  { %v7315_v33 = vld [vmem:[#allocation5 + $0xa1c] sm:$0xf]  ;;  %v5743_v39 = vor.u32 %v7251_v27, %v5740_v28  ;;  %4024 = vmatpush.bf16.msrb.mxu3 %v6543_v49  ;;  %v7512_v27 = vld [vmem:[%s8101_s3 + $0x40] sm:$0xff]  ;;  %v4034_v49 = vmax.f32 %v7843_v61, 0.0 }
 0x317   :  { %v5996_v30 = vld [vmem:[#allocation5 + $0xa38] sm:$0xf0]  ;;  %v7520_v28 = vld [vmem:[%s8101_s3 + $0x80] sm:$0xff] }
 0x318   :  { %v7379_v31 = vld [vmem:[#allocation5 + $0xc1c] sm:$0xf]  ;;  %v5999_v43 = vor.u32 %v7315_v33, %v5996_v30  ;;  %3986 = vmatpush.bf16.msrb.mxu0 %v5743_v39  ;;  %v4032_v33 = vmax.f32 %v7813_v47, 0.0  ;;  %v7551_v30 = vld [vmem:[%s8101_s3 + $0x178] sm:$0xff]  ;;  %v4039_v47 = vpack.c.bf16 %v4031_v26, %v4031_v26 }
 0x319   :  { %v6252_v36 = vld [vmem:[#allocation5 + $0xc38] sm:$0xf0] }
 0x31a   :  { %v7443_v41 = vld [vmem:[#allocation5 + $0xe1c] sm:$0xf]  ;;  %v6255_v44 = vor.u32 %v7379_v31, %v6252_v36  ;;  %3999 = vmatpush.bf16.msrb.mxu1 %v5999_v43  ;;  %v3742_v31 = vadd.f32 %v7867_v46, %v3729_v24  ;;  %v4040_v36 = vpack.c.bf16 %v4032_v33, %v4032_v33  ;;  %v7541_v43 = vld [vmem:[%s8101_s3 + $0x128] sm:$0xff]  ;;  %v7567_v33 = vld [vmem:[%s8101_s3 + $0x1f8] sm:$0xff] }
 0x31b   :  { %v6508_v42 = vld [vmem:[#allocation5 + $0xe38] sm:$0xf0]  ;;  %3987 = vmatmul.bf16.vlgmr.msrb.gmra.mxu0 %v7770_v37  ;;  %v7517_v37 = vld [vmem:[%s8101_s3 + $0x68] sm:$0xff] }
 0x31c   :  { %v6511_v45 = vor.u32 %v7443_v41, %v6508_v42  ;;  %4012 = vmatpush.bf16.msrb.mxu2 %v6255_v44  ;;  %4563 = vmatpush.bf16.msra.mxu0 %v7511_v58  ;;  %v7510_v55 = vld [vmem:[%s8101_s3 + $0x30] sm:$0xff]  ;;  %v4042_v41 = vpack.c.bf16 %v4034_v49, %v4034_v49  ;;  %v3755_v42 = vadd.f32 %v7869_v4, %v3742_v31  ;;  %v7549_v44 = vld [vmem:[%s8101_s3 + $0x168] sm:$0xff]  ;;  %v7540_v58 = vld [vmem:[%s8101_s3 + $0x120] sm:$0xff] }
 0x31d   :  { %v7518_v56 = vld [vmem:[%s8101_s3 + $0x70] sm:$0xff]  ;;  %4000 = vmatmul.bf16.vlgmr.msrb.gmra.mxu1 %v7774_v40  ;;  %v7916_v40 = vpop.f32.mrf.mxu0 }
 0x31e   :  { %4025 = vmatpush.bf16.msrb.mxu3 %v6511_v45  ;;  %4576 = vmatpush.bf16.msra.mxu1 %v7519_v48  ;;  %v7526_v57 = vld [vmem:[%s8101_s3 + $0xb0] sm:$0xff]  ;;  %v3768_v4 = vadd.f32 %v7871_v7, %v3755_v42  ;;  %v7557_v45 = vld [vmem:[%s8101_s3 + $0x1a8] sm:$0xff]  ;;  %v7556_v7 = vld [vmem:[%s8101_s3 + $0x1a0] sm:$0xff] }
 0x31f   :  { %v7534_v59 = vld [vmem:[%s8101_s3 + $0xf0] sm:$0xff]  ;;  %4013 = vmatmul.bf16.vlgmr.msrb.gmra.mxu2 %v7768_v32  ;;  %v7533_v32 = vld [vmem:[%s8101_s3 + $0xe8] sm:$0xff] }
 0x320   :  { %4589 = vmatpush.bf16.msra.mxu2 %v7527_v52  ;;  %4564 = vmatpush.bf16.msra.mxu0 %v7510_v55  ;;  %v7506_v13 = vld [vmem:[%s8101_s3 + $0x10] sm:$0xff]  ;;  %v7548_v52 = vld [vmem:[%s8101_s3 + $0x160] sm:$0xff]  ;;  %v3781_v55 = vadd.f32 %v7916_v40, %v3768_v4 }
 0x321   :  { %4026 = vmatmul.bf16.vlgmr.msrb.gmra.mxu3 %v7772_v38  ;;  %v7508_v38 = vld [vmem:[%s8101_s3 + $0x20] sm:$0xff]  ;;  %v7514_v15 = vld [vmem:[%s8101_s3 + $0x50] sm:$0xff] }
 0x322   :  { %4602 = vmatpush.bf16.msra.mxu3 %v7535_v53  ;;  %4577 = vmatpush.bf16.msra.mxu1 %v7518_v56  ;;  %v7522_v17 = vld [vmem:[%s8101_s3 + $0x90] sm:$0xff]  ;;  %v3845_v53 = vpop.f32.mrf.mxu1  ;;  %v7539_v56 = vld [vmem:[%s8101_s3 + $0x118] sm:$0xff] }
 0x323   :  { %v7530_v18 = vld [vmem:[%s8101_s3 + $0xd0] sm:$0xff] }
 0x324   :  { %4590 = vmatpush.bf16.msra.mxu2 %v7526_v57  ;;  %4565 = vmatpush.bf16.msra.mxu0 %v7509_v60  ;;  %v7542_v61 = vld [vmem:[%s8101_s3 + $0x130] sm:$0xff]  ;;  %v7547_v57 = vld [vmem:[%s8101_s3 + $0x158] sm:$0xff]  ;;  %v3794_v60 = vadd.f32 %v7924_v2, %v3781_v55 }
 0x325   :  { %v3782_v14 = vpop.f32.mrf.mxu0  ;;  %v7550_v46 = vld [vmem:[%s8101_s3 + $0x170] sm:$0xff]  ;;  %v8044_v2 = vld [vmem:[#allocation7] sm:$0xff] }
 0x326   :  { %4603 = vmatpush.bf16.msra.mxu3 %v7534_v59  ;;  %4578 = vmatpush.bf16.msra.mxu1 %v7517_v37  ;;  %v7558_v39 = vld [vmem:[%s8101_s3 + $0x1b0] sm:$0xff]  ;;  %v3858_v59 = vpop.f32.mrf.mxu2  ;;  %v3871_v37 = vpop.f32.mrf.mxu3 }
 0x327   :  { %v7546_v40 = vld [vmem:[%s8101_s3 + $0x150] sm:$0xff] }
 0x328   :  { %4591 = vmatpush.bf16.msra.mxu2 %v7525_v62  ;;  %4566 = vmatpush.bf16.msra.mxu0 %v7508_v38  ;;  %v7555_v62 = vld [vmem:[%s8101_s3 + $0x198] sm:$0xff] }
 0x32a   :  { %4604 = vmatpush.bf16.msra.mxu3 %v7533_v32  ;;  %4579 = vmatpush.bf16.msra.mxu1 %v7516_v63  ;;  %v7538_v32 = vld [vmem:[%s8101_s3 + $0x110] sm:$0xff]  ;;  %v3847_v63 = vpop.f32.mrf.mxu1 }
 0x32c   :  { %4592 = vmatpush.bf16.msra.mxu2 %v7524_v0  ;;  %4567 = vmatpush.bf16.msra.mxu0 %v7507_v5  ;;  %v3807_v0 = vadd.f32 %v7938_v9, %v3794_v60  ;;  %v7554_v5 = vld [vmem:[%s8101_s3 + $0x190] sm:$0xff] }
 0x32d   :  { %v3832_v48 = vpop.f32.mrf.mxu0 }
 0x32e   :  { %4605 = vmatpush.bf16.msra.mxu3 %v7532_v3  ;;  %4580 = vmatpush.bf16.msra.mxu1 %v7515_v6  ;;  %v629_v3 = vperm.slane %v8044_v2, 6  ;;  %v7537_v6 = vld [vmem:[%s8101_s3 + $0x108] sm:$0xff]  ;;  %v3860_v9 = vpop.f32.mrf.mxu2 }
 0x32f   :  { %v7575_v9 = vld [vmem:[#allocation8] ss:$0 sm:$0xff] }
 0x330   :  { %4593 = vmatpush.bf16.msra.mxu2 %v7523_v8  ;;  %4568 = vmatpush.bf16.msra.mxu0 %v7506_v13  ;;  %v7545_v8 = vld [vmem:[%s8101_s3 + $0x148] sm:$0xff]  ;;  %v3873_v13 = vpop.f32.mrf.mxu3  ;;  %v3833_v14 = vadd.f32 %v3832_v48, %v629_v3  ;;  %v630_v48 = vperm.slane %v8044_v2, 7 }
 0x332   :  { %4606 = vmatpush.bf16.msra.mxu3 %v7531_v10  ;;  %4581 = vmatpush.bf16.msra.mxu1 %v7514_v15  ;;  %v3820_v10 = vadd.f32 %v7943_v12, %v3807_v0  ;;  %v7553_v15 = vld [vmem:[%s8101_s3 + $0x188] sm:$0xff]  ;;  %v3846_v19 = vadd.f32 %v3845_v53, %v3833_v14 }
 0x334   :  { %4594 = vmatpush.bf16.msra.mxu2 %v7522_v17  ;;  %4569 = vmatpush.bf16.msra.mxu0 %v7505_v20  ;;  %v7536_v17 = vld [vmem:[%s8101_s3 + $0x100] sm:$0xff]  ;;  %v4036_v12 = vmax.f32 %v3820_v10, 0.0  ;;  %v3859_v23 = vadd.f32 %v3858_v59, %v3846_v19 }
 0x335   :  { %v3834_v38 = vpop.f32.mrf.mxu0  ;;  %v7552_v20 = vld [vmem:[%s8101_s3 + $0x180] sm:$0xff] }
 0x336   :  { %4607 = vmatpush.bf16.msra.mxu3 %v7530_v18  ;;  %4582 = vmatpush.bf16.msra.mxu1 %v7513_v21  ;;  %v7544_v18 = vld [vmem:[%s8101_s3 + $0x140] sm:$0xff]  ;;  %v4043_v21 = vpack.c.bf16 %v4035_v35, %v4035_v35  ;;  %v3872_v11 = vadd.f32 %v3871_v37, %v3859_v23 }
 0x338   :  { %4595 = vmatpush.bf16.msra.mxu2 %v7521_v22  ;;  %4570 = vmatpush.bf16.msra.mxu0 %v7504_v25  ;;  %v4044_v22 = vpack.c.bf16 %v4036_v12, %v4036_v12 }
 0x33a   :  { %4608 = vmatpush.bf16.msra.mxu3 %v7529_v16  ;;  %4583 = vmatpush.bf16.msra.mxu1 %v7512_v27  ;;  %v3897_v24 = vpop.f32.mrf.mxu1 }
 0x33b   :  { %4571 = vmatmul.bf16.vlgmr.msra.gmra.mxu0 %v4039_v47  ;;  %v7565_v47 = vld [vmem:[%s8101_s3 + $0x1e8] sm:$0xff] }
 0x33c   :  { %4596 = vmatpush.bf16.msra.mxu2 %v7520_v28  ;;  %4615 = vmatpush.bf16.msrb.mxu0 %v7543_v50  ;;  %v7566_v50 = vld [vmem:[%s8101_s3 + $0x1f0] sm:$0xff] }
 0x33d   :  { %4584 = vmatmul.bf16.vlgmr.msra.gmra.mxu1 %v4040_v36  ;;  %v3884_v16 = vpop.f32.mrf.mxu0 }
 0x33e   :  { %4609 = vmatpush.bf16.msra.mxu3 %v7528_v29  ;;  %4628 = vmatpush.bf16.msrb.mxu1 %v7551_v30  ;;  %v3885_v1 = vadd.f32 %v3884_v16, %v3872_v11 }
 0x33f   :  { %4597 = vmatmul.bf16.vlgmr.msra.gmra.mxu2 %v4041_v34  ;;  %v7564_v34 = vld [vmem:[%s8101_s3 + $0x1e0] sm:$0xff] }
 0x340   :  { %4641 = vmatpush.bf16.msrb.mxu2 %v7559_v54  ;;  %4616 = vmatpush.bf16.msrb.mxu0 %v7542_v61  ;;  %v3898_v25 = vadd.f32 %v3897_v24, %v3885_v1  ;;  %v7563_v61 = vld [vmem:[%s8101_s3 + $0x1d8] sm:$0xff] }
 0x341   :  { %4610 = vmatmul.bf16.vlgmr.msra.gmra.mxu3 %v4042_v41 }
 0x342   :  { %4629 = vmatpush.bf16.msrb.mxu1 %v7550_v46  ;;  %v3910_v26 = vpop.f32.mrf.mxu2  ;;  %4654 = vmatpush.bf16.msrb.mxu3 %v7567_v33  ;;  %v3899_v49 = vpop.f32.mrf.mxu1  ;;  %v7562_v46 = vld [vmem:[%s8101_s3 + $0x1d0] sm:$0xff] }
 0x343   :  { %v3911_v27 = vadd.f32 %v3910_v26, %v3898_v25 }
 0x344   :  { %4642 = vmatpush.bf16.msrb.mxu2 %v7558_v39  ;;  %4617 = vmatpush.bf16.msrb.mxu0 %v7541_v43  ;;  %v3923_v28 = vpop.f32.mrf.mxu3  ;;  %v7561_v43 = vld [vmem:[%s8101_s3 + $0x1c8] sm:$0xff] }
 0x345   :  { %v3924_v51 = vadd.f32 %v3923_v28, %v3911_v27  ;;  %v3886_v29 = vpop.f32.mrf.mxu0 }
 0x346   :  { %4630 = vmatpush.bf16.msrb.mxu1 %v7549_v44  ;;  %4655 = vmatpush.bf16.msrb.mxu3 %v7566_v50 }
 0x347   :  { %v4037_v30 = vmax.f32 %v3924_v51, 0.0 }
 0x348   :  { %4643 = vmatpush.bf16.msrb.mxu2 %v7557_v45  ;;  %4618 = vmatpush.bf16.msrb.mxu0 %v7540_v58  ;;  %v7560_v58 = vld [vmem:[%s8101_s3 + $0x1c0] sm:$0xff]  ;;  %s7713_s3 = smov [#allocation10]  }
 0x349   :  { %v4045_v31 = vpack.c.bf16 %v4037_v30, %v4037_v30  ;;  %s4674_s23 = sshll.u32 %s7713_s3, 4  ;;  %s4675_s23 = int_to_ptr.vmem [resolvable:$true] %s4674_s23 }
 0x34a   :  { %4631 = vmatpush.bf16.msrb.mxu1 %v7548_v52  ;;  %v3912_v54 = vpop.f32.mrf.mxu2  ;;  %4656 = vmatpush.bf16.msrb.mxu3 %v7565_v47 }
 0x34c   :  { %4644 = vmatpush.bf16.msrb.mxu2 %v7556_v7  ;;  %4619 = vmatpush.bf16.msrb.mxu0 %v7539_v56  ;;  %v3925_v36 = vpop.f32.mrf.mxu3 }
 0x34e   :  { %4632 = vmatpush.bf16.msrb.mxu1 %v7547_v57  ;;  %4657 = vmatpush.bf16.msrb.mxu3 %v7564_v34 }
 0x350   :  { %4645 = vmatpush.bf16.msrb.mxu2 %v7555_v62  ;;  %4620 = vmatpush.bf16.msrb.mxu0 %v7538_v32 }
 0x352   :  { %4633 = vmatpush.bf16.msrb.mxu1 %v7546_v40  ;;  %4658 = vmatpush.bf16.msrb.mxu3 %v7563_v61 }
 0x354   :  { %4646 = vmatpush.bf16.msrb.mxu2 %v7554_v5  ;;  %4621 = vmatpush.bf16.msrb.mxu0 %v7537_v6 }
 0x356   :  { %4634 = vmatpush.bf16.msrb.mxu1 %v7545_v8  ;;  %4659 = vmatpush.bf16.msrb.mxu3 %v7562_v46 }
 0x358   :  { %4647 = vmatpush.bf16.msrb.mxu2 %v7553_v15  ;;  %4622 = vmatpush.bf16.msrb.mxu0 %v7536_v17  ;;  %v3936_v41 = vpop.f32.mrf.mxu0 }
 0x359   :  { %v3937_v55 = vadd.f32 %v3936_v41, %v630_v48 }
 0x35a   :  { %4635 = vmatpush.bf16.msrb.mxu1 %v7544_v18  ;;  %v3949_v42 = vpop.f32.mrf.mxu1  ;;  %4660 = vmatpush.bf16.msrb.mxu3 %v7561_v43 }
 0x35b   :  { %4623 = vmatmul.bf16.vlgmr.msrb.gmra.mxu0 %v4043_v21  ;;  %v3950_v7 = vadd.f32 %v3949_v42, %v3937_v55 }
 0x35c   :  { %4648 = vmatpush.bf16.msrb.mxu2 %v7552_v20 }
 0x35d   :  { %4636 = vmatmul.bf16.vlgmr.msrb.gmra.mxu1 %v4044_v22 }
 0x35e   :  { %4661 = vmatpush.bf16.msrb.mxu3 %v7560_v58 }
 0x35f   :  { %4649 = vmatmul.bf16.vlgmr.msrb.gmra.mxu2 %v4045_v31 }
 0x360   :  { %v3938_v4 = vpop.f32.mrf.mxu0 }
 0x362   :  { %v3962_v39 = vpop.f32.mrf.mxu2  ;;  %v3951_v45 = vpop.f32.mrf.mxu1 }
 0x363   :  { %v3963_v56 = vadd.f32 %v3962_v39, %v3950_v7 }
 0x364   :  { %v3975_v44 = vpop.f32.mrf.mxu3 }
 0x365   :  { %v3976_v57 = vadd.f32 %v3975_v44, %v3963_v56 }
 0x36a   :  { %v3964_v52 = vpop.f32.mrf.mxu2 }
 0x36c   :  { %v3977_v53 = vpop.f32.mrf.mxu3 }
 0x398   :  { %v3988_v59 = vpop.f32.mrf.mxu0 }
 0x399   :  { %v3989_v37 = vadd.f32 %v3988_v59, %v3976_v57 }
 0x39a   :  { %v4001_v60 = vpop.f32.mrf.mxu1 }
 0x39b   :  { %v4002_v62 = vadd.f32 %v4001_v60, %v3989_v37 }
 0x3a0   :  { %v3990_v63 = vpop.f32.mrf.mxu0 }
 0x3a2   :  { %v4014_v32 = vpop.f32.mrf.mxu2  ;;  %v4003_v0 = vpop.f32.mrf.mxu1 }
 0x3a3   :  { %v4015_v38 = vadd.f32 %v4014_v32, %v4002_v62 }
 0x3a4   :  { %v4027_v40 = vpop.f32.mrf.mxu3 }
 0x3a5   :  { %v4028_v3 = vadd.f32 %v4027_v40, %v4015_v38 }
 0x3a7   :  { %v4038_v5 = vmax.f32 %v4028_v3, 0.0 }
 0x3a9   :  { %v4046_v6 = vpack.c.bf16 %v4038_v5, %v4038_v5 }
 0x3aa   :  { %v4016_v8 = vpop.f32.mrf.mxu2 }
 0x3ab   :  { %4662 = vmatmul.bf16.vlgmr.msrb.gmra.mxu3 %v4046_v6 }
 0x3ac   :  { %v4029_v2 = vpop.f32.mrf.mxu3 }
 0x3b8   :  { %v4572_v10 = vpop.f32.mrf.mxu0 }
 0x3b9   :  { %v4573_v13 = vadd.f32 %v7575_v9, %v4572_v10 }
 0x3ba   :  { %v4585_v14 = vpop.f32.mrf.mxu1 }
 0x3bb   :  { %v4586_v15 = vadd.f32 %v4585_v14, %v4573_v13 }
 0x3c0   :  { %v4574_v12 = vpop.f32.mrf.mxu0 }
 0x3c2   :  { %v4598_v17 = vpop.f32.mrf.mxu2  ;;  %v4587_v19 = vpop.f32.mrf.mxu1 }
 0x3c3   :  { %v4599_v35 = vadd.f32 %v4598_v17, %v4586_v15 }
 0x3c4   :  { %v4611_v18 = vpop.f32.mrf.mxu3 }
 0x3c5   :  { %v4612_v20 = vadd.f32 %v4611_v18, %v4599_v35 }
 0x3ca   :  { %v4600_v21 = vpop.f32.mrf.mxu2 }
 0x3cc   :  { %v4613_v22 = vpop.f32.mrf.mxu3 }
 0x3d8   :  { %v4624_v23 = vpop.f32.mrf.mxu0 }
 0x3d9   :  { %v4625_v11 = vadd.f32 %v4624_v23, %v4612_v20 }
 0x3da   :  { %v4637_v16 = vpop.f32.mrf.mxu1 }
 0x3db   :  { %v4638_v1 = vadd.f32 %v4637_v16, %v4625_v11 }
 0x3e0   :  { %v4626_v24 = vpop.f32.mrf.mxu0 }
 0x3e2   :  { %v4639_v25 = vpop.f32.mrf.mxu1  ;;  %v4650_v26 = vpop.f32.mrf.mxu2 }
 0x3e3   :  { %v4651_v28 = vadd.f32 %v4650_v26, %v4638_v1 }
 0x3ea   :  { %v4652_v27 = vpop.f32.mrf.mxu2 }
 0x42e   :  { %v4663_v33 = vpop.f32.mrf.mxu3 }
 0x42f   :  { %v4664_v51 = vadd.f32 %v4663_v33, %v4651_v28 }
 0x431   :  { %4668 = vst.msk [vmem:[#allocation10] sm:$0x3] %vm4667_vm0, %v4664_v51 }
 0x432   :  { %4679 = dma.vmem_to_hbm [thread:$0]  %s4675_s23, 32, %s4677_s26, [#allocation4]  }
 0x436   :  { %v4665_v29 = vpop.f32.mrf.mxu3 }
 0x437   :  { %7705 = dma.done.wait [#allocation4], 32  }
 0x438   :  { %7706 = vsyncadd [#allocation4], 4294967264 }
 0x439   :  { %4684 = vsyncpa [#allocation3], 1 }
 0x43a   :  { %4685 = vsyncpa [#allocation6], 1 }
 0x43b   :  { %4686 = vsyncpa [#allocation9], 1 }
 0x43c   :  { %4687 = vsyncpa [#allocation4], 1 }

</bundles_post_ra>
